<compile_context>
chip_gen: v7x
topology: tpu7x:2x2x1
jax: 0.10.0
libtpu: 0.0.40
codegen_flags: <defaults>
</compile_context>

<pallas_src>
import math

import jax
import jax.numpy as jnp
from jax import lax
from jax.experimental import pallas as pl
from jax.experimental.pallas import tpu as pltpu

D_MODEL = 32
N_HEADS = 4
D_K = D_MODEL // N_HEADS
D_FF = 64
N_LAYERS = 2
EPS = 1e-6   # matches LayerNorm(eps=1e-6); added to std, NOT variance

PARAM_ORDER = ("sa_wqkv", "sa_bqkv", "sa_wo", "sa_bo",
               "ca_wq", "ca_bq", "ca_wkv", "ca_bkv", "ca_wo", "ca_bo",
               "ff_w1", "ff_b1", "ff_w2", "ff_b2",
               "ln_a", "ln_b", "fin_a", "fin_b")


# ------------------------------ fused kernel --------------------------------

def _decoder_kernel(x_ref, mem_ref, smask_ref, tmask_ref,
                    sa_wqkv, sa_bqkv, sa_wo, sa_bo,
                    ca_wq, ca_bq, ca_wkv, ca_bkv, ca_wo, ca_bo,
                    ff_w1, ff_b1, ff_w2, ff_b2,
                    ln_a, ln_b, fin_a, fin_b,
                    o_ref):
    """One grid step = one batch element. Entire N-layer decoder computed in VMEM."""
    x = x_ref[0].astype(jnp.float32)        # (St, D)
    mem = mem_ref[0].astype(jnp.float32)    # (Ss, D)
    smask = smask_ref[0]                    # (1, Ss)   broadcast over query rows + heads
    tmask = tmask_ref[0]                    # (St, St)  broadcast over heads

    scale = jnp.float32(1.0 / math.sqrt(D_K))

    def layer_norm(z, a, b):
        # PyTorch-style (Annotated Transformer) LayerNorm: unbiased std, eps added to std.
        d = z.shape[-1]
        mu = jnp.mean(z, axis=-1, keepdims=True)
        zc = z - mu
        var = jnp.sum(zc * zc, axis=-1, keepdims=True) / (d - 1)
        return a * zc / (jnp.sqrt(var) + EPS) + b

    def softmax_rows(s):
        s = s - jnp.max(s, axis=-1, keepdims=True)
        p = jnp.exp(s)
        return p * pl.reciprocal(jnp.sum(p, axis=-1, keepdims=True), approx=True)

    def attend(q, k, v, mask2d):
        # q: (Sq, D); k, v: (Sk, D); mask2d broadcastable to (Sq, Sk).
        # Static per-head loop (H=4); heads stay fused in a lane-dense (Sq, D) result.
        outs = []
        for h in range(N_HEADS):
            lo, hi = h * D_K, (h + 1) * D_K
            qh, kh, vh = q[:, lo:hi], k[:, lo:hi], v[:, lo:hi]
            sc = lax.dot_general(qh, kh, (((1,), (1,)), ((), ())),
                                 preferred_element_type=jnp.float32) * scale
            sc = jnp.where(mask2d == 0, jnp.float32(-1e9), sc)
            p = softmax_rows(sc)
            outs.append(jnp.dot(p, vh, preferred_element_type=jnp.float32))
        return jnp.concatenate(outs, axis=-1)   # (Sq, D)

    for l in range(N_LAYERS):                   # static unroll (N_LAYERS = 2)
        lna = ln_a[l]                            # (3, D)
        lnb = ln_b[l]

        # ---- sublayer 0: self-attention (pre-norm residual; dropout = eval no-op) ----
        n0 = layer_norm(x, lna[0:1, :], lnb[0:1, :])
        qkv = jnp.dot(n0, sa_wqkv[l], preferred_element_type=jnp.float32) + sa_bqkv[l]
        q, k, v = qkv[:, :D_MODEL], qkv[:, D_MODEL:2 * D_MODEL], qkv[:, 2 * D_MODEL:]
        a = attend(q, k, v, tmask)
        x = x + jnp.dot(a, sa_wo[l], preferred_element_type=jnp.float32) + sa_bo[l]

        # ---- sublayer 1: source attention (query from normed x, key/value from memory) ----
        n1 = layer_norm(x, lna[1:2, :], lnb[1:2, :])
        q = jnp.dot(n1, ca_wq[l], preferred_element_type=jnp.float32) + ca_bq[l]
        kv = jnp.dot(mem, ca_wkv[l], preferred_element_type=jnp.float32) + ca_bkv[l]
        k, v = kv[:, :D_MODEL], kv[:, D_MODEL:]
        a = attend(q, k, v, smask)
        x = x + jnp.dot(a, ca_wo[l], preferred_element_type=jnp.float32) + ca_bo[l]

        # ---- sublayer 2: position-wise feed-forward ----
        n2 = layer_norm(x, lna[2:3, :], lnb[2:3, :])
        hdn = jnp.maximum(
            jnp.dot(n2, ff_w1[l], preferred_element_type=jnp.float32) + ff_b1[l], 0.0)
        x = x + jnp.dot(hdn, ff_w2[l], preferred_element_type=jnp.float32) + ff_b2[l]

    # final Decoder LayerNorm
    o_ref[0] = layer_norm(x, fin_a[...], fin_b[...]).astype(o_ref.dtype)


# --------------------------------- wrapper -----------------------------------

def decoder_forward(params, x, memory, src_mask, tgt_mask):
    b, s_t, d = x.shape
    s_s = memory.shape[1]
    pvals = [params[k] for k in PARAM_ORDER]

    def const_spec(arr):
        nd = arr.ndim
        return pl.BlockSpec(arr.shape, lambda i, _nd=nd: (0,) * _nd)

    in_specs = [
        pl.BlockSpec((1, s_t, d), lambda i: (i, 0, 0)),                 # x
        pl.BlockSpec((1, s_s, d), lambda i: (i, 0, 0)),                 # memory
        pl.BlockSpec((1,) + src_mask.shape[1:], lambda i: (i, 0, 0)),   # src_mask (B,1,Ss)
        pl.BlockSpec((1,) + tgt_mask.shape[1:], lambda i: (i, 0, 0)),   # tgt_mask (B,St,St)
    ] + [const_spec(p) for p in pvals]                                  # weights: VMEM-resident

    return pl.pallas_call(
        _decoder_kernel,
        out_shape=jax.ShapeDtypeStruct((b, s_t, d), x.dtype),
        grid=(b,),
        in_specs=in_specs,
        out_specs=pl.BlockSpec((1, s_t, d), lambda i: (i, 0, 0)),
        compiler_params=pltpu.CompilerParams(dimension_semantics=("parallel",)),
    )(x, memory, src_mask, tgt_mask, *pvals)


# ----------------------------- parameter init --------------------------------

def init_params(key):
    keys = jax.random.split(key, 256)
    it = iter(keys)

    def lin(fan_in, fan_out):
        k1, k2 = next(it), next(it)
        bound = 1.0 / math.sqrt(fan_in)
        w = jax.random.uniform(k1, (fan_in, fan_out), jnp.float32, -bound, bound)
        b = jax.random.uniform(k2, (fan_out,), jnp.float32, -bound, bound)
        return w, b

    stacks = {k: [] for k in PARAM_ORDER if not k.startswith("fin")}
    for _ in range(N_LAYERS):
        # self-attention: q, k, v fused into one [D, 3D] weight; separate output proj
        wq, bq = lin(D_MODEL, D_MODEL)
        wk, bk = lin(D_MODEL, D_MODEL)
        wv, bv = lin(D_MODEL, D_MODEL)
        wo, bo = lin(D_MODEL, D_MODEL)
        stacks["sa_wqkv"].append(jnp.concatenate([wq, wk, wv], axis=1))
        stacks["sa_bqkv"].append(jnp.concatenate([bq, bk, bv])[None, :])
        stacks["sa_wo"].append(wo)
        stacks["sa_bo"].append(bo[None, :])
        # source attention: separate Q (from x), fused K/V (from memory), output proj
        wq, bq = lin(D_MODEL, D_MODEL)
        wk, bk = lin(D_MODEL, D_MODEL)
        wv, bv = lin(D_MODEL, D_MODEL)
        wo, bo = lin(D_MODEL, D_MODEL)
        stacks["ca_wq"].append(wq)
        stacks["ca_bq"].append(bq[None, :])
        stacks["ca_wkv"].append(jnp.concatenate([wk, wv], axis=1))
        stacks["ca_bkv"].append(jnp.concatenate([bk, bv])[None, :])
        stacks["ca_wo"].append(wo)
        stacks["ca_bo"].append(bo[None, :])
        # position-wise FFN
        w1, b1 = lin(D_MODEL, D_FF)
        w2, b2 = lin(D_FF, D_MODEL)
        stacks["ff_w1"].append(w1)
        stacks["ff_b1"].append(b1[None, :])
        stacks["ff_w2"].append(w2)
        stacks["ff_b2"].append(b2[None, :])
        # 3 LayerNorms per layer (sublayer-connection pre-norms)
        stacks["ln_a"].append(jnp.ones((3, D_MODEL), jnp.float32))
        stacks["ln_b"].append(jnp.zeros((3, D_MODEL), jnp.float32))

    params = {k: jnp.stack(v) for k, v in stacks.items()}
    params["fin_a"] = jnp.ones((1, D_MODEL), jnp.float32)
    params["fin_b"] = jnp.zeros((1, D_MODEL), jnp.float32)
    return params


# ----------------------------------- main -------------------------------------

if __name__ == "__main__":
    key = jax.random.PRNGKey(0)
    kp, kx, km = jax.random.split(key, 3)
    params = init_params(kp)

    B, S_TGT, S_SRC = 2, 8, 8
    x = jax.random.normal(kx, (B, S_TGT, D_MODEL), jnp.float32)
    memory = jax.random.normal(km, (B, S_SRC, D_MODEL), jnp.float32)
    src_mask = jnp.ones((B, 1, S_SRC), jnp.float32)
    tgt_mask = jnp.broadcast_to(
        jnp.tril(jnp.ones((S_TGT, S_TGT), jnp.float32))[None], (B, S_TGT, S_TGT))

    out = jax.jit(decoder_forward)(params, x, memory, src_mask, tgt_mask)
    jax.block_until_ready(out)
    assert out.shape == (B, S_TGT, D_MODEL) and bool(jnp.all(jnp.isfinite(out)))
    print("KERNEL_OK")
</pallas_src>

<mosaic_0001>
module attributes {stable_mosaic.version = 11 : i64} {
  func.func @_decoder_kernel(%arg0: i32, %arg1: memref<1x8x32xf32, #tpu.memory_space<vmem>>, %arg2: memref<1x8x32xf32, #tpu.memory_space<vmem>>, %arg3: memref<1x1x8xf32, #tpu.memory_space<vmem>>, %arg4: memref<1x8x8xf32, #tpu.memory_space<vmem>>, %arg5: memref<2x32x96xf32, #tpu.memory_space<vmem>>, %arg6: memref<2x1x96xf32, #tpu.memory_space<vmem>>, %arg7: memref<2x32x32xf32, #tpu.memory_space<vmem>>, %arg8: memref<2x1x32xf32, #tpu.memory_space<vmem>>, %arg9: memref<2x32x32xf32, #tpu.memory_space<vmem>>, %arg10: memref<2x1x32xf32, #tpu.memory_space<vmem>>, %arg11: memref<2x32x64xf32, #tpu.memory_space<vmem>>, %arg12: memref<2x1x64xf32, #tpu.memory_space<vmem>>, %arg13: memref<2x32x32xf32, #tpu.memory_space<vmem>>, %arg14: memref<2x1x32xf32, #tpu.memory_space<vmem>>, %arg15: memref<2x32x64xf32, #tpu.memory_space<vmem>>, %arg16: memref<2x1x64xf32, #tpu.memory_space<vmem>>, %arg17: memref<2x64x32xf32, #tpu.memory_space<vmem>>, %arg18: memref<2x1x32xf32, #tpu.memory_space<vmem>>, %arg19: memref<2x3x32xf32, #tpu.memory_space<vmem>>, %arg20: memref<2x3x32xf32, #tpu.memory_space<vmem>>, %arg21: memref<1x32xf32, #tpu.memory_space<vmem>>, %arg22: memref<1x32xf32, #tpu.memory_space<vmem>>, %arg23: memref<1x8x32xf32, #tpu.memory_space<vmem>>) attributes {dimension_semantics = [#tpu.dimension_semantics<parallel>], iteration_bounds = array<i64: 2>, scalar_prefetch = 0 : i64, scratch_operands = 0 : i64, tpu.core_type = #tpu.core_type<tc>, window_params = [{transform_indices = @transform_0, window_bounds = array<i64: 1, 8, 32>}, {transform_indices = @transform_1, window_bounds = array<i64: 1, 8, 32>}, {transform_indices = @transform_2, window_bounds = array<i64: 1, 1, 8>}, {transform_indices = @transform_3, window_bounds = array<i64: 1, 8, 8>}, {pipeline_mode = #tpu.pipeline_mode<synchronous>, transform_indices = @transform_4, window_bounds = array<i64: 2, 32, 96>}, {pipeline_mode = #tpu.pipeline_mode<synchronous>, transform_indices = @transform_5, window_bounds = array<i64: 2, 1, 96>}, {pipeline_mode = #tpu.pipeline_mode<synchronous>, transform_indices = @transform_6, window_bounds = array<i64: 2, 32, 32>}, {pipeline_mode = #tpu.pipeline_mode<synchronous>, transform_indices = @transform_7, window_bounds = array<i64: 2, 1, 32>}, {pipeline_mode = #tpu.pipeline_mode<synchronous>, transform_indices = @transform_8, window_bounds = array<i64: 2, 32, 32>}, {pipeline_mode = #tpu.pipeline_mode<synchronous>, transform_indices = @transform_9, window_bounds = array<i64: 2, 1, 32>}, {pipeline_mode = #tpu.pipeline_mode<synchronous>, transform_indices = @transform_10, window_bounds = array<i64: 2, 32, 64>}, {pipeline_mode = #tpu.pipeline_mode<synchronous>, transform_indices = @transform_11, window_bounds = array<i64: 2, 1, 64>}, {pipeline_mode = #tpu.pipeline_mode<synchronous>, transform_indices = @transform_12, window_bounds = array<i64: 2, 32, 32>}, {pipeline_mode = #tpu.pipeline_mode<synchronous>, transform_indices = @transform_13, window_bounds = array<i64: 2, 1, 32>}, {pipeline_mode = #tpu.pipeline_mode<synchronous>, transform_indices = @transform_14, window_bounds = array<i64: 2, 32, 64>}, {pipeline_mode = #tpu.pipeline_mode<synchronous>, transform_indices = @transform_15, window_bounds = array<i64: 2, 1, 64>}, {pipeline_mode = #tpu.pipeline_mode<synchronous>, transform_indices = @transform_16, window_bounds = array<i64: 2, 64, 32>}, {pipeline_mode = #tpu.pipeline_mode<synchronous>, transform_indices = @transform_17, window_bounds = array<i64: 2, 1, 32>}, {pipeline_mode = #tpu.pipeline_mode<synchronous>, transform_indices = @transform_18, window_bounds = array<i64: 2, 3, 32>}, {pipeline_mode = #tpu.pipeline_mode<synchronous>, transform_indices = @transform_19, window_bounds = array<i64: 2, 3, 32>}, {pipeline_mode = #tpu.pipeline_mode<synchronous>, transform_indices = @transform_20, window_bounds = array<i64: 1, 32>}, {pipeline_mode = #tpu.pipeline_mode<synchronous>, transform_indices = @transform_21, window_bounds = array<i64: 1, 32>}, {transform_indices = @transform_22, window_bounds = array<i64: 1, 8, 32>}]} {
    %c0 = arith.constant 0 : index
    %c0_0 = arith.constant 0 : index
    %c0_1 = arith.constant 0 : index
    %0 = vector.load %arg1[%c0, %c0_0, %c0_1] : memref<1x8x32xf32, #tpu.memory_space<vmem>>, vector<1x8x32xf32>
    %1 = vector.shape_cast %0 : vector<1x8x32xf32> to vector<8x32xf32>
    %c0_2 = arith.constant 0 : index
    %c0_3 = arith.constant 0 : index
    %c0_4 = arith.constant 0 : index
    %2 = vector.load %arg2[%c0_2, %c0_3, %c0_4] : memref<1x8x32xf32, #tpu.memory_space<vmem>>, vector<1x8x32xf32>
    %3 = vector.shape_cast %2 : vector<1x8x32xf32> to vector<8x32xf32>
    %c0_5 = arith.constant 0 : index
    %c0_6 = arith.constant 0 : index
    %c0_7 = arith.constant 0 : index
    %4 = vector.load %arg3[%c0_5, %c0_6, %c0_7] : memref<1x1x8xf32, #tpu.memory_space<vmem>>, vector<1x1x8xf32>
    %5 = vector.shape_cast %4 : vector<1x1x8xf32> to vector<1x8xf32>
    %c0_8 = arith.constant 0 : index
    %c0_9 = arith.constant 0 : index
    %c0_10 = arith.constant 0 : index
    %6 = vector.load %arg4[%c0_8, %c0_9, %c0_10] : memref<1x8x8xf32, #tpu.memory_space<vmem>>, vector<1x8x8xf32>
    %7 = vector.shape_cast %6 : vector<1x8x8xf32> to vector<8x8xf32>
    %c0_11 = arith.constant 0 : index
    %c0_12 = arith.constant 0 : index
    %c0_13 = arith.constant 0 : index
    %8 = vector.load %arg19[%c0_11, %c0_12, %c0_13] : memref<2x3x32xf32, #tpu.memory_space<vmem>>, vector<1x3x32xf32>
    %9 = vector.shape_cast %8 : vector<1x3x32xf32> to vector<3x32xf32>
    %c0_14 = arith.constant 0 : index
    %c0_15 = arith.constant 0 : index
    %c0_16 = arith.constant 0 : index
    %10 = vector.load %arg20[%c0_14, %c0_15, %c0_16] : memref<2x3x32xf32, #tpu.memory_space<vmem>>, vector<1x3x32xf32>
    %11 = vector.shape_cast %10 : vector<1x3x32xf32> to vector<3x32xf32>
    %12 = vector.extract_strided_slice %9 {offsets = [0, 0], sizes = [1, 32], strides = [1, 1]} : vector<3x32xf32> to vector<1x32xf32>
    %13 = vector.extract_strided_slice %11 {offsets = [0, 0], sizes = [1, 32], strides = [1, 1]} : vector<3x32xf32> to vector<1x32xf32>
    %cst = arith.constant dense<0.000000e+00> : vector<8xf32>
    %14 = vector.multi_reduction <add>, %1, %cst [1] : vector<8x32xf32> to vector<8xf32>
    %15 = vector.shape_cast %14 : vector<8xf32> to vector<8x1xf32>
    %cst_17 = arith.constant 3.200000e+01 : f32
    %16 = vector.broadcast %cst_17 : f32 to vector<8x1xf32>
    %17 = arith.divf %15, %16 : vector<8x1xf32>
    %18 = vector.broadcast %17 : vector<8x1xf32> to vector<8x32xf32>
    %19 = arith.subf %1, %18 : vector<8x32xf32>
    %20 = arith.mulf %19, %19 : vector<8x32xf32>
    %cst_18 = arith.constant dense<0.000000e+00> : vector<8xf32>
    %21 = vector.multi_reduction <add>, %20, %cst_18 [1] : vector<8x32xf32> to vector<8xf32>
    %22 = vector.shape_cast %21 : vector<8xf32> to vector<8x1xf32>
    %cst_19 = arith.constant 3.100000e+01 : f32
    %23 = vector.broadcast %cst_19 : f32 to vector<8x1xf32>
    %24 = arith.divf %22, %23 : vector<8x1xf32>
    %25 = vector.broadcast %12 : vector<1x32xf32> to vector<8x32xf32>
    %26 = arith.mulf %25, %19 : vector<8x32xf32>
    %27 = math.sqrt %24 : vector<8x1xf32>
    %cst_20 = arith.constant 9.99999997E-7 : f32
    %28 = vector.broadcast %cst_20 : f32 to vector<8x1xf32>
    %29 = arith.addf %27, %28 : vector<8x1xf32>
    %30 = vector.broadcast %29 : vector<8x1xf32> to vector<8x32xf32>
    %31 = arith.divf %26, %30 : vector<8x32xf32>
    %32 = vector.broadcast %13 : vector<1x32xf32> to vector<8x32xf32>
    %33 = arith.addf %31, %32 : vector<8x32xf32>
    %c0_21 = arith.constant 0 : index
    %c0_22 = arith.constant 0 : index
    %c0_23 = arith.constant 0 : index
    %34 = vector.load %arg5[%c0_21, %c0_22, %c0_23] : memref<2x32x96xf32, #tpu.memory_space<vmem>>, vector<1x32x96xf32>
    %35 = vector.shape_cast %34 : vector<1x32x96xf32> to vector<32x96xf32>
    %cst_24 = arith.constant dense<0.000000e+00> : vector<8x96xf32>
    %36 = tpu.matmul %33, %35, %cst_24 {dimension_numbers = #tpu.dot_dimension_numbers<[1], [0], [0], [1], [0, 0, 1, 1], [], []>} : vector<8x32xf32>, vector<32x96xf32>, vector<8x96xf32> -> vector<8x96xf32>
    %c0_25 = arith.constant 0 : index
    %c0_26 = arith.constant 0 : index
    %c0_27 = arith.constant 0 : index
    %37 = vector.load %arg6[%c0_25, %c0_26, %c0_27] : memref<2x1x96xf32, #tpu.memory_space<vmem>>, vector<1x1x96xf32>
    %38 = vector.shape_cast %37 : vector<1x1x96xf32> to vector<1x96xf32>
    %39 = vector.broadcast %38 : vector<1x96xf32> to vector<8x96xf32>
    %40 = arith.addf %36, %39 : vector<8x96xf32>
    %41 = vector.extract_strided_slice %40 {offsets = [0, 0], sizes = [8, 32], strides = [1, 1]} : vector<8x96xf32> to vector<8x32xf32>
    %42 = vector.extract_strided_slice %40 {offsets = [0, 32], sizes = [8, 32], strides = [1, 1]} : vector<8x96xf32> to vector<8x32xf32>
    %43 = vector.extract_strided_slice %40 {offsets = [0, 64], sizes = [8, 32], strides = [1, 1]} : vector<8x96xf32> to vector<8x32xf32>
    %44 = vector.extract_strided_slice %41 {offsets = [0, 0], sizes = [8, 8], strides = [1, 1]} : vector<8x32xf32> to vector<8x8xf32>
    %45 = vector.extract_strided_slice %42 {offsets = [0, 0], sizes = [8, 8], strides = [1, 1]} : vector<8x32xf32> to vector<8x8xf32>
    %46 = vector.extract_strided_slice %43 {offsets = [0, 0], sizes = [8, 8], strides = [1, 1]} : vector<8x32xf32> to vector<8x8xf32>
    %cst_28 = arith.constant dense<0.000000e+00> : vector<8x8xf32>
    %47 = tpu.matmul %44, %45, %cst_28 {dimension_numbers = #tpu.dot_dimension_numbers<[1], [1], [0], [0], [0, 0, 1, 0], [], []>} : vector<8x8xf32>, vector<8x8xf32>, vector<8x8xf32> -> vector<8x8xf32>
    %cst_29 = arith.constant 0.353553385 : f32
    %48 = vector.broadcast %cst_29 : f32 to vector<8x8xf32>
    %49 = arith.mulf %47, %48 : vector<8x8xf32>
    %cst_30 = arith.constant 0.000000e+00 : f32
    %50 = vector.broadcast %cst_30 : f32 to vector<8x8xf32>
    %51 = arith.cmpf oeq, %7, %50 : vector<8x8xf32>
    %cst_31 = arith.constant -1.000000e+09 : f32
    %52 = vector.broadcast %cst_31 : f32 to vector<8x8xf32>
    %53 = arith.select %51, %52, %49 : vector<8x8xi1>, vector<8x8xf32>
    %cst_32 = arith.constant dense<0xFF800000> : vector<8xf32>
    %54 = vector.multi_reduction <maximumf>, %53, %cst_32 [1] : vector<8x8xf32> to vector<8xf32>
    %55 = vector.shape_cast %54 : vector<8xf32> to vector<8x1xf32>
    %56 = vector.broadcast %55 : vector<8x1xf32> to vector<8x8xf32>
    %57 = arith.subf %53, %56 : vector<8x8xf32>
    %58 = math.exp %57 : vector<8x8xf32>
    %cst_33 = arith.constant dense<0.000000e+00> : vector<8xf32>
    %59 = vector.multi_reduction <add>, %58, %cst_33 [1] : vector<8x8xf32> to vector<8xf32>
    %60 = vector.shape_cast %59 : vector<8xf32> to vector<8x1xf32>
    %61 = tpu.reciprocal %60 {approx = true} : vector<8x1xf32> -> vector<8x1xf32>
    %62 = vector.broadcast %61 : vector<8x1xf32> to vector<8x8xf32>
    %63 = arith.mulf %58, %62 : vector<8x8xf32>
    %cst_34 = arith.constant dense<0.000000e+00> : vector<8x8xf32>
    %64 = tpu.matmul %63, %46, %cst_34 {dimension_numbers = #tpu.dot_dimension_numbers<[1], [0], [0], [1], [0, 0, 1, 1], [], []>} : vector<8x8xf32>, vector<8x8xf32>, vector<8x8xf32> -> vector<8x8xf32>
    %65 = vector.extract_strided_slice %41 {offsets = [0, 8], sizes = [8, 8], strides = [1, 1]} : vector<8x32xf32> to vector<8x8xf32>
    %66 = vector.extract_strided_slice %42 {offsets = [0, 8], sizes = [8, 8], strides = [1, 1]} : vector<8x32xf32> to vector<8x8xf32>
    %67 = vector.extract_strided_slice %43 {offsets = [0, 8], sizes = [8, 8], strides = [1, 1]} : vector<8x32xf32> to vector<8x8xf32>
    %cst_35 = arith.constant dense<0.000000e+00> : vector<8x8xf32>
    %68 = tpu.matmul %65, %66, %cst_35 {dimension_numbers = #tpu.dot_dimension_numbers<[1], [1], [0], [0], [0, 0, 1, 0], [], []>} : vector<8x8xf32>, vector<8x8xf32>, vector<8x8xf32> -> vector<8x8xf32>
    %cst_36 = arith.constant 0.353553385 : f32
    %69 = vector.broadcast %cst_36 : f32 to vector<8x8xf32>
    %70 = arith.mulf %68, %69 : vector<8x8xf32>
    %cst_37 = arith.constant 0.000000e+00 : f32
    %71 = vector.broadcast %cst_37 : f32 to vector<8x8xf32>
    %72 = arith.cmpf oeq, %7, %71 : vector<8x8xf32>
    %cst_38 = arith.constant -1.000000e+09 : f32
    %73 = vector.broadcast %cst_38 : f32 to vector<8x8xf32>
    %74 = arith.select %72, %73, %70 : vector<8x8xi1>, vector<8x8xf32>
    %cst_39 = arith.constant dense<0xFF800000> : vector<8xf32>
    %75 = vector.multi_reduction <maximumf>, %74, %cst_39 [1] : vector<8x8xf32> to vector<8xf32>
    %76 = vector.shape_cast %75 : vector<8xf32> to vector<8x1xf32>
    %77 = vector.broadcast %76 : vector<8x1xf32> to vector<8x8xf32>
    %78 = arith.subf %74, %77 : vector<8x8xf32>
    %79 = math.exp %78 : vector<8x8xf32>
    %cst_40 = arith.constant dense<0.000000e+00> : vector<8xf32>
    %80 = vector.multi_reduction <add>, %79, %cst_40 [1] : vector<8x8xf32> to vector<8xf32>
    %81 = vector.shape_cast %80 : vector<8xf32> to vector<8x1xf32>
    %82 = tpu.reciprocal %81 {approx = true} : vector<8x1xf32> -> vector<8x1xf32>
    %83 = vector.broadcast %82 : vector<8x1xf32> to vector<8x8xf32>
    %84 = arith.mulf %79, %83 : vector<8x8xf32>
    %cst_41 = arith.constant dense<0.000000e+00> : vector<8x8xf32>
    %85 = tpu.matmul %84, %67, %cst_41 {dimension_numbers = #tpu.dot_dimension_numbers<[1], [0], [0], [1], [0, 0, 1, 1], [], []>} : vector<8x8xf32>, vector<8x8xf32>, vector<8x8xf32> -> vector<8x8xf32>
    %86 = vector.extract_strided_slice %41 {offsets = [0, 16], sizes = [8, 8], strides = [1, 1]} : vector<8x32xf32> to vector<8x8xf32>
    %87 = vector.extract_strided_slice %42 {offsets = [0, 16], sizes = [8, 8], strides = [1, 1]} : vector<8x32xf32> to vector<8x8xf32>
    %88 = vector.extract_strided_slice %43 {offsets = [0, 16], sizes = [8, 8], strides = [1, 1]} : vector<8x32xf32> to vector<8x8xf32>
    %cst_42 = arith.constant dense<0.000000e+00> : vector<8x8xf32>
    %89 = tpu.matmul %86, %87, %cst_42 {dimension_numbers = #tpu.dot_dimension_numbers<[1], [1], [0], [0], [0, 0, 1, 0], [], []>} : vector<8x8xf32>, vector<8x8xf32>, vector<8x8xf32> -> vector<8x8xf32>
    %cst_43 = arith.constant 0.353553385 : f32
    %90 = vector.broadcast %cst_43 : f32 to vector<8x8xf32>
    %91 = arith.mulf %89, %90 : vector<8x8xf32>
    %cst_44 = arith.constant 0.000000e+00 : f32
    %92 = vector.broadcast %cst_44 : f32 to vector<8x8xf32>
    %93 = arith.cmpf oeq, %7, %92 : vector<8x8xf32>
    %cst_45 = arith.constant -1.000000e+09 : f32
    %94 = vector.broadcast %cst_45 : f32 to vector<8x8xf32>
    %95 = arith.select %93, %94, %91 : vector<8x8xi1>, vector<8x8xf32>
    %cst_46 = arith.constant dense<0xFF800000> : vector<8xf32>
    %96 = vector.multi_reduction <maximumf>, %95, %cst_46 [1] : vector<8x8xf32> to vector<8xf32>
    %97 = vector.shape_cast %96 : vector<8xf32> to vector<8x1xf32>
    %98 = vector.broadcast %97 : vector<8x1xf32> to vector<8x8xf32>
    %99 = arith.subf %95, %98 : vector<8x8xf32>
    %100 = math.exp %99 : vector<8x8xf32>
    %cst_47 = arith.constant dense<0.000000e+00> : vector<8xf32>
    %101 = vector.multi_reduction <add>, %100, %cst_47 [1] : vector<8x8xf32> to vector<8xf32>
    %102 = vector.shape_cast %101 : vector<8xf32> to vector<8x1xf32>
    %103 = tpu.reciprocal %102 {approx = true} : vector<8x1xf32> -> vector<8x1xf32>
    %104 = vector.broadcast %103 : vector<8x1xf32> to vector<8x8xf32>
    %105 = arith.mulf %100, %104 : vector<8x8xf32>
    %cst_48 = arith.constant dense<0.000000e+00> : vector<8x8xf32>
    %106 = tpu.matmul %105, %88, %cst_48 {dimension_numbers = #tpu.dot_dimension_numbers<[1], [0], [0], [1], [0, 0, 1, 1], [], []>} : vector<8x8xf32>, vector<8x8xf32>, vector<8x8xf32> -> vector<8x8xf32>
    %107 = vector.extract_strided_slice %41 {offsets = [0, 24], sizes = [8, 8], strides = [1, 1]} : vector<8x32xf32> to vector<8x8xf32>
    %108 = vector.extract_strided_slice %42 {offsets = [0, 24], sizes = [8, 8], strides = [1, 1]} : vector<8x32xf32> to vector<8x8xf32>
    %109 = vector.extract_strided_slice %43 {offsets = [0, 24], sizes = [8, 8], strides = [1, 1]} : vector<8x32xf32> to vector<8x8xf32>
    %cst_49 = arith.constant dense<0.000000e+00> : vector<8x8xf32>
    %110 = tpu.matmul %107, %108, %cst_49 {dimension_numbers = #tpu.dot_dimension_numbers<[1], [1], [0], [0], [0, 0, 1, 0], [], []>} : vector<8x8xf32>, vector<8x8xf32>, vector<8x8xf32> -> vector<8x8xf32>
    %cst_50 = arith.constant 0.353553385 : f32
    %111 = vector.broadcast %cst_50 : f32 to vector<8x8xf32>
    %112 = arith.mulf %110, %111 : vector<8x8xf32>
    %cst_51 = arith.constant 0.000000e+00 : f32
    %113 = vector.broadcast %cst_51 : f32 to vector<8x8xf32>
    %114 = arith.cmpf oeq, %7, %113 : vector<8x8xf32>
    %cst_52 = arith.constant -1.000000e+09 : f32
    %115 = vector.broadcast %cst_52 : f32 to vector<8x8xf32>
    %116 = arith.select %114, %115, %112 : vector<8x8xi1>, vector<8x8xf32>
    %cst_53 = arith.constant dense<0xFF800000> : vector<8xf32>
    %117 = vector.multi_reduction <maximumf>, %116, %cst_53 [1] : vector<8x8xf32> to vector<8xf32>
    %118 = vector.shape_cast %117 : vector<8xf32> to vector<8x1xf32>
    %119 = vector.broadcast %118 : vector<8x1xf32> to vector<8x8xf32>
    %120 = arith.subf %116, %119 : vector<8x8xf32>
    %121 = math.exp %120 : vector<8x8xf32>
    %cst_54 = arith.constant dense<0.000000e+00> : vector<8xf32>
    %122 = vector.multi_reduction <add>, %121, %cst_54 [1] : vector<8x8xf32> to vector<8xf32>
    %123 = vector.shape_cast %122 : vector<8xf32> to vector<8x1xf32>
    %124 = tpu.reciprocal %123 {approx = true} : vector<8x1xf32> -> vector<8x1xf32>
    %125 = vector.broadcast %124 : vector<8x1xf32> to vector<8x8xf32>
    %126 = arith.mulf %121, %125 : vector<8x8xf32>
    %cst_55 = arith.constant dense<0.000000e+00> : vector<8x8xf32>
    %127 = tpu.matmul %126, %109, %cst_55 {dimension_numbers = #tpu.dot_dimension_numbers<[1], [0], [0], [1], [0, 0, 1, 1], [], []>} : vector<8x8xf32>, vector<8x8xf32>, vector<8x8xf32> -> vector<8x8xf32>
    %128 = tpu.concatenate %64, %85, %106, %127 in 1 : vector<8x8xf32>, vector<8x8xf32>, vector<8x8xf32>, vector<8x8xf32> -> vector<8x32xf32>
    %c0_56 = arith.constant 0 : index
    %c0_57 = arith.constant 0 : index
    %c0_58 = arith.constant 0 : index
    %129 = vector.load %arg7[%c0_56, %c0_57, %c0_58] : memref<2x32x32xf32, #tpu.memory_space<vmem>>, vector<1x32x32xf32>
    %130 = vector.shape_cast %129 : vector<1x32x32xf32> to vector<32x32xf32>
    %cst_59 = arith.constant dense<0.000000e+00> : vector<8x32xf32>
    %131 = tpu.matmul %128, %130, %cst_59 {dimension_numbers = #tpu.dot_dimension_numbers<[1], [0], [0], [1], [0, 0, 1, 1], [], []>} : vector<8x32xf32>, vector<32x32xf32>, vector<8x32xf32> -> vector<8x32xf32>
    %132 = arith.addf %1, %131 : vector<8x32xf32>
    %c0_60 = arith.constant 0 : index
    %c0_61 = arith.constant 0 : index
    %c0_62 = arith.constant 0 : index
    %133 = vector.load %arg8[%c0_60, %c0_61, %c0_62] : memref<2x1x32xf32, #tpu.memory_space<vmem>>, vector<1x1x32xf32>
    %134 = vector.shape_cast %133 : vector<1x1x32xf32> to vector<1x32xf32>
    %135 = vector.broadcast %134 : vector<1x32xf32> to vector<8x32xf32>
    %136 = arith.addf %132, %135 : vector<8x32xf32>
    %137 = vector.extract_strided_slice %9 {offsets = [1, 0], sizes = [1, 32], strides = [1, 1]} : vector<3x32xf32> to vector<1x32xf32>
    %138 = vector.extract_strided_slice %11 {offsets = [1, 0], sizes = [1, 32], strides = [1, 1]} : vector<3x32xf32> to vector<1x32xf32>
    %cst_63 = arith.constant dense<0.000000e+00> : vector<8xf32>
    %139 = vector.multi_reduction <add>, %136, %cst_63 [1] : vector<8x32xf32> to vector<8xf32>
    %140 = vector.shape_cast %139 : vector<8xf32> to vector<8x1xf32>
    %cst_64 = arith.constant 3.200000e+01 : f32
    %141 = vector.broadcast %cst_64 : f32 to vector<8x1xf32>
    %142 = arith.divf %140, %141 : vector<8x1xf32>
    %143 = vector.broadcast %142 : vector<8x1xf32> to vector<8x32xf32>
    %144 = arith.subf %136, %143 : vector<8x32xf32>
    %145 = arith.mulf %144, %144 : vector<8x32xf32>
    %cst_65 = arith.constant dense<0.000000e+00> : vector<8xf32>
    %146 = vector.multi_reduction <add>, %145, %cst_65 [1] : vector<8x32xf32> to vector<8xf32>
    %147 = vector.shape_cast %146 : vector<8xf32> to vector<8x1xf32>
    %cst_66 = arith.constant 3.100000e+01 : f32
    %148 = vector.broadcast %cst_66 : f32 to vector<8x1xf32>
    %149 = arith.divf %147, %148 : vector<8x1xf32>
    %150 = vector.broadcast %137 : vector<1x32xf32> to vector<8x32xf32>
    %151 = arith.mulf %150, %144 : vector<8x32xf32>
    %152 = math.sqrt %149 : vector<8x1xf32>
    %cst_67 = arith.constant 9.99999997E-7 : f32
    %153 = vector.broadcast %cst_67 : f32 to vector<8x1xf32>
    %154 = arith.addf %152, %153 : vector<8x1xf32>
    %155 = vector.broadcast %154 : vector<8x1xf32> to vector<8x32xf32>
    %156 = arith.divf %151, %155 : vector<8x32xf32>
    %157 = vector.broadcast %138 : vector<1x32xf32> to vector<8x32xf32>
    %158 = arith.addf %156, %157 : vector<8x32xf32>
    %c0_68 = arith.constant 0 : index
    %c0_69 = arith.constant 0 : index
    %c0_70 = arith.constant 0 : index
    %159 = vector.load %arg9[%c0_68, %c0_69, %c0_70] : memref<2x32x32xf32, #tpu.memory_space<vmem>>, vector<1x32x32xf32>
    %160 = vector.shape_cast %159 : vector<1x32x32xf32> to vector<32x32xf32>
    %cst_71 = arith.constant dense<0.000000e+00> : vector<8x32xf32>
    %161 = tpu.matmul %158, %160, %cst_71 {dimension_numbers = #tpu.dot_dimension_numbers<[1], [0], [0], [1], [0, 0, 1, 1], [], []>} : vector<8x32xf32>, vector<32x32xf32>, vector<8x32xf32> -> vector<8x32xf32>
    %c0_72 = arith.constant 0 : index
    %c0_73 = arith.constant 0 : index
    %c0_74 = arith.constant 0 : index
    %162 = vector.load %arg10[%c0_72, %c0_73, %c0_74] : memref<2x1x32xf32, #tpu.memory_space<vmem>>, vector<1x1x32xf32>
    %163 = vector.shape_cast %162 : vector<1x1x32xf32> to vector<1x32xf32>
    %164 = vector.broadcast %163 : vector<1x32xf32> to vector<8x32xf32>
    %165 = arith.addf %161, %164 : vector<8x32xf32>
    %c0_75 = arith.constant 0 : index
    %c0_76 = arith.constant 0 : index
    %c0_77 = arith.constant 0 : index
    %166 = vector.load %arg11[%c0_75, %c0_76, %c0_77] : memref<2x32x64xf32, #tpu.memory_space<vmem>>, vector<1x32x64xf32>
    %167 = vector.shape_cast %166 : vector<1x32x64xf32> to vector<32x64xf32>
    %cst_78 = arith.constant dense<0.000000e+00> : vector<8x64xf32>
    %168 = tpu.matmul %3, %167, %cst_78 {dimension_numbers = #tpu.dot_dimension_numbers<[1], [0], [0], [1], [0, 0, 1, 1], [], []>} : vector<8x32xf32>, vector<32x64xf32>, vector<8x64xf32> -> vector<8x64xf32>
    %c0_79 = arith.constant 0 : index
    %c0_80 = arith.constant 0 : index
    %c0_81 = arith.constant 0 : index
    %169 = vector.load %arg12[%c0_79, %c0_80, %c0_81] : memref<2x1x64xf32, #tpu.memory_space<vmem>>, vector<1x1x64xf32>
    %170 = vector.shape_cast %169 : vector<1x1x64xf32> to vector<1x64xf32>
    %171 = vector.broadcast %170 : vector<1x64xf32> to vector<8x64xf32>
    %172 = arith.addf %168, %171 : vector<8x64xf32>
    %173 = vector.extract_strided_slice %172 {offsets = [0, 0], sizes = [8, 32], strides = [1, 1]} : vector<8x64xf32> to vector<8x32xf32>
    %174 = vector.extract_strided_slice %172 {offsets = [0, 32], sizes = [8, 32], strides = [1, 1]} : vector<8x64xf32> to vector<8x32xf32>
    %175 = vector.extract_strided_slice %165 {offsets = [0, 0], sizes = [8, 8], strides = [1, 1]} : vector<8x32xf32> to vector<8x8xf32>
    %176 = vector.extract_strided_slice %173 {offsets = [0, 0], sizes = [8, 8], strides = [1, 1]} : vector<8x32xf32> to vector<8x8xf32>
    %177 = vector.extract_strided_slice %174 {offsets = [0, 0], sizes = [8, 8], strides = [1, 1]} : vector<8x32xf32> to vector<8x8xf32>
    %cst_82 = arith.constant dense<0.000000e+00> : vector<8x8xf32>
    %178 = tpu.matmul %175, %176, %cst_82 {dimension_numbers = #tpu.dot_dimension_numbers<[1], [1], [0], [0], [0, 0, 1, 0], [], []>} : vector<8x8xf32>, vector<8x8xf32>, vector<8x8xf32> -> vector<8x8xf32>
    %cst_83 = arith.constant 0.353553385 : f32
    %179 = vector.broadcast %cst_83 : f32 to vector<8x8xf32>
    %180 = arith.mulf %178, %179 : vector<8x8xf32>
    %cst_84 = arith.constant 0.000000e+00 : f32
    %181 = vector.broadcast %cst_84 : f32 to vector<1x8xf32>
    %182 = arith.cmpf oeq, %5, %181 : vector<1x8xf32>
    %cst_85 = arith.constant -1.000000e+09 : f32
    %183 = vector.shape_cast %182 : vector<1x8xi1> to vector<1x8xi1>
    %184 = vector.broadcast %183 : vector<1x8xi1> to vector<8x8xi1>
    %185 = vector.broadcast %cst_85 : f32 to vector<8x8xf32>
    %186 = arith.select %184, %185, %180 : vector<8x8xi1>, vector<8x8xf32>
    %cst_86 = arith.constant dense<0xFF800000> : vector<8xf32>
    %187 = vector.multi_reduction <maximumf>, %186, %cst_86 [1] : vector<8x8xf32> to vector<8xf32>
    %188 = vector.shape_cast %187 : vector<8xf32> to vector<8x1xf32>
    %189 = vector.broadcast %188 : vector<8x1xf32> to vector<8x8xf32>
    %190 = arith.subf %186, %189 : vector<8x8xf32>
    %191 = math.exp %190 : vector<8x8xf32>
    %cst_87 = arith.constant dense<0.000000e+00> : vector<8xf32>
    %192 = vector.multi_reduction <add>, %191, %cst_87 [1] : vector<8x8xf32> to vector<8xf32>
    %193 = vector.shape_cast %192 : vector<8xf32> to vector<8x1xf32>
    %194 = tpu.reciprocal %193 {approx = true} : vector<8x1xf32> -> vector<8x1xf32>
    %195 = vector.broadcast %194 : vector<8x1xf32> to vector<8x8xf32>
    %196 = arith.mulf %191, %195 : vector<8x8xf32>
    %cst_88 = arith.constant dense<0.000000e+00> : vector<8x8xf32>
    %197 = tpu.matmul %196, %177, %cst_88 {dimension_numbers = #tpu.dot_dimension_numbers<[1], [0], [0], [1], [0, 0, 1, 1], [], []>} : vector<8x8xf32>, vector<8x8xf32>, vector<8x8xf32> -> vector<8x8xf32>
    %198 = vector.extract_strided_slice %165 {offsets = [0, 8], sizes = [8, 8], strides = [1, 1]} : vector<8x32xf32> to vector<8x8xf32>
    %199 = vector.extract_strided_slice %173 {offsets = [0, 8], sizes = [8, 8], strides = [1, 1]} : vector<8x32xf32> to vector<8x8xf32>
    %200 = vector.extract_strided_slice %174 {offsets = [0, 8], sizes = [8, 8], strides = [1, 1]} : vector<8x32xf32> to vector<8x8xf32>
    %cst_89 = arith.constant dense<0.000000e+00> : vector<8x8xf32>
    %201 = tpu.matmul %198, %199, %cst_89 {dimension_numbers = #tpu.dot_dimension_numbers<[1], [1], [0], [0], [0, 0, 1, 0], [], []>} : vector<8x8xf32>, vector<8x8xf32>, vector<8x8xf32> -> vector<8x8xf32>
    %cst_90 = arith.constant 0.353553385 : f32
    %202 = vector.broadcast %cst_90 : f32 to vector<8x8xf32>
    %203 = arith.mulf %201, %202 : vector<8x8xf32>
    %cst_91 = arith.constant 0.000000e+00 : f32
    %204 = vector.broadcast %cst_91 : f32 to vector<1x8xf32>
    %205 = arith.cmpf oeq, %5, %204 : vector<1x8xf32>
    %cst_92 = arith.constant -1.000000e+09 : f32
    %206 = vector.shape_cast %205 : vector<1x8xi1> to vector<1x8xi1>
    %207 = vector.broadcast %206 : vector<1x8xi1> to vector<8x8xi1>
    %208 = vector.broadcast %cst_92 : f32 to vector<8x8xf32>
    %209 = arith.select %207, %208, %203 : vector<8x8xi1>, vector<8x8xf32>
    %cst_93 = arith.constant dense<0xFF800000> : vector<8xf32>
    %210 = vector.multi_reduction <maximumf>, %209, %cst_93 [1] : vector<8x8xf32> to vector<8xf32>
    %211 = vector.shape_cast %210 : vector<8xf32> to vector<8x1xf32>
    %212 = vector.broadcast %211 : vector<8x1xf32> to vector<8x8xf32>
    %213 = arith.subf %209, %212 : vector<8x8xf32>
    %214 = math.exp %213 : vector<8x8xf32>
    %cst_94 = arith.constant dense<0.000000e+00> : vector<8xf32>
    %215 = vector.multi_reduction <add>, %214, %cst_94 [1] : vector<8x8xf32> to vector<8xf32>
    %216 = vector.shape_cast %215 : vector<8xf32> to vector<8x1xf32>
    %217 = tpu.reciprocal %216 {approx = true} : vector<8x1xf32> -> vector<8x1xf32>
    %218 = vector.broadcast %217 : vector<8x1xf32> to vector<8x8xf32>
    %219 = arith.mulf %214, %218 : vector<8x8xf32>
    %cst_95 = arith.constant dense<0.000000e+00> : vector<8x8xf32>
    %220 = tpu.matmul %219, %200, %cst_95 {dimension_numbers = #tpu.dot_dimension_numbers<[1], [0], [0], [1], [0, 0, 1, 1], [], []>} : vector<8x8xf32>, vector<8x8xf32>, vector<8x8xf32> -> vector<8x8xf32>
    %221 = vector.extract_strided_slice %165 {offsets = [0, 16], sizes = [8, 8], strides = [1, 1]} : vector<8x32xf32> to vector<8x8xf32>
    %222 = vector.extract_strided_slice %173 {offsets = [0, 16], sizes = [8, 8], strides = [1, 1]} : vector<8x32xf32> to vector<8x8xf32>
    %223 = vector.extract_strided_slice %174 {offsets = [0, 16], sizes = [8, 8], strides = [1, 1]} : vector<8x32xf32> to vector<8x8xf32>
    %cst_96 = arith.constant dense<0.000000e+00> : vector<8x8xf32>
    %224 = tpu.matmul %221, %222, %cst_96 {dimension_numbers = #tpu.dot_dimension_numbers<[1], [1], [0], [0], [0, 0, 1, 0], [], []>} : vector<8x8xf32>, vector<8x8xf32>, vector<8x8xf32> -> vector<8x8xf32>
    %cst_97 = arith.constant 0.353553385 : f32
    %225 = vector.broadcast %cst_97 : f32 to vector<8x8xf32>
    %226 = arith.mulf %224, %225 : vector<8x8xf32>
    %cst_98 = arith.constant 0.000000e+00 : f32
    %227 = vector.broadcast %cst_98 : f32 to vector<1x8xf32>
    %228 = arith.cmpf oeq, %5, %227 : vector<1x8xf32>
    %cst_99 = arith.constant -1.000000e+09 : f32
    %229 = vector.shape_cast %228 : vector<1x8xi1> to vector<1x8xi1>
    %230 = vector.broadcast %229 : vector<1x8xi1> to vector<8x8xi1>
    %231 = vector.broadcast %cst_99 : f32 to vector<8x8xf32>
    %232 = arith.select %230, %231, %226 : vector<8x8xi1>, vector<8x8xf32>
    %cst_100 = arith.constant dense<0xFF800000> : vector<8xf32>
    %233 = vector.multi_reduction <maximumf>, %232, %cst_100 [1] : vector<8x8xf32> to vector<8xf32>
    %234 = vector.shape_cast %233 : vector<8xf32> to vector<8x1xf32>
    %235 = vector.broadcast %234 : vector<8x1xf32> to vector<8x8xf32>
    %236 = arith.subf %232, %235 : vector<8x8xf32>
    %237 = math.exp %236 : vector<8x8xf32>
    %cst_101 = arith.constant dense<0.000000e+00> : vector<8xf32>
    %238 = vector.multi_reduction <add>, %237, %cst_101 [1] : vector<8x8xf32> to vector<8xf32>
    %239 = vector.shape_cast %238 : vector<8xf32> to vector<8x1xf32>
    %240 = tpu.reciprocal %239 {approx = true} : vector<8x1xf32> -> vector<8x1xf32>
    %241 = vector.broadcast %240 : vector<8x1xf32> to vector<8x8xf32>
    %242 = arith.mulf %237, %241 : vector<8x8xf32>
    %cst_102 = arith.constant dense<0.000000e+00> : vector<8x8xf32>
    %243 = tpu.matmul %242, %223, %cst_102 {dimension_numbers = #tpu.dot_dimension_numbers<[1], [0], [0], [1], [0, 0, 1, 1], [], []>} : vector<8x8xf32>, vector<8x8xf32>, vector<8x8xf32> -> vector<8x8xf32>
    %244 = vector.extract_strided_slice %165 {offsets = [0, 24], sizes = [8, 8], strides = [1, 1]} : vector<8x32xf32> to vector<8x8xf32>
    %245 = vector.extract_strided_slice %173 {offsets = [0, 24], sizes = [8, 8], strides = [1, 1]} : vector<8x32xf32> to vector<8x8xf32>
    %246 = vector.extract_strided_slice %174 {offsets = [0, 24], sizes = [8, 8], strides = [1, 1]} : vector<8x32xf32> to vector<8x8xf32>
    %cst_103 = arith.constant dense<0.000000e+00> : vector<8x8xf32>
    %247 = tpu.matmul %244, %245, %cst_103 {dimension_numbers = #tpu.dot_dimension_numbers<[1], [1], [0], [0], [0, 0, 1, 0], [], []>} : vector<8x8xf32>, vector<8x8xf32>, vector<8x8xf32> -> vector<8x8xf32>
    %cst_104 = arith.constant 0.353553385 : f32
    %248 = vector.broadcast %cst_104 : f32 to vector<8x8xf32>
    %249 = arith.mulf %247, %248 : vector<8x8xf32>
    %cst_105 = arith.constant 0.000000e+00 : f32
    %250 = vector.broadcast %cst_105 : f32 to vector<1x8xf32>
    %251 = arith.cmpf oeq, %5, %250 : vector<1x8xf32>
    %cst_106 = arith.constant -1.000000e+09 : f32
    %252 = vector.shape_cast %251 : vector<1x8xi1> to vector<1x8xi1>
    %253 = vector.broadcast %252 : vector<1x8xi1> to vector<8x8xi1>
    %254 = vector.broadcast %cst_106 : f32 to vector<8x8xf32>
    %255 = arith.select %253, %254, %249 : vector<8x8xi1>, vector<8x8xf32>
    %cst_107 = arith.constant dense<0xFF800000> : vector<8xf32>
    %256 = vector.multi_reduction <maximumf>, %255, %cst_107 [1] : vector<8x8xf32> to vector<8xf32>
    %257 = vector.shape_cast %256 : vector<8xf32> to vector<8x1xf32>
    %258 = vector.broadcast %257 : vector<8x1xf32> to vector<8x8xf32>
    %259 = arith.subf %255, %258 : vector<8x8xf32>
    %260 = math.exp %259 : vector<8x8xf32>
    %cst_108 = arith.constant dense<0.000000e+00> : vector<8xf32>
    %261 = vector.multi_reduction <add>, %260, %cst_108 [1] : vector<8x8xf32> to vector<8xf32>
    %262 = vector.shape_cast %261 : vector<8xf32> to vector<8x1xf32>
    %263 = tpu.reciprocal %262 {approx = true} : vector<8x1xf32> -> vector<8x1xf32>
    %264 = vector.broadcast %263 : vector<8x1xf32> to vector<8x8xf32>
    %265 = arith.mulf %260, %264 : vector<8x8xf32>
    %cst_109 = arith.constant dense<0.000000e+00> : vector<8x8xf32>
    %266 = tpu.matmul %265, %246, %cst_109 {dimension_numbers = #tpu.dot_dimension_numbers<[1], [0], [0], [1], [0, 0, 1, 1], [], []>} : vector<8x8xf32>, vector<8x8xf32>, vector<8x8xf32> -> vector<8x8xf32>
    %267 = tpu.concatenate %197, %220, %243, %266 in 1 : vector<8x8xf32>, vector<8x8xf32>, vector<8x8xf32>, vector<8x8xf32> -> vector<8x32xf32>
    %c0_110 = arith.constant 0 : index
    %c0_111 = arith.constant 0 : index
    %c0_112 = arith.constant 0 : index
    %268 = vector.load %arg13[%c0_110, %c0_111, %c0_112] : memref<2x32x32xf32, #tpu.memory_space<vmem>>, vector<1x32x32xf32>
    %269 = vector.shape_cast %268 : vector<1x32x32xf32> to vector<32x32xf32>
    %cst_113 = arith.constant dense<0.000000e+00> : vector<8x32xf32>
    %270 = tpu.matmul %267, %269, %cst_113 {dimension_numbers = #tpu.dot_dimension_numbers<[1], [0], [0], [1], [0, 0, 1, 1], [], []>} : vector<8x32xf32>, vector<32x32xf32>, vector<8x32xf32> -> vector<8x32xf32>
    %271 = arith.addf %136, %270 : vector<8x32xf32>
    %c0_114 = arith.constant 0 : index
    %c0_115 = arith.constant 0 : index
    %c0_116 = arith.constant 0 : index
    %272 = vector.load %arg14[%c0_114, %c0_115, %c0_116] : memref<2x1x32xf32, #tpu.memory_space<vmem>>, vector<1x1x32xf32>
    %273 = vector.shape_cast %272 : vector<1x1x32xf32> to vector<1x32xf32>
    %274 = vector.broadcast %273 : vector<1x32xf32> to vector<8x32xf32>
    %275 = arith.addf %271, %274 : vector<8x32xf32>
    %276 = vector.extract_strided_slice %9 {offsets = [2, 0], sizes = [1, 32], strides = [1, 1]} : vector<3x32xf32> to vector<1x32xf32>
    %277 = vector.extract_strided_slice %11 {offsets = [2, 0], sizes = [1, 32], strides = [1, 1]} : vector<3x32xf32> to vector<1x32xf32>
    %cst_117 = arith.constant dense<0.000000e+00> : vector<8xf32>
    %278 = vector.multi_reduction <add>, %275, %cst_117 [1] : vector<8x32xf32> to vector<8xf32>
    %279 = vector.shape_cast %278 : vector<8xf32> to vector<8x1xf32>
    %cst_118 = arith.constant 3.200000e+01 : f32
    %280 = vector.broadcast %cst_118 : f32 to vector<8x1xf32>
    %281 = arith.divf %279, %280 : vector<8x1xf32>
    %282 = vector.broadcast %281 : vector<8x1xf32> to vector<8x32xf32>
    %283 = arith.subf %275, %282 : vector<8x32xf32>
    %284 = arith.mulf %283, %283 : vector<8x32xf32>
    %cst_119 = arith.constant dense<0.000000e+00> : vector<8xf32>
    %285 = vector.multi_reduction <add>, %284, %cst_119 [1] : vector<8x32xf32> to vector<8xf32>
    %286 = vector.shape_cast %285 : vector<8xf32> to vector<8x1xf32>
    %cst_120 = arith.constant 3.100000e+01 : f32
    %287 = vector.broadcast %cst_120 : f32 to vector<8x1xf32>
    %288 = arith.divf %286, %287 : vector<8x1xf32>
    %289 = vector.broadcast %276 : vector<1x32xf32> to vector<8x32xf32>
    %290 = arith.mulf %289, %283 : vector<8x32xf32>
    %291 = math.sqrt %288 : vector<8x1xf32>
    %cst_121 = arith.constant 9.99999997E-7 : f32
    %292 = vector.broadcast %cst_121 : f32 to vector<8x1xf32>
    %293 = arith.addf %291, %292 : vector<8x1xf32>
    %294 = vector.broadcast %293 : vector<8x1xf32> to vector<8x32xf32>
    %295 = arith.divf %290, %294 : vector<8x32xf32>
    %296 = vector.broadcast %277 : vector<1x32xf32> to vector<8x32xf32>
    %297 = arith.addf %295, %296 : vector<8x32xf32>
    %c0_122 = arith.constant 0 : index
    %c0_123 = arith.constant 0 : index
    %c0_124 = arith.constant 0 : index
    %298 = vector.load %arg15[%c0_122, %c0_123, %c0_124] : memref<2x32x64xf32, #tpu.memory_space<vmem>>, vector<1x32x64xf32>
    %299 = vector.shape_cast %298 : vector<1x32x64xf32> to vector<32x64xf32>
    %cst_125 = arith.constant dense<0.000000e+00> : vector<8x64xf32>
    %300 = tpu.matmul %297, %299, %cst_125 {dimension_numbers = #tpu.dot_dimension_numbers<[1], [0], [0], [1], [0, 0, 1, 1], [], []>} : vector<8x32xf32>, vector<32x64xf32>, vector<8x64xf32> -> vector<8x64xf32>
    %c0_126 = arith.constant 0 : index
    %c0_127 = arith.constant 0 : index
    %c0_128 = arith.constant 0 : index
    %301 = vector.load %arg16[%c0_126, %c0_127, %c0_128] : memref<2x1x64xf32, #tpu.memory_space<vmem>>, vector<1x1x64xf32>
    %302 = vector.shape_cast %301 : vector<1x1x64xf32> to vector<1x64xf32>
    %303 = vector.broadcast %302 : vector<1x64xf32> to vector<8x64xf32>
    %304 = arith.addf %300, %303 : vector<8x64xf32>
    %cst_129 = arith.constant 0.000000e+00 : f32
    %305 = vector.broadcast %cst_129 : f32 to vector<8x64xf32>
    %306 = arith.maximumf %304, %305 : vector<8x64xf32>
    %c0_130 = arith.constant 0 : index
    %c0_131 = arith.constant 0 : index
    %c0_132 = arith.constant 0 : index
    %307 = vector.load %arg17[%c0_130, %c0_131, %c0_132] : memref<2x64x32xf32, #tpu.memory_space<vmem>>, vector<1x64x32xf32>
    %308 = vector.shape_cast %307 : vector<1x64x32xf32> to vector<64x32xf32>
    %cst_133 = arith.constant dense<0.000000e+00> : vector<8x32xf32>
    %309 = tpu.matmul %306, %308, %cst_133 {dimension_numbers = #tpu.dot_dimension_numbers<[1], [0], [0], [1], [0, 0, 1, 1], [], []>} : vector<8x64xf32>, vector<64x32xf32>, vector<8x32xf32> -> vector<8x32xf32>
    %310 = arith.addf %275, %309 : vector<8x32xf32>
    %c0_134 = arith.constant 0 : index
    %c0_135 = arith.constant 0 : index
    %c0_136 = arith.constant 0 : index
    %311 = vector.load %arg18[%c0_134, %c0_135, %c0_136] : memref<2x1x32xf32, #tpu.memory_space<vmem>>, vector<1x1x32xf32>
    %312 = vector.shape_cast %311 : vector<1x1x32xf32> to vector<1x32xf32>
    %313 = vector.broadcast %312 : vector<1x32xf32> to vector<8x32xf32>
    %314 = arith.addf %310, %313 : vector<8x32xf32>
    %c1 = arith.constant 1 : index
    %c0_137 = arith.constant 0 : index
    %c0_138 = arith.constant 0 : index
    %315 = vector.load %arg19[%c1, %c0_137, %c0_138] : memref<2x3x32xf32, #tpu.memory_space<vmem>>, vector<1x3x32xf32>
    %316 = vector.shape_cast %315 : vector<1x3x32xf32> to vector<3x32xf32>
    %c1_139 = arith.constant 1 : index
    %c0_140 = arith.constant 0 : index
    %c0_141 = arith.constant 0 : index
    %317 = vector.load %arg20[%c1_139, %c0_140, %c0_141] : memref<2x3x32xf32, #tpu.memory_space<vmem>>, vector<1x3x32xf32>
    %318 = vector.shape_cast %317 : vector<1x3x32xf32> to vector<3x32xf32>
    %319 = vector.extract_strided_slice %316 {offsets = [0, 0], sizes = [1, 32], strides = [1, 1]} : vector<3x32xf32> to vector<1x32xf32>
    %320 = vector.extract_strided_slice %318 {offsets = [0, 0], sizes = [1, 32], strides = [1, 1]} : vector<3x32xf32> to vector<1x32xf32>
    %cst_142 = arith.constant dense<0.000000e+00> : vector<8xf32>
    %321 = vector.multi_reduction <add>, %314, %cst_142 [1] : vector<8x32xf32> to vector<8xf32>
    %322 = vector.shape_cast %321 : vector<8xf32> to vector<8x1xf32>
    %cst_143 = arith.constant 3.200000e+01 : f32
    %323 = vector.broadcast %cst_143 : f32 to vector<8x1xf32>
    %324 = arith.divf %322, %323 : vector<8x1xf32>
    %325 = vector.broadcast %324 : vector<8x1xf32> to vector<8x32xf32>
    %326 = arith.subf %314, %325 : vector<8x32xf32>
    %327 = arith.mulf %326, %326 : vector<8x32xf32>
    %cst_144 = arith.constant dense<0.000000e+00> : vector<8xf32>
    %328 = vector.multi_reduction <add>, %327, %cst_144 [1] : vector<8x32xf32> to vector<8xf32>
    %329 = vector.shape_cast %328 : vector<8xf32> to vector<8x1xf32>
    %cst_145 = arith.constant 3.100000e+01 : f32
    %330 = vector.broadcast %cst_145 : f32 to vector<8x1xf32>
    %331 = arith.divf %329, %330 : vector<8x1xf32>
    %332 = vector.broadcast %319 : vector<1x32xf32> to vector<8x32xf32>
    %333 = arith.mulf %332, %326 : vector<8x32xf32>
    %334 = math.sqrt %331 : vector<8x1xf32>
    %cst_146 = arith.constant 9.99999997E-7 : f32
    %335 = vector.broadcast %cst_146 : f32 to vector<8x1xf32>
    %336 = arith.addf %334, %335 : vector<8x1xf32>
    %337 = vector.broadcast %336 : vector<8x1xf32> to vector<8x32xf32>
    %338 = arith.divf %333, %337 : vector<8x32xf32>
    %339 = vector.broadcast %320 : vector<1x32xf32> to vector<8x32xf32>
    %340 = arith.addf %338, %339 : vector<8x32xf32>
    %c1_147 = arith.constant 1 : index
    %c0_148 = arith.constant 0 : index
    %c0_149 = arith.constant 0 : index
    %341 = vector.load %arg5[%c1_147, %c0_148, %c0_149] : memref<2x32x96xf32, #tpu.memory_space<vmem>>, vector<1x32x96xf32>
    %342 = vector.shape_cast %341 : vector<1x32x96xf32> to vector<32x96xf32>
    %cst_150 = arith.constant dense<0.000000e+00> : vector<8x96xf32>
    %343 = tpu.matmul %340, %342, %cst_150 {dimension_numbers = #tpu.dot_dimension_numbers<[1], [0], [0], [1], [0, 0, 1, 1], [], []>} : vector<8x32xf32>, vector<32x96xf32>, vector<8x96xf32> -> vector<8x96xf32>
    %c1_151 = arith.constant 1 : index
    %c0_152 = arith.constant 0 : index
    %c0_153 = arith.constant 0 : index
    %344 = vector.load %arg6[%c1_151, %c0_152, %c0_153] : memref<2x1x96xf32, #tpu.memory_space<vmem>>, vector<1x1x96xf32>
    %345 = vector.shape_cast %344 : vector<1x1x96xf32> to vector<1x96xf32>
    %346 = vector.broadcast %345 : vector<1x96xf32> to vector<8x96xf32>
    %347 = arith.addf %343, %346 : vector<8x96xf32>
    %348 = vector.extract_strided_slice %347 {offsets = [0, 0], sizes = [8, 32], strides = [1, 1]} : vector<8x96xf32> to vector<8x32xf32>
    %349 = vector.extract_strided_slice %347 {offsets = [0, 32], sizes = [8, 32], strides = [1, 1]} : vector<8x96xf32> to vector<8x32xf32>
    %350 = vector.extract_strided_slice %347 {offsets = [0, 64], sizes = [8, 32], strides = [1, 1]} : vector<8x96xf32> to vector<8x32xf32>
    %351 = vector.extract_strided_slice %348 {offsets = [0, 0], sizes = [8, 8], strides = [1, 1]} : vector<8x32xf32> to vector<8x8xf32>
    %352 = vector.extract_strided_slice %349 {offsets = [0, 0], sizes = [8, 8], strides = [1, 1]} : vector<8x32xf32> to vector<8x8xf32>
    %353 = vector.extract_strided_slice %350 {offsets = [0, 0], sizes = [8, 8], strides = [1, 1]} : vector<8x32xf32> to vector<8x8xf32>
    %cst_154 = arith.constant dense<0.000000e+00> : vector<8x8xf32>
    %354 = tpu.matmul %351, %352, %cst_154 {dimension_numbers = #tpu.dot_dimension_numbers<[1], [1], [0], [0], [0, 0, 1, 0], [], []>} : vector<8x8xf32>, vector<8x8xf32>, vector<8x8xf32> -> vector<8x8xf32>
    %cst_155 = arith.constant 0.353553385 : f32
    %355 = vector.broadcast %cst_155 : f32 to vector<8x8xf32>
    %356 = arith.mulf %354, %355 : vector<8x8xf32>
    %cst_156 = arith.constant 0.000000e+00 : f32
    %357 = vector.broadcast %cst_156 : f32 to vector<8x8xf32>
    %358 = arith.cmpf oeq, %7, %357 : vector<8x8xf32>
    %cst_157 = arith.constant -1.000000e+09 : f32
    %359 = vector.broadcast %cst_157 : f32 to vector<8x8xf32>
    %360 = arith.select %358, %359, %356 : vector<8x8xi1>, vector<8x8xf32>
    %cst_158 = arith.constant dense<0xFF800000> : vector<8xf32>
    %361 = vector.multi_reduction <maximumf>, %360, %cst_158 [1] : vector<8x8xf32> to vector<8xf32>
    %362 = vector.shape_cast %361 : vector<8xf32> to vector<8x1xf32>
    %363 = vector.broadcast %362 : vector<8x1xf32> to vector<8x8xf32>
    %364 = arith.subf %360, %363 : vector<8x8xf32>
    %365 = math.exp %364 : vector<8x8xf32>
    %cst_159 = arith.constant dense<0.000000e+00> : vector<8xf32>
    %366 = vector.multi_reduction <add>, %365, %cst_159 [1] : vector<8x8xf32> to vector<8xf32>
    %367 = vector.shape_cast %366 : vector<8xf32> to vector<8x1xf32>
    %368 = tpu.reciprocal %367 {approx = true} : vector<8x1xf32> -> vector<8x1xf32>
    %369 = vector.broadcast %368 : vector<8x1xf32> to vector<8x8xf32>
    %370 = arith.mulf %365, %369 : vector<8x8xf32>
    %cst_160 = arith.constant dense<0.000000e+00> : vector<8x8xf32>
    %371 = tpu.matmul %370, %353, %cst_160 {dimension_numbers = #tpu.dot_dimension_numbers<[1], [0], [0], [1], [0, 0, 1, 1], [], []>} : vector<8x8xf32>, vector<8x8xf32>, vector<8x8xf32> -> vector<8x8xf32>
    %372 = vector.extract_strided_slice %348 {offsets = [0, 8], sizes = [8, 8], strides = [1, 1]} : vector<8x32xf32> to vector<8x8xf32>
    %373 = vector.extract_strided_slice %349 {offsets = [0, 8], sizes = [8, 8], strides = [1, 1]} : vector<8x32xf32> to vector<8x8xf32>
    %374 = vector.extract_strided_slice %350 {offsets = [0, 8], sizes = [8, 8], strides = [1, 1]} : vector<8x32xf32> to vector<8x8xf32>
    %cst_161 = arith.constant dense<0.000000e+00> : vector<8x8xf32>
    %375 = tpu.matmul %372, %373, %cst_161 {dimension_numbers = #tpu.dot_dimension_numbers<[1], [1], [0], [0], [0, 0, 1, 0], [], []>} : vector<8x8xf32>, vector<8x8xf32>, vector<8x8xf32> -> vector<8x8xf32>
    %cst_162 = arith.constant 0.353553385 : f32
    %376 = vector.broadcast %cst_162 : f32 to vector<8x8xf32>
    %377 = arith.mulf %375, %376 : vector<8x8xf32>
    %cst_163 = arith.constant 0.000000e+00 : f32
    %378 = vector.broadcast %cst_163 : f32 to vector<8x8xf32>
    %379 = arith.cmpf oeq, %7, %378 : vector<8x8xf32>
    %cst_164 = arith.constant -1.000000e+09 : f32
    %380 = vector.broadcast %cst_164 : f32 to vector<8x8xf32>
    %381 = arith.select %379, %380, %377 : vector<8x8xi1>, vector<8x8xf32>
    %cst_165 = arith.constant dense<0xFF800000> : vector<8xf32>
    %382 = vector.multi_reduction <maximumf>, %381, %cst_165 [1] : vector<8x8xf32> to vector<8xf32>
    %383 = vector.shape_cast %382 : vector<8xf32> to vector<8x1xf32>
    %384 = vector.broadcast %383 : vector<8x1xf32> to vector<8x8xf32>
    %385 = arith.subf %381, %384 : vector<8x8xf32>
    %386 = math.exp %385 : vector<8x8xf32>
    %cst_166 = arith.constant dense<0.000000e+00> : vector<8xf32>
    %387 = vector.multi_reduction <add>, %386, %cst_166 [1] : vector<8x8xf32> to vector<8xf32>
    %388 = vector.shape_cast %387 : vector<8xf32> to vector<8x1xf32>
    %389 = tpu.reciprocal %388 {approx = true} : vector<8x1xf32> -> vector<8x1xf32>
    %390 = vector.broadcast %389 : vector<8x1xf32> to vector<8x8xf32>
    %391 = arith.mulf %386, %390 : vector<8x8xf32>
    %cst_167 = arith.constant dense<0.000000e+00> : vector<8x8xf32>
    %392 = tpu.matmul %391, %374, %cst_167 {dimension_numbers = #tpu.dot_dimension_numbers<[1], [0], [0], [1], [0, 0, 1, 1], [], []>} : vector<8x8xf32>, vector<8x8xf32>, vector<8x8xf32> -> vector<8x8xf32>
    %393 = vector.extract_strided_slice %348 {offsets = [0, 16], sizes = [8, 8], strides = [1, 1]} : vector<8x32xf32> to vector<8x8xf32>
    %394 = vector.extract_strided_slice %349 {offsets = [0, 16], sizes = [8, 8], strides = [1, 1]} : vector<8x32xf32> to vector<8x8xf32>
    %395 = vector.extract_strided_slice %350 {offsets = [0, 16], sizes = [8, 8], strides = [1, 1]} : vector<8x32xf32> to vector<8x8xf32>
    %cst_168 = arith.constant dense<0.000000e+00> : vector<8x8xf32>
    %396 = tpu.matmul %393, %394, %cst_168 {dimension_numbers = #tpu.dot_dimension_numbers<[1], [1], [0], [0], [0, 0, 1, 0], [], []>} : vector<8x8xf32>, vector<8x8xf32>, vector<8x8xf32> -> vector<8x8xf32>
    %cst_169 = arith.constant 0.353553385 : f32
    %397 = vector.broadcast %cst_169 : f32 to vector<8x8xf32>
    %398 = arith.mulf %396, %397 : vector<8x8xf32>
    %cst_170 = arith.constant 0.000000e+00 : f32
    %399 = vector.broadcast %cst_170 : f32 to vector<8x8xf32>
    %400 = arith.cmpf oeq, %7, %399 : vector<8x8xf32>
    %cst_171 = arith.constant -1.000000e+09 : f32
    %401 = vector.broadcast %cst_171 : f32 to vector<8x8xf32>
    %402 = arith.select %400, %401, %398 : vector<8x8xi1>, vector<8x8xf32>
    %cst_172 = arith.constant dense<0xFF800000> : vector<8xf32>
    %403 = vector.multi_reduction <maximumf>, %402, %cst_172 [1] : vector<8x8xf32> to vector<8xf32>
    %404 = vector.shape_cast %403 : vector<8xf32> to vector<8x1xf32>
    %405 = vector.broadcast %404 : vector<8x1xf32> to vector<8x8xf32>
    %406 = arith.subf %402, %405 : vector<8x8xf32>
    %407 = math.exp %406 : vector<8x8xf32>
    %cst_173 = arith.constant dense<0.000000e+00> : vector<8xf32>
    %408 = vector.multi_reduction <add>, %407, %cst_173 [1] : vector<8x8xf32> to vector<8xf32>
    %409 = vector.shape_cast %408 : vector<8xf32> to vector<8x1xf32>
    %410 = tpu.reciprocal %409 {approx = true} : vector<8x1xf32> -> vector<8x1xf32>
    %411 = vector.broadcast %410 : vector<8x1xf32> to vector<8x8xf32>
    %412 = arith.mulf %407, %411 : vector<8x8xf32>
    %cst_174 = arith.constant dense<0.000000e+00> : vector<8x8xf32>
    %413 = tpu.matmul %412, %395, %cst_174 {dimension_numbers = #tpu.dot_dimension_numbers<[1], [0], [0], [1], [0, 0, 1, 1], [], []>} : vector<8x8xf32>, vector<8x8xf32>, vector<8x8xf32> -> vector<8x8xf32>
    %414 = vector.extract_strided_slice %348 {offsets = [0, 24], sizes = [8, 8], strides = [1, 1]} : vector<8x32xf32> to vector<8x8xf32>
    %415 = vector.extract_strided_slice %349 {offsets = [0, 24], sizes = [8, 8], strides = [1, 1]} : vector<8x32xf32> to vector<8x8xf32>
    %416 = vector.extract_strided_slice %350 {offsets = [0, 24], sizes = [8, 8], strides = [1, 1]} : vector<8x32xf32> to vector<8x8xf32>
    %cst_175 = arith.constant dense<0.000000e+00> : vector<8x8xf32>
    %417 = tpu.matmul %414, %415, %cst_175 {dimension_numbers = #tpu.dot_dimension_numbers<[1], [1], [0], [0], [0, 0, 1, 0], [], []>} : vector<8x8xf32>, vector<8x8xf32>, vector<8x8xf32> -> vector<8x8xf32>
    %cst_176 = arith.constant 0.353553385 : f32
    %418 = vector.broadcast %cst_176 : f32 to vector<8x8xf32>
    %419 = arith.mulf %417, %418 : vector<8x8xf32>
    %cst_177 = arith.constant 0.000000e+00 : f32
    %420 = vector.broadcast %cst_177 : f32 to vector<8x8xf32>
    %421 = arith.cmpf oeq, %7, %420 : vector<8x8xf32>
    %cst_178 = arith.constant -1.000000e+09 : f32
    %422 = vector.broadcast %cst_178 : f32 to vector<8x8xf32>
    %423 = arith.select %421, %422, %419 : vector<8x8xi1>, vector<8x8xf32>
    %cst_179 = arith.constant dense<0xFF800000> : vector<8xf32>
    %424 = vector.multi_reduction <maximumf>, %423, %cst_179 [1] : vector<8x8xf32> to vector<8xf32>
    %425 = vector.shape_cast %424 : vector<8xf32> to vector<8x1xf32>
    %426 = vector.broadcast %425 : vector<8x1xf32> to vector<8x8xf32>
    %427 = arith.subf %423, %426 : vector<8x8xf32>
    %428 = math.exp %427 : vector<8x8xf32>
    %cst_180 = arith.constant dense<0.000000e+00> : vector<8xf32>
    %429 = vector.multi_reduction <add>, %428, %cst_180 [1] : vector<8x8xf32> to vector<8xf32>
    %430 = vector.shape_cast %429 : vector<8xf32> to vector<8x1xf32>
    %431 = tpu.reciprocal %430 {approx = true} : vector<8x1xf32> -> vector<8x1xf32>
    %432 = vector.broadcast %431 : vector<8x1xf32> to vector<8x8xf32>
    %433 = arith.mulf %428, %432 : vector<8x8xf32>
    %cst_181 = arith.constant dense<0.000000e+00> : vector<8x8xf32>
    %434 = tpu.matmul %433, %416, %cst_181 {dimension_numbers = #tpu.dot_dimension_numbers<[1], [0], [0], [1], [0, 0, 1, 1], [], []>} : vector<8x8xf32>, vector<8x8xf32>, vector<8x8xf32> -> vector<8x8xf32>
    %435 = tpu.concatenate %371, %392, %413, %434 in 1 : vector<8x8xf32>, vector<8x8xf32>, vector<8x8xf32>, vector<8x8xf32> -> vector<8x32xf32>
    %c1_182 = arith.constant 1 : index
    %c0_183 = arith.constant 0 : index
    %c0_184 = arith.constant 0 : index
    %436 = vector.load %arg7[%c1_182, %c0_183, %c0_184] : memref<2x32x32xf32, #tpu.memory_space<vmem>>, vector<1x32x32xf32>
    %437 = vector.shape_cast %436 : vector<1x32x32xf32> to vector<32x32xf32>
    %cst_185 = arith.constant dense<0.000000e+00> : vector<8x32xf32>
    %438 = tpu.matmul %435, %437, %cst_185 {dimension_numbers = #tpu.dot_dimension_numbers<[1], [0], [0], [1], [0, 0, 1, 1], [], []>} : vector<8x32xf32>, vector<32x32xf32>, vector<8x32xf32> -> vector<8x32xf32>
    %439 = arith.addf %314, %438 : vector<8x32xf32>
    %c1_186 = arith.constant 1 : index
    %c0_187 = arith.constant 0 : index
    %c0_188 = arith.constant 0 : index
    %440 = vector.load %arg8[%c1_186, %c0_187, %c0_188] : memref<2x1x32xf32, #tpu.memory_space<vmem>>, vector<1x1x32xf32>
    %441 = vector.shape_cast %440 : vector<1x1x32xf32> to vector<1x32xf32>
    %442 = vector.broadcast %441 : vector<1x32xf32> to vector<8x32xf32>
    %443 = arith.addf %439, %442 : vector<8x32xf32>
    %444 = vector.extract_strided_slice %316 {offsets = [1, 0], sizes = [1, 32], strides = [1, 1]} : vector<3x32xf32> to vector<1x32xf32>
    %445 = vector.extract_strided_slice %318 {offsets = [1, 0], sizes = [1, 32], strides = [1, 1]} : vector<3x32xf32> to vector<1x32xf32>
    %cst_189 = arith.constant dense<0.000000e+00> : vector<8xf32>
    %446 = vector.multi_reduction <add>, %443, %cst_189 [1] : vector<8x32xf32> to vector<8xf32>
    %447 = vector.shape_cast %446 : vector<8xf32> to vector<8x1xf32>
    %cst_190 = arith.constant 3.200000e+01 : f32
    %448 = vector.broadcast %cst_190 : f32 to vector<8x1xf32>
    %449 = arith.divf %447, %448 : vector<8x1xf32>
    %450 = vector.broadcast %449 : vector<8x1xf32> to vector<8x32xf32>
    %451 = arith.subf %443, %450 : vector<8x32xf32>
    %452 = arith.mulf %451, %451 : vector<8x32xf32>
    %cst_191 = arith.constant dense<0.000000e+00> : vector<8xf32>
    %453 = vector.multi_reduction <add>, %452, %cst_191 [1] : vector<8x32xf32> to vector<8xf32>
    %454 = vector.shape_cast %453 : vector<8xf32> to vector<8x1xf32>
    %cst_192 = arith.constant 3.100000e+01 : f32
    %455 = vector.broadcast %cst_192 : f32 to vector<8x1xf32>
    %456 = arith.divf %454, %455 : vector<8x1xf32>
    %457 = vector.broadcast %444 : vector<1x32xf32> to vector<8x32xf32>
    %458 = arith.mulf %457, %451 : vector<8x32xf32>
    %459 = math.sqrt %456 : vector<8x1xf32>
    %cst_193 = arith.constant 9.99999997E-7 : f32
    %460 = vector.broadcast %cst_193 : f32 to vector<8x1xf32>
    %461 = arith.addf %459, %460 : vector<8x1xf32>
    %462 = vector.broadcast %461 : vector<8x1xf32> to vector<8x32xf32>
    %463 = arith.divf %458, %462 : vector<8x32xf32>
    %464 = vector.broadcast %445 : vector<1x32xf32> to vector<8x32xf32>
    %465 = arith.addf %463, %464 : vector<8x32xf32>
    %c1_194 = arith.constant 1 : index
    %c0_195 = arith.constant 0 : index
    %c0_196 = arith.constant 0 : index
    %466 = vector.load %arg9[%c1_194, %c0_195, %c0_196] : memref<2x32x32xf32, #tpu.memory_space<vmem>>, vector<1x32x32xf32>
    %467 = vector.shape_cast %466 : vector<1x32x32xf32> to vector<32x32xf32>
    %cst_197 = arith.constant dense<0.000000e+00> : vector<8x32xf32>
    %468 = tpu.matmul %465, %467, %cst_197 {dimension_numbers = #tpu.dot_dimension_numbers<[1], [0], [0], [1], [0, 0, 1, 1], [], []>} : vector<8x32xf32>, vector<32x32xf32>, vector<8x32xf32> -> vector<8x32xf32>
    %c1_198 = arith.constant 1 : index
    %c0_199 = arith.constant 0 : index
    %c0_200 = arith.constant 0 : index
    %469 = vector.load %arg10[%c1_198, %c0_199, %c0_200] : memref<2x1x32xf32, #tpu.memory_space<vmem>>, vector<1x1x32xf32>
    %470 = vector.shape_cast %469 : vector<1x1x32xf32> to vector<1x32xf32>
    %471 = vector.broadcast %470 : vector<1x32xf32> to vector<8x32xf32>
    %472 = arith.addf %468, %471 : vector<8x32xf32>
    %c1_201 = arith.constant 1 : index
    %c0_202 = arith.constant 0 : index
    %c0_203 = arith.constant 0 : index
    %473 = vector.load %arg11[%c1_201, %c0_202, %c0_203] : memref<2x32x64xf32, #tpu.memory_space<vmem>>, vector<1x32x64xf32>
    %474 = vector.shape_cast %473 : vector<1x32x64xf32> to vector<32x64xf32>
    %cst_204 = arith.constant dense<0.000000e+00> : vector<8x64xf32>
    %475 = tpu.matmul %3, %474, %cst_204 {dimension_numbers = #tpu.dot_dimension_numbers<[1], [0], [0], [1], [0, 0, 1, 1], [], []>} : vector<8x32xf32>, vector<32x64xf32>, vector<8x64xf32> -> vector<8x64xf32>
    %c1_205 = arith.constant 1 : index
    %c0_206 = arith.constant 0 : index
    %c0_207 = arith.constant 0 : index
    %476 = vector.load %arg12[%c1_205, %c0_206, %c0_207] : memref<2x1x64xf32, #tpu.memory_space<vmem>>, vector<1x1x64xf32>
    %477 = vector.shape_cast %476 : vector<1x1x64xf32> to vector<1x64xf32>
    %478 = vector.broadcast %477 : vector<1x64xf32> to vector<8x64xf32>
    %479 = arith.addf %475, %478 : vector<8x64xf32>
    %480 = vector.extract_strided_slice %479 {offsets = [0, 0], sizes = [8, 32], strides = [1, 1]} : vector<8x64xf32> to vector<8x32xf32>
    %481 = vector.extract_strided_slice %479 {offsets = [0, 32], sizes = [8, 32], strides = [1, 1]} : vector<8x64xf32> to vector<8x32xf32>
    %482 = vector.extract_strided_slice %472 {offsets = [0, 0], sizes = [8, 8], strides = [1, 1]} : vector<8x32xf32> to vector<8x8xf32>
    %483 = vector.extract_strided_slice %480 {offsets = [0, 0], sizes = [8, 8], strides = [1, 1]} : vector<8x32xf32> to vector<8x8xf32>
    %484 = vector.extract_strided_slice %481 {offsets = [0, 0], sizes = [8, 8], strides = [1, 1]} : vector<8x32xf32> to vector<8x8xf32>
    %cst_208 = arith.constant dense<0.000000e+00> : vector<8x8xf32>
    %485 = tpu.matmul %482, %483, %cst_208 {dimension_numbers = #tpu.dot_dimension_numbers<[1], [1], [0], [0], [0, 0, 1, 0], [], []>} : vector<8x8xf32>, vector<8x8xf32>, vector<8x8xf32> -> vector<8x8xf32>
    %cst_209 = arith.constant 0.353553385 : f32
    %486 = vector.broadcast %cst_209 : f32 to vector<8x8xf32>
    %487 = arith.mulf %485, %486 : vector<8x8xf32>
    %cst_210 = arith.constant 0.000000e+00 : f32
    %488 = vector.broadcast %cst_210 : f32 to vector<1x8xf32>
    %489 = arith.cmpf oeq, %5, %488 : vector<1x8xf32>
    %cst_211 = arith.constant -1.000000e+09 : f32
    %490 = vector.shape_cast %489 : vector<1x8xi1> to vector<1x8xi1>
    %491 = vector.broadcast %490 : vector<1x8xi1> to vector<8x8xi1>
    %492 = vector.broadcast %cst_211 : f32 to vector<8x8xf32>
    %493 = arith.select %491, %492, %487 : vector<8x8xi1>, vector<8x8xf32>
    %cst_212 = arith.constant dense<0xFF800000> : vector<8xf32>
    %494 = vector.multi_reduction <maximumf>, %493, %cst_212 [1] : vector<8x8xf32> to vector<8xf32>
    %495 = vector.shape_cast %494 : vector<8xf32> to vector<8x1xf32>
    %496 = vector.broadcast %495 : vector<8x1xf32> to vector<8x8xf32>
    %497 = arith.subf %493, %496 : vector<8x8xf32>
    %498 = math.exp %497 : vector<8x8xf32>
    %cst_213 = arith.constant dense<0.000000e+00> : vector<8xf32>
    %499 = vector.multi_reduction <add>, %498, %cst_213 [1] : vector<8x8xf32> to vector<8xf32>
    %500 = vector.shape_cast %499 : vector<8xf32> to vector<8x1xf32>
    %501 = tpu.reciprocal %500 {approx = true} : vector<8x1xf32> -> vector<8x1xf32>
    %502 = vector.broadcast %501 : vector<8x1xf32> to vector<8x8xf32>
    %503 = arith.mulf %498, %502 : vector<8x8xf32>
    %cst_214 = arith.constant dense<0.000000e+00> : vector<8x8xf32>
    %504 = tpu.matmul %503, %484, %cst_214 {dimension_numbers = #tpu.dot_dimension_numbers<[1], [0], [0], [1], [0, 0, 1, 1], [], []>} : vector<8x8xf32>, vector<8x8xf32>, vector<8x8xf32> -> vector<8x8xf32>
    %505 = vector.extract_strided_slice %472 {offsets = [0, 8], sizes = [8, 8], strides = [1, 1]} : vector<8x32xf32> to vector<8x8xf32>
    %506 = vector.extract_strided_slice %480 {offsets = [0, 8], sizes = [8, 8], strides = [1, 1]} : vector<8x32xf32> to vector<8x8xf32>
    %507 = vector.extract_strided_slice %481 {offsets = [0, 8], sizes = [8, 8], strides = [1, 1]} : vector<8x32xf32> to vector<8x8xf32>
    %cst_215 = arith.constant dense<0.000000e+00> : vector<8x8xf32>
    %508 = tpu.matmul %505, %506, %cst_215 {dimension_numbers = #tpu.dot_dimension_numbers<[1], [1], [0], [0], [0, 0, 1, 0], [], []>} : vector<8x8xf32>, vector<8x8xf32>, vector<8x8xf32> -> vector<8x8xf32>
    %cst_216 = arith.constant 0.353553385 : f32
    %509 = vector.broadcast %cst_216 : f32 to vector<8x8xf32>
    %510 = arith.mulf %508, %509 : vector<8x8xf32>
    %cst_217 = arith.constant 0.000000e+00 : f32
    %511 = vector.broadcast %cst_217 : f32 to vector<1x8xf32>
    %512 = arith.cmpf oeq, %5, %511 : vector<1x8xf32>
    %cst_218 = arith.constant -1.000000e+09 : f32
    %513 = vector.shape_cast %512 : vector<1x8xi1> to vector<1x8xi1>
    %514 = vector.broadcast %513 : vector<1x8xi1> to vector<8x8xi1>
    %515 = vector.broadcast %cst_218 : f32 to vector<8x8xf32>
    %516 = arith.select %514, %515, %510 : vector<8x8xi1>, vector<8x8xf32>
    %cst_219 = arith.constant dense<0xFF800000> : vector<8xf32>
    %517 = vector.multi_reduction <maximumf>, %516, %cst_219 [1] : vector<8x8xf32> to vector<8xf32>
    %518 = vector.shape_cast %517 : vector<8xf32> to vector<8x1xf32>
    %519 = vector.broadcast %518 : vector<8x1xf32> to vector<8x8xf32>
    %520 = arith.subf %516, %519 : vector<8x8xf32>
    %521 = math.exp %520 : vector<8x8xf32>
    %cst_220 = arith.constant dense<0.000000e+00> : vector<8xf32>
    %522 = vector.multi_reduction <add>, %521, %cst_220 [1] : vector<8x8xf32> to vector<8xf32>
    %523 = vector.shape_cast %522 : vector<8xf32> to vector<8x1xf32>
    %524 = tpu.reciprocal %523 {approx = true} : vector<8x1xf32> -> vector<8x1xf32>
    %525 = vector.broadcast %524 : vector<8x1xf32> to vector<8x8xf32>
    %526 = arith.mulf %521, %525 : vector<8x8xf32>
    %cst_221 = arith.constant dense<0.000000e+00> : vector<8x8xf32>
    %527 = tpu.matmul %526, %507, %cst_221 {dimension_numbers = #tpu.dot_dimension_numbers<[1], [0], [0], [1], [0, 0, 1, 1], [], []>} : vector<8x8xf32>, vector<8x8xf32>, vector<8x8xf32> -> vector<8x8xf32>
    %528 = vector.extract_strided_slice %472 {offsets = [0, 16], sizes = [8, 8], strides = [1, 1]} : vector<8x32xf32> to vector<8x8xf32>
    %529 = vector.extract_strided_slice %480 {offsets = [0, 16], sizes = [8, 8], strides = [1, 1]} : vector<8x32xf32> to vector<8x8xf32>
    %530 = vector.extract_strided_slice %481 {offsets = [0, 16], sizes = [8, 8], strides = [1, 1]} : vector<8x32xf32> to vector<8x8xf32>
    %cst_222 = arith.constant dense<0.000000e+00> : vector<8x8xf32>
    %531 = tpu.matmul %528, %529, %cst_222 {dimension_numbers = #tpu.dot_dimension_numbers<[1], [1], [0], [0], [0, 0, 1, 0], [], []>} : vector<8x8xf32>, vector<8x8xf32>, vector<8x8xf32> -> vector<8x8xf32>
    %cst_223 = arith.constant 0.353553385 : f32
    %532 = vector.broadcast %cst_223 : f32 to vector<8x8xf32>
    %533 = arith.mulf %531, %532 : vector<8x8xf32>
    %cst_224 = arith.constant 0.000000e+00 : f32
    %534 = vector.broadcast %cst_224 : f32 to vector<1x8xf32>
    %535 = arith.cmpf oeq, %5, %534 : vector<1x8xf32>
    %cst_225 = arith.constant -1.000000e+09 : f32
    %536 = vector.shape_cast %535 : vector<1x8xi1> to vector<1x8xi1>
    %537 = vector.broadcast %536 : vector<1x8xi1> to vector<8x8xi1>
    %538 = vector.broadcast %cst_225 : f32 to vector<8x8xf32>
    %539 = arith.select %537, %538, %533 : vector<8x8xi1>, vector<8x8xf32>
    %cst_226 = arith.constant dense<0xFF800000> : vector<8xf32>
    %540 = vector.multi_reduction <maximumf>, %539, %cst_226 [1] : vector<8x8xf32> to vector<8xf32>
    %541 = vector.shape_cast %540 : vector<8xf32> to vector<8x1xf32>
    %542 = vector.broadcast %541 : vector<8x1xf32> to vector<8x8xf32>
    %543 = arith.subf %539, %542 : vector<8x8xf32>
    %544 = math.exp %543 : vector<8x8xf32>
    %cst_227 = arith.constant dense<0.000000e+00> : vector<8xf32>
    %545 = vector.multi_reduction <add>, %544, %cst_227 [1] : vector<8x8xf32> to vector<8xf32>
    %546 = vector.shape_cast %545 : vector<8xf32> to vector<8x1xf32>
    %547 = tpu.reciprocal %546 {approx = true} : vector<8x1xf32> -> vector<8x1xf32>
    %548 = vector.broadcast %547 : vector<8x1xf32> to vector<8x8xf32>
    %549 = arith.mulf %544, %548 : vector<8x8xf32>
    %cst_228 = arith.constant dense<0.000000e+00> : vector<8x8xf32>
    %550 = tpu.matmul %549, %530, %cst_228 {dimension_numbers = #tpu.dot_dimension_numbers<[1], [0], [0], [1], [0, 0, 1, 1], [], []>} : vector<8x8xf32>, vector<8x8xf32>, vector<8x8xf32> -> vector<8x8xf32>
    %551 = vector.extract_strided_slice %472 {offsets = [0, 24], sizes = [8, 8], strides = [1, 1]} : vector<8x32xf32> to vector<8x8xf32>
    %552 = vector.extract_strided_slice %480 {offsets = [0, 24], sizes = [8, 8], strides = [1, 1]} : vector<8x32xf32> to vector<8x8xf32>
    %553 = vector.extract_strided_slice %481 {offsets = [0, 24], sizes = [8, 8], strides = [1, 1]} : vector<8x32xf32> to vector<8x8xf32>
    %cst_229 = arith.constant dense<0.000000e+00> : vector<8x8xf32>
    %554 = tpu.matmul %551, %552, %cst_229 {dimension_numbers = #tpu.dot_dimension_numbers<[1], [1], [0], [0], [0, 0, 1, 0], [], []>} : vector<8x8xf32>, vector<8x8xf32>, vector<8x8xf32> -> vector<8x8xf32>
    %cst_230 = arith.constant 0.353553385 : f32
    %555 = vector.broadcast %cst_230 : f32 to vector<8x8xf32>
    %556 = arith.mulf %554, %555 : vector<8x8xf32>
    %cst_231 = arith.constant 0.000000e+00 : f32
    %557 = vector.broadcast %cst_231 : f32 to vector<1x8xf32>
    %558 = arith.cmpf oeq, %5, %557 : vector<1x8xf32>
    %cst_232 = arith.constant -1.000000e+09 : f32
    %559 = vector.shape_cast %558 : vector<1x8xi1> to vector<1x8xi1>
    %560 = vector.broadcast %559 : vector<1x8xi1> to vector<8x8xi1>
    %561 = vector.broadcast %cst_232 : f32 to vector<8x8xf32>
    %562 = arith.select %560, %561, %556 : vector<8x8xi1>, vector<8x8xf32>
    %cst_233 = arith.constant dense<0xFF800000> : vector<8xf32>
    %563 = vector.multi_reduction <maximumf>, %562, %cst_233 [1] : vector<8x8xf32> to vector<8xf32>
    %564 = vector.shape_cast %563 : vector<8xf32> to vector<8x1xf32>
    %565 = vector.broadcast %564 : vector<8x1xf32> to vector<8x8xf32>
    %566 = arith.subf %562, %565 : vector<8x8xf32>
    %567 = math.exp %566 : vector<8x8xf32>
    %cst_234 = arith.constant dense<0.000000e+00> : vector<8xf32>
    %568 = vector.multi_reduction <add>, %567, %cst_234 [1] : vector<8x8xf32> to vector<8xf32>
    %569 = vector.shape_cast %568 : vector<8xf32> to vector<8x1xf32>
    %570 = tpu.reciprocal %569 {approx = true} : vector<8x1xf32> -> vector<8x1xf32>
    %571 = vector.broadcast %570 : vector<8x1xf32> to vector<8x8xf32>
    %572 = arith.mulf %567, %571 : vector<8x8xf32>
    %cst_235 = arith.constant dense<0.000000e+00> : vector<8x8xf32>
    %573 = tpu.matmul %572, %553, %cst_235 {dimension_numbers = #tpu.dot_dimension_numbers<[1], [0], [0], [1], [0, 0, 1, 1], [], []>} : vector<8x8xf32>, vector<8x8xf32>, vector<8x8xf32> -> vector<8x8xf32>
    %574 = tpu.concatenate %504, %527, %550, %573 in 1 : vector<8x8xf32>, vector<8x8xf32>, vector<8x8xf32>, vector<8x8xf32> -> vector<8x32xf32>
    %c1_236 = arith.constant 1 : index
    %c0_237 = arith.constant 0 : index
    %c0_238 = arith.constant 0 : index
    %575 = vector.load %arg13[%c1_236, %c0_237, %c0_238] : memref<2x32x32xf32, #tpu.memory_space<vmem>>, vector<1x32x32xf32>
    %576 = vector.shape_cast %575 : vector<1x32x32xf32> to vector<32x32xf32>
    %cst_239 = arith.constant dense<0.000000e+00> : vector<8x32xf32>
    %577 = tpu.matmul %574, %576, %cst_239 {dimension_numbers = #tpu.dot_dimension_numbers<[1], [0], [0], [1], [0, 0, 1, 1], [], []>} : vector<8x32xf32>, vector<32x32xf32>, vector<8x32xf32> -> vector<8x32xf32>
    %578 = arith.addf %443, %577 : vector<8x32xf32>
    %c1_240 = arith.constant 1 : index
    %c0_241 = arith.constant 0 : index
    %c0_242 = arith.constant 0 : index
    %579 = vector.load %arg14[%c1_240, %c0_241, %c0_242] : memref<2x1x32xf32, #tpu.memory_space<vmem>>, vector<1x1x32xf32>
    %580 = vector.shape_cast %579 : vector<1x1x32xf32> to vector<1x32xf32>
    %581 = vector.broadcast %580 : vector<1x32xf32> to vector<8x32xf32>
    %582 = arith.addf %578, %581 : vector<8x32xf32>
    %583 = vector.extract_strided_slice %316 {offsets = [2, 0], sizes = [1, 32], strides = [1, 1]} : vector<3x32xf32> to vector<1x32xf32>
    %584 = vector.extract_strided_slice %318 {offsets = [2, 0], sizes = [1, 32], strides = [1, 1]} : vector<3x32xf32> to vector<1x32xf32>
    %cst_243 = arith.constant dense<0.000000e+00> : vector<8xf32>
    %585 = vector.multi_reduction <add>, %582, %cst_243 [1] : vector<8x32xf32> to vector<8xf32>
    %586 = vector.shape_cast %585 : vector<8xf32> to vector<8x1xf32>
    %cst_244 = arith.constant 3.200000e+01 : f32
    %587 = vector.broadcast %cst_244 : f32 to vector<8x1xf32>
    %588 = arith.divf %586, %587 : vector<8x1xf32>
    %589 = vector.broadcast %588 : vector<8x1xf32> to vector<8x32xf32>
    %590 = arith.subf %582, %589 : vector<8x32xf32>
    %591 = arith.mulf %590, %590 : vector<8x32xf32>
    %cst_245 = arith.constant dense<0.000000e+00> : vector<8xf32>
    %592 = vector.multi_reduction <add>, %591, %cst_245 [1] : vector<8x32xf32> to vector<8xf32>
    %593 = vector.shape_cast %592 : vector<8xf32> to vector<8x1xf32>
    %cst_246 = arith.constant 3.100000e+01 : f32
    %594 = vector.broadcast %cst_246 : f32 to vector<8x1xf32>
    %595 = arith.divf %593, %594 : vector<8x1xf32>
    %596 = vector.broadcast %583 : vector<1x32xf32> to vector<8x32xf32>
    %597 = arith.mulf %596, %590 : vector<8x32xf32>
    %598 = math.sqrt %595 : vector<8x1xf32>
    %cst_247 = arith.constant 9.99999997E-7 : f32
    %599 = vector.broadcast %cst_247 : f32 to vector<8x1xf32>
    %600 = arith.addf %598, %599 : vector<8x1xf32>
    %601 = vector.broadcast %600 : vector<8x1xf32> to vector<8x32xf32>
    %602 = arith.divf %597, %601 : vector<8x32xf32>
    %603 = vector.broadcast %584 : vector<1x32xf32> to vector<8x32xf32>
    %604 = arith.addf %602, %603 : vector<8x32xf32>
    %c1_248 = arith.constant 1 : index
    %c0_249 = arith.constant 0 : index
    %c0_250 = arith.constant 0 : index
    %605 = vector.load %arg15[%c1_248, %c0_249, %c0_250] : memref<2x32x64xf32, #tpu.memory_space<vmem>>, vector<1x32x64xf32>
    %606 = vector.shape_cast %605 : vector<1x32x64xf32> to vector<32x64xf32>
    %cst_251 = arith.constant dense<0.000000e+00> : vector<8x64xf32>
    %607 = tpu.matmul %604, %606, %cst_251 {dimension_numbers = #tpu.dot_dimension_numbers<[1], [0], [0], [1], [0, 0, 1, 1], [], []>} : vector<8x32xf32>, vector<32x64xf32>, vector<8x64xf32> -> vector<8x64xf32>
    %c1_252 = arith.constant 1 : index
    %c0_253 = arith.constant 0 : index
    %c0_254 = arith.constant 0 : index
    %608 = vector.load %arg16[%c1_252, %c0_253, %c0_254] : memref<2x1x64xf32, #tpu.memory_space<vmem>>, vector<1x1x64xf32>
    %609 = vector.shape_cast %608 : vector<1x1x64xf32> to vector<1x64xf32>
    %610 = vector.broadcast %609 : vector<1x64xf32> to vector<8x64xf32>
    %611 = arith.addf %607, %610 : vector<8x64xf32>
    %cst_255 = arith.constant 0.000000e+00 : f32
    %612 = vector.broadcast %cst_255 : f32 to vector<8x64xf32>
    %613 = arith.maximumf %611, %612 : vector<8x64xf32>
    %c1_256 = arith.constant 1 : index
    %c0_257 = arith.constant 0 : index
    %c0_258 = arith.constant 0 : index
    %614 = vector.load %arg17[%c1_256, %c0_257, %c0_258] : memref<2x64x32xf32, #tpu.memory_space<vmem>>, vector<1x64x32xf32>
    %615 = vector.shape_cast %614 : vector<1x64x32xf32> to vector<64x32xf32>
    %cst_259 = arith.constant dense<0.000000e+00> : vector<8x32xf32>
    %616 = tpu.matmul %613, %615, %cst_259 {dimension_numbers = #tpu.dot_dimension_numbers<[1], [0], [0], [1], [0, 0, 1, 1], [], []>} : vector<8x64xf32>, vector<64x32xf32>, vector<8x32xf32> -> vector<8x32xf32>
    %617 = arith.addf %582, %616 : vector<8x32xf32>
    %c1_260 = arith.constant 1 : index
    %c0_261 = arith.constant 0 : index
    %c0_262 = arith.constant 0 : index
    %618 = vector.load %arg18[%c1_260, %c0_261, %c0_262] : memref<2x1x32xf32, #tpu.memory_space<vmem>>, vector<1x1x32xf32>
    %619 = vector.shape_cast %618 : vector<1x1x32xf32> to vector<1x32xf32>
    %620 = vector.broadcast %619 : vector<1x32xf32> to vector<8x32xf32>
    %621 = arith.addf %617, %620 : vector<8x32xf32>
    %c0_263 = arith.constant 0 : index
    %c0_264 = arith.constant 0 : index
    %622 = vector.load %arg21[%c0_263, %c0_264] : memref<1x32xf32, #tpu.memory_space<vmem>>, vector<1x32xf32>
    %c0_265 = arith.constant 0 : index
    %c0_266 = arith.constant 0 : index
    %623 = vector.load %arg22[%c0_265, %c0_266] : memref<1x32xf32, #tpu.memory_space<vmem>>, vector<1x32xf32>
    %cst_267 = arith.constant dense<0.000000e+00> : vector<8xf32>
    %624 = vector.multi_reduction <add>, %621, %cst_267 [1] : vector<8x32xf32> to vector<8xf32>
    %625 = vector.shape_cast %624 : vector<8xf32> to vector<8x1xf32>
    %cst_268 = arith.constant 3.200000e+01 : f32
    %626 = vector.broadcast %cst_268 : f32 to vector<8x1xf32>
    %627 = arith.divf %625, %626 : vector<8x1xf32>
    %628 = vector.broadcast %627 : vector<8x1xf32> to vector<8x32xf32>
    %629 = arith.subf %621, %628 : vector<8x32xf32>
    %630 = arith.mulf %629, %629 : vector<8x32xf32>
    %cst_269 = arith.constant dense<0.000000e+00> : vector<8xf32>
    %631 = vector.multi_reduction <add>, %630, %cst_269 [1] : vector<8x32xf32> to vector<8xf32>
    %632 = vector.shape_cast %631 : vector<8xf32> to vector<8x1xf32>
    %cst_270 = arith.constant 3.100000e+01 : f32
    %633 = vector.broadcast %cst_270 : f32 to vector<8x1xf32>
    %634 = arith.divf %632, %633 : vector<8x1xf32>
    %635 = vector.broadcast %622 : vector<1x32xf32> to vector<8x32xf32>
    %636 = arith.mulf %635, %629 : vector<8x32xf32>
    %637 = math.sqrt %634 : vector<8x1xf32>
    %cst_271 = arith.constant 9.99999997E-7 : f32
    %638 = vector.broadcast %cst_271 : f32 to vector<8x1xf32>
    %639 = arith.addf %637, %638 : vector<8x1xf32>
    %640 = vector.broadcast %639 : vector<8x1xf32> to vector<8x32xf32>
    %641 = arith.divf %636, %640 : vector<8x32xf32>
    %642 = vector.broadcast %623 : vector<1x32xf32> to vector<8x32xf32>
    %643 = arith.addf %641, %642 : vector<8x32xf32>
    %c0_272 = arith.constant 0 : index
    %c0_273 = arith.constant 0 : index
    %c0_274 = arith.constant 0 : index
    %644 = vector.load %arg23[%c0_272, %c0_273, %c0_274] : memref<1x8x32xf32, #tpu.memory_space<vmem>>, vector<1x8x32xf32>
    %645 = vector.shape_cast %644 : vector<1x8x32xf32> to vector<8x32xf32>
    %646 = vector.shape_cast %643 : vector<8x32xf32> to vector<1x8x32xf32>
    tpu.vector_store %arg23[%c0_272, %c0_273, %c0_274], %646 {strides = array<i32>} : memref<1x8x32xf32, #tpu.memory_space<vmem>>, vector<1x8x32xf32>,
    return
  }
  func.func @transform_0(%arg0: i32) -> (i32, i32, i32) {
    %c0_i32 = arith.constant 0 : i32
    %c0_i32_0 = arith.constant 0 : i32
    %c0_i32_1 = arith.constant 0 : i32
    return %arg0, %c0_i32, %c0_i32_0 : i32, i32, i32
  }
  func.func @transform_1(%arg0: i32) -> (i32, i32, i32) {
    %c0_i32 = arith.constant 0 : i32
    %c0_i32_0 = arith.constant 0 : i32
    %c0_i32_1 = arith.constant 0 : i32
    return %arg0, %c0_i32, %c0_i32_0 : i32, i32, i32
  }
  func.func @transform_2(%arg0: i32) -> (i32, i32, i32) {
    %c0_i32 = arith.constant 0 : i32
    %c0_i32_0 = arith.constant 0 : i32
    %c0_i32_1 = arith.constant 0 : i32
    return %arg0, %c0_i32, %c0_i32_0 : i32, i32, i32
  }
  func.func @transform_3(%arg0: i32) -> (i32, i32, i32) {
    %c0_i32 = arith.constant 0 : i32
    %c0_i32_0 = arith.constant 0 : i32
    %c0_i32_1 = arith.constant 0 : i32
    return %arg0, %c0_i32, %c0_i32_0 : i32, i32, i32
  }
  func.func @transform_4(%arg0: i32) -> (i32, i32, i32) {
    %c0_i32 = arith.constant 0 : i32
    %c0_i32_0 = arith.constant 0 : i32
    %c0_i32_1 = arith.constant 0 : i32
    %c0_i32_2 = arith.constant 0 : i32
    return %c0_i32, %c0_i32_0, %c0_i32_1 : i32, i32, i32
  }
  func.func @transform_5(%arg0: i32) -> (i32, i32, i32) {
    %c0_i32 = arith.constant 0 : i32
    %c0_i32_0 = arith.constant 0 : i32
    %c0_i32_1 = arith.constant 0 : i32
    %c0_i32_2 = arith.constant 0 : i32
    return %c0_i32, %c0_i32_0, %c0_i32_1 : i32, i32, i32
  }
  func.func @transform_6(%arg0: i32) -> (i32, i32, i32) {
    %c0_i32 = arith.constant 0 : i32
    %c0_i32_0 = arith.constant 0 : i32
    %c0_i32_1 = arith.constant 0 : i32
    %c0_i32_2 = arith.constant 0 : i32
    return %c0_i32, %c0_i32_0, %c0_i32_1 : i32, i32, i32
  }
  func.func @transform_7(%arg0: i32) -> (i32, i32, i32) {
    %c0_i32 = arith.constant 0 : i32
    %c0_i32_0 = arith.constant 0 : i32
    %c0_i32_1 = arith.constant 0 : i32
    %c0_i32_2 = arith.constant 0 : i32
    return %c0_i32, %c0_i32_0, %c0_i32_1 : i32, i32, i32
  }
  func.func @transform_8(%arg0: i32) -> (i32, i32, i32) {
    %c0_i32 = arith.constant 0 : i32
    %c0_i32_0 = arith.constant 0 : i32
    %c0_i32_1 = arith.constant 0 : i32
    %c0_i32_2 = arith.constant 0 : i32
    return %c0_i32, %c0_i32_0, %c0_i32_1 : i32, i32, i32
  }
  func.func @transform_9(%arg0: i32) -> (i32, i32, i32) {
    %c0_i32 = arith.constant 0 : i32
    %c0_i32_0 = arith.constant 0 : i32
    %c0_i32_1 = arith.constant 0 : i32
    %c0_i32_2 = arith.constant 0 : i32
    return %c0_i32, %c0_i32_0, %c0_i32_1 : i32, i32, i32
  }
  func.func @transform_10(%arg0: i32) -> (i32, i32, i32) {
    %c0_i32 = arith.constant 0 : i32
    %c0_i32_0 = arith.constant 0 : i32
    %c0_i32_1 = arith.constant 0 : i32
    %c0_i32_2 = arith.constant 0 : i32
    return %c0_i32, %c0_i32_0, %c0_i32_1 : i32, i32, i32
  }
  func.func @transform_11(%arg0: i32) -> (i32, i32, i32) {
    %c0_i32 = arith.constant 0 : i32
    %c0_i32_0 = arith.constant 0 : i32
    %c0_i32_1 = arith.constant 0 : i32
    %c0_i32_2 = arith.constant 0 : i32
    return %c0_i32, %c0_i32_0, %c0_i32_1 : i32, i32, i32
  }
  func.func @transform_12(%arg0: i32) -> (i32, i32, i32) {
    %c0_i32 = arith.constant 0 : i32
    %c0_i32_0 = arith.constant 0 : i32
    %c0_i32_1 = arith.constant 0 : i32
    %c0_i32_2 = arith.constant 0 : i32
    return %c0_i32, %c0_i32_0, %c0_i32_1 : i32, i32, i32
  }
  func.func @transform_13(%arg0: i32) -> (i32, i32, i32) {
    %c0_i32 = arith.constant 0 : i32
    %c0_i32_0 = arith.constant 0 : i32
    %c0_i32_1 = arith.constant 0 : i32
    %c0_i32_2 = arith.constant 0 : i32
    return %c0_i32, %c0_i32_0, %c0_i32_1 : i32, i32, i32
  }
  func.func @transform_14(%arg0: i32) -> (i32, i32, i32) {
    %c0_i32 = arith.constant 0 : i32
    %c0_i32_0 = arith.constant 0 : i32
    %c0_i32_1 = arith.constant 0 : i32
    %c0_i32_2 = arith.constant 0 : i32
    return %c0_i32, %c0_i32_0, %c0_i32_1 : i32, i32, i32
  }
  func.func @transform_15(%arg0: i32) -> (i32, i32, i32) {
    %c0_i32 = arith.constant 0 : i32
    %c0_i32_0 = arith.constant 0 : i32
    %c0_i32_1 = arith.constant 0 : i32
    %c0_i32_2 = arith.constant 0 : i32
    return %c0_i32, %c0_i32_0, %c0_i32_1 : i32, i32, i32
  }
  func.func @transform_16(%arg0: i32) -> (i32, i32, i32) {
    %c0_i32 = arith.constant 0 : i32
    %c0_i32_0 = arith.constant 0 : i32
    %c0_i32_1 = arith.constant 0 : i32
    %c0_i32_2 = arith.constant 0 : i32
    return %c0_i32, %c0_i32_0, %c0_i32_1 : i32, i32, i32
  }
  func.func @transform_17(%arg0: i32) -> (i32, i32, i32) {
    %c0_i32 = arith.constant 0 : i32
    %c0_i32_0 = arith.constant 0 : i32
    %c0_i32_1 = arith.constant 0 : i32
    %c0_i32_2 = arith.constant 0 : i32
    return %c0_i32, %c0_i32_0, %c0_i32_1 : i32, i32, i32
  }
  func.func @transform_18(%arg0: i32) -> (i32, i32, i32) {
    %c0_i32 = arith.constant 0 : i32
    %c0_i32_0 = arith.constant 0 : i32
    %c0_i32_1 = arith.constant 0 : i32
    %c0_i32_2 = arith.constant 0 : i32
    return %c0_i32, %c0_i32_0, %c0_i32_1 : i32, i32, i32
  }
  func.func @transform_19(%arg0: i32) -> (i32, i32, i32) {
    %c0_i32 = arith.constant 0 : i32
    %c0_i32_0 = arith.constant 0 : i32
    %c0_i32_1 = arith.constant 0 : i32
    %c0_i32_2 = arith.constant 0 : i32
    return %c0_i32, %c0_i32_0, %c0_i32_1 : i32, i32, i32
  }
  func.func @transform_20(%arg0: i32) -> (i32, i32) {
    %c0_i32 = arith.constant 0 : i32
    %c0_i32_0 = arith.constant 0 : i32
    %c0_i32_1 = arith.constant 0 : i32
    return %c0_i32, %c0_i32_0 : i32, i32
  }
  func.func @transform_21(%arg0: i32) -> (i32, i32) {
    %c0_i32 = arith.constant 0 : i32
    %c0_i32_0 = arith.constant 0 : i32
    %c0_i32_1 = arith.constant 0 : i32
    return %c0_i32, %c0_i32_0 : i32, i32
  }
  func.func @transform_22(%arg0: i32) -> (i32, i32, i32) {
    %c0_i32 = arith.constant 0 : i32
    %c0_i32_0 = arith.constant 0 : i32
    %c0_i32_1 = arith.constant 0 : i32
    return %arg0, %c0_i32, %c0_i32_0 : i32, i32, i32
  }
}

</mosaic_0001>

<bundles_post_ra>
// kernel: decoder_forward.1
= control target key start
LH: loop header
LB: loop body
LE: loop exit
PB: predicated region body
PF: predicated region fallthrough
CT: control target
= control target key end

     0   :  { %s7596_s0 = inlined_call_operand.vmem [shape: f32[2,8,32], index: 0, kind: input, shape index: {}]   ;;  %s7597_s1 = inlined_call_operand.vmem [shape: f32[2,8,32], index: 1, kind: input, shape index: {}]   ;;  %s7598_s2 = inlined_call_operand.vmem [shape: f32[2,1,8], index: 2, kind: input, shape index: {}]   ;;  %s7599_s3 = inlined_call_operand.vmem [shape: f32[2,8,8], index: 3, kind: input, shape index: {}]   ;;  %s7600_s4 = inlined_call_operand.vmem [shape: f32[2,32,96], index: 4, kind: input, shape index: {}]   ;;  %s7601_s5 = inlined_call_operand.vmem [shape: f32[2,1,96], index: 5, kind: input, shape index: {}]   ;;  %s7602_s6 = inlined_call_operand.vmem [shape: f32[2,32,32], index: 6, kind: input, shape index: {}]   ;;  %s7603_s7 = inlined_call_operand.vmem [shape: f32[2,1,32], index: 7, kind: input, shape index: {}]   ;;  %s7604_s8 = inlined_call_operand.vmem [shape: f32[2,32,32], index: 8, kind: input, shape index: {}]   ;;  %s7605_s9 = inlined_call_operand.hbm [shape: f32[2,1,32], index: 9, kind: input, shape index: {}]   ;;  %s7606_s10 = inlined_call_operand.hbm [shape: f32[2,32,64], index: 10, kind: input, shape index: {}]   ;;  %s7607_s11 = inlined_call_operand.hbm [shape: f32[2,1,64], index: 11, kind: input, shape index: {}]   ;;  %s7608_s12 = inlined_call_operand.hbm [shape: f32[2,32,32], index: 12, kind: input, shape index: {}]   ;;  %s7609_s13 = inlined_call_operand.hbm [shape: f32[2,1,32], index: 13, kind: input, shape index: {}]   ;;  %s7610_s14 = inlined_call_operand.hbm [shape: f32[2,32,64], index: 14, kind: input, shape index: {}]   ;;  %s7611_s15 = inlined_call_operand.hbm [shape: f32[2,1,64], index: 15, kind: input, shape index: {}]   ;;  %s7612_s16 = inlined_call_operand.vmem [shape: f32[2,64,32], index: 16, kind: input, shape index: {}]   ;;  %s7613_s17 = inlined_call_operand.hbm [shape: f32[2,1,32], index: 17, kind: input, shape index: {}]   ;;  %s7614_s18 = inlined_call_operand.vmem [shape: f32[2,3,32], index: 18, kind: input, shape index: {}]   ;;  %s7615_s19 = inlined_call_operand.vmem [shape: f32[2,3,32], index: 19, kind: input, shape index: {}]   ;;  %s7616_s20 = inlined_call_operand.vmem [shape: f32[1,32], index: 20, kind: input, shape index: {}]   ;;  %s7617_s21 = inlined_call_operand.vmem [shape: f32[1,32], index: 21, kind: input, shape index: {}]   ;;  %s7618_s22 = inlined_call_operand.hbm [shape: f32[2,8,32], index: 22, kind: output, shape index: {}]  }
   0x1   :  { %7660 = sst [smem:[#allocation31_spill]] %s7596_s0 }
   0x2   :  { %7661 = sst [smem:[#allocation32_spill]] %s7597_s1 }
   0x3   :  { %7662 = sst [smem:[#allocation33_spill]] %s7598_s2 }
   0x4   :  { %7663 = sst [smem:[#allocation34_spill]] %s7599_s3 }
   0x5   :  { %7664 = sst [smem:[#allocation35_spill]] %s7600_s4 }
   0x6   :  { %7665 = sst [smem:[#allocation36_spill]] %s7601_s5 }
   0x7   :  { %7666 = sst [smem:[#allocation37_spill]] %s7602_s6 }
   0x8   :  { %7667 = sst [smem:[#allocation38_spill]] %s7603_s7 }
   0x9   :  { %7668 = sst [smem:[#allocation39_spill]] %s7605_s9 }
   0xa   :  { %7669 = sst [smem:[#allocation40_spill]] %s7606_s10 }
   0xb   :  { %7670 = sst [smem:[#allocation41_spill]] %s7616_s20 }
   0xc   :  { %7671 = sst [smem:[#allocation42_spill]] %s7617_s21 }
   0xd   :  { %7672 = sst [smem:[#allocation43_spill]] %s7618_s22 }
   0xe   :  { %27 = vsyncpa [#allocation3], 0 }
   0xf   :  { %28 = vsyncpa [#allocation6], 0 }
  0x10   :  { %29 = vsyncpa [#allocation9], 0 }
  0x11   :  { %30 = vsyncpa [#allocation12], 0 }
  0x12   :  { %31 = vsyncpa [#allocation15], 0 }
  0x13   :  { %32 = vsyncpa [#allocation4], 0 }
  0x14   :  { %34 = vsyncpa [#allocation4 + $0x1], 0  ;;  %s6592_s3 = smov 0   ;;  %s6594_s28 = smov 0  }
  0x15   :  { %s6596_s29 = smov 0   ;;  %s6598_s30 = smov 0  }
  0x16 LB: > { %7673 = sst [smem:[#allocation23_spill]] %s6432_s3  ;;  %s6613_s4 = sadd.s32 4294967295, %s6444_s30   ;;  %s6444_s30 = sphi %s6598_s30, %s7735_s30   ;;  %s6440_s29 = sphi %s6596_s29, %s7738_s29   ;;  %s6436_s28 = sphi %s6594_s28, %s7737_s28   ;;  %s6432_s3 = sphi %s6592_s3, %s7736_s3  }
  0x17   : > { %7674 = sst [smem:[#allocation24_spill]] %s6436_s28  ;;  %s5206_s0 = sadd.s32 4294967294, %s6444_s30  }
  0x18   : > { %7675 = sst [smem:[#allocation25_spill]] %s6440_s29  ;;  %s6617_s23 = sadd.s32 1, %s6444_s30  }
  0x19   : > { %7676 = sst [smem:[#allocation26_spill]] %s6444_s30  ;;  %s529_s1 = sadd.s32 1, %s6440_s29 }
  0x1a   : > { %7677 = sst [smem:[#allocation27_spill]] %s6617_s23  ;;  %s526_s5 = ssub.s32 %s6444_s30, %s6617_s23 }
  0x1b   : > { %p539_p0 = scmp.ne.s32.totalorder %s6440_s29, %s6436_s28  ;;  %p527_p1 = scmp.eq.s32.totalorder %s526_s5, 0 }
  0x1c   : > { %p540_p2 = scmp.eq.s32.totalorder %s6613_s4, 1  ;;  %p545_p3 = scmp.ne.s32.totalorder %s6436_s28, %s6432_s3 }
  0x1d   : > { %p546_p4 = scmp.eq.s32.totalorder %s5206_s0, 1  ;;  %p5207_p7 = scmp.ge.s32.totalorder %s6444_s30, 1 }
  0x1e   : > { %s6628_s24 = scalar_select %p527_p1, %s6440_s29, %s529_s1  }
  0x1f   : > { %p6630_p5 = por %p540_p2, %p539_p0  ;;  %p6634_p6 = por %p546_p4, %p545_p3 }
  0x20   : > { %7678 = sst [smem:[#allocation28_spill]] %s6628_s24  ;;  %p553_p8 = scmp.lt.s32.totalorder %s6444_s30, 3 }
  0x21   : > { %s7679_s6 = scalar_select %p6630_p5, 1, 0 }
  0x22   : > { %s7681_s25 = scalar_select %p6634_p6, 1, 0 }
  0x23   : > { %7680 = sst [smem:[#allocation29_spill]] %s7679_s6  ;;  %p7629_p9 = scmp.eq.s32.totalorder %s6613_s4, 0 }
  0x24   : > { %7682 = sst [smem:[#allocation30_spill]] %s7681_s25  ;;  %p6641_p10 = pnand %p5207_p7, %p553_p8 }
  0x25   : > { %s6446_s2 = smov [#allocation5]   ;;  %s6447_s1 = smov [#allocation8]  }
  0x26   : > { %s7683_s26 = scalar_select %p6641_p10, 1, 0 }
  0x27   : > { %s593_s27 = sshll.u32 %s6446_s2, 4  ;;  %p5938_p11 = pneg %p6641_p10  ;;  %s6647_s27 = int_to_ptr.vmem [resolvable:$true] %s593_s27 }
  0x28   : > { %s619_s5 = sshll.u32 %s6447_s1, 4  ;;  %s6448_s24 = smov [#allocation11]   ;;  %s6655_s5 = int_to_ptr.vmem [resolvable:$true] %s619_s5 }
  0x29   : > { %p6651_p12 = pnand %p7629_p9, %p5938_p11  ;;  %s6657_s29 = sshll.u32 %s6448_s24, 4  ;;  %s646_s29 = int_to_ptr.vmem [resolvable:$true] %s6657_s29 }
  0x2a   : > { %s7685_s10 = sld [smem:[#allocation40_spill]] }
  0x2b   : > { %p6667_p0 = pneg %p6651_p12 }
  0x30   : > { %s6138_s2 = scalar_lea.hbm %s7685_s10, 1024 }
  0x31   : > { %p6139_p13 = scmp.ne.s32.totalorder %s7685_s10, %s6138_s2  ;;  %p6145_p3 = scmp.lt.u32.totalorder %s6138_s2, %s7685_s10 }
  0x33   : > { %p6141_p1 = pnand %p6667_p0, %p6139_p13 }
  0x35   : > { %p6142_p2 = pneg %p6141_p1 }
  0x37   : > { %p6147_p4 = pnand %p6145_p3, %p6142_p2 }
  0x39   : > { %6150 = shalt.err (!%p6147_p4)
}
  0x3a   : > { %s6151_s3 = scalar_lea.vmem %s6647_s27, 1024  ;;  %p6159_p9 = scmp.lt.s32.totalorder %s6647_s27, %s6647_s27 }
  0x3b   : > { %p6152_p7 = scmp.ne.s32.totalorder %s6647_s27, %s6151_s3  ;;  %p6160_p6 = scmp.lt.s32.totalorder %s6151_s3, %s6151_s3 }
  0x3d   : > { %p6154_p8 = pnand %p6152_p7, %p6667_p0  ;;  %p6161_p13 = por %p6160_p6, %p6159_p9 }
  0x3f   : > { %p6155_p11 = pneg %p6154_p8 }
  0x41   : > { %p6162_p1 = pnand %p6161_p13, %p6155_p11 }
  0x43   : > { %6165 = shalt.err (!%p6162_p1)
}
  0x44   : > { %s6449_s30 = smov 128   ;;  %s6450_s23 = smov 8  }
  0x45   : > { %5944 = dma.hbm_to_vmem [thread:$0]  (!%p6651_p12), %s7685_s10, 1024, %s6647_s27, [#allocation6], %s6449_s30, %s6449_s30, %s6450_s23  }
  0x46   : > { %s6166_s3 = scalar_lea.hbm %s7608_s12, 1024 }
  0x47   : > { %p6167_p6 = scmp.ne.s32.totalorder %s7608_s12, %s6166_s3  ;;  %p6173_p3 = scmp.lt.u32.totalorder %s6166_s3, %s7608_s12 }
  0x49   : > { %p6169_p9 = pnand %p6167_p6, %p6667_p0 }
  0x4b   : > { %p6170_p2 = pneg %p6169_p9 }
  0x4d   : > { %p6175_p4 = pnand %p6173_p3, %p6170_p2 }
  0x4f   : > { %6178 = shalt.err (!%p6175_p4)
}
  0x50   : > { %s6179_s27 = scalar_lea.vmem %s6655_s5, 1024  ;;  %p6187_p13 = scmp.lt.s32.totalorder %s6655_s5, %s6655_s5 }
  0x51   : > { %p6180_p7 = scmp.ne.s32.totalorder %s6655_s5, %s6179_s27  ;;  %p6188_p1 = scmp.lt.s32.totalorder %s6179_s27, %s6179_s27 }
  0x53   : > { %p6182_p8 = pnand %p6180_p7, %p6667_p0  ;;  %p6189_p6 = por %p6188_p1, %p6187_p13 }
  0x55   : > { %p6183_p11 = pneg %p6182_p8 }
  0x57   : > { %p6190_p9 = pnand %p6189_p6, %p6183_p11 }
  0x59   : > { %6193 = shalt.err (!%p6190_p9)
}
  0x5a   : > { %5950 = dma.hbm_to_vmem [thread:$0]  (!%p6651_p12), %s7608_s12, 1024, %s6655_s5, [#allocation9], %s6449_s30, %s6449_s30, %s6450_s23  }
  0x5b   : > { %s6194_s25 = scalar_lea.hbm %s7610_s14, 1024 }
  0x5c   : > { %p6195_p2 = scmp.ne.s32.totalorder %s7610_s14, %s6194_s25  ;;  %p6201_p7 = scmp.lt.u32.totalorder %s6194_s25, %s7610_s14 }
  0x5e   : > { %p6197_p3 = pnand %p6195_p2, %p6667_p0 }
  0x60   : > { %p6198_p4 = pneg %p6197_p3 }
  0x62   : > { %p6203_p8 = pnand %p6201_p7, %p6198_p4 }
  0x64   : > { %6206 = shalt.err (!%p6203_p8)
}
  0x65   : > { %s6207_s27 = scalar_lea.vmem %s646_s29, 1024  ;;  %p6215_p6 = scmp.lt.s32.totalorder %s646_s29, %s646_s29 }
  0x66   : > { %p6208_p11 = scmp.ne.s32.totalorder %s646_s29, %s6207_s27  ;;  %p6216_p9 = scmp.lt.s32.totalorder %s6207_s27, %s6207_s27 }
  0x68   : > { %p6210_p13 = pnand %p6208_p11, %p6667_p0  ;;  %p6217_p5 = por %p6216_p9, %p6215_p6 }
  0x6a   : > { %p6211_p1 = pneg %p6210_p13 }
  0x6c   : > { %p6218_p10 = pnand %p6217_p5, %p6211_p1 }
  0x6e   : > { %6221 = shalt.err (!%p6218_p10)
}
  0x6f   : > { %5956 = dma.hbm_to_vmem [thread:$0]  (!%p6651_p12), %s7610_s14, 1024, %s646_s29, [#allocation12], %s6449_s30, %s6449_s30, %s6450_s23  }
  0x70   : > { %s6451_s21 = smov [#allocation2]   ;;  %s7687_s9 = sld [smem:[#allocation39_spill]] }
  0x71   : > { %s580_s28 = sshll.u32 %s6451_s21, 4  ;;  %s581_s28 = int_to_ptr.vmem [resolvable:$true] %s580_s28 }
  0x76   : > { %s6222_s2 = scalar_lea.hbm %s7687_s9, 32 }
  0x77   : > { %p6223_p5 = scmp.ne.s32.totalorder %s7687_s9, %s6222_s2  ;;  %p6229_p3 = scmp.lt.u32.totalorder %s6222_s2, %s7687_s9 }
  0x79   : > { %p6225_p10 = pnand %p6223_p5, %p6667_p0 }
  0x7b   : > { %p6226_p2 = pneg %p6225_p10 }
  0x7d   : > { %p6231_p4 = pnand %p6229_p3, %p6226_p2 }
  0x7f   : > { %6234 = shalt.err (!%p6231_p4)
}
  0x80   : > { %s6235_s29 = scalar_lea.vmem %s581_s28, 32  ;;  %p6243_p13 = scmp.lt.s32.totalorder %s581_s28, %s581_s28 }
  0x81   : > { %p6236_p7 = scmp.ne.s32.totalorder %s581_s28, %s6235_s29  ;;  %p6244_p1 = scmp.lt.s32.totalorder %s6235_s29, %s6235_s29 }
  0x83   : > { %p6238_p8 = pnand %p6236_p7, %p6667_p0  ;;  %p6245_p6 = por %p6244_p1, %p6243_p13 }
  0x85   : > { %p6239_p11 = pneg %p6238_p8 }
  0x87   : > { %p6246_p9 = pnand %p6245_p6, %p6239_p11 }
  0x89   : > { %6249 = shalt.err (!%p6246_p9)
}
  0x8a   : > { %s6452_s30 = smov 16   ;;  %s6453_s23 = smov 1  }
  0x8b   : > { %5941 = dma.hbm_to_vmem [thread:$0]  (!%p6651_p12), %s7687_s9, 32, %s581_s28, [#allocation3], %s6452_s30, %s6452_s30, %s6453_s23  }
  0x8c   : > { %s6454_s21 = smov [#allocation7]   ;;  %s6455_s25 = smov [#allocation10]  }
  0x8d   : > { %s606_s6 = sshll.u32 %s6454_s21, 4  ;;  %s632_s2 = sshll.u32 %s6455_s25, 4  ;;  %s607_s6 = int_to_ptr.vmem [resolvable:$true] %s606_s6  ;;  %s6760_s2 = int_to_ptr.vmem [resolvable:$true] %s632_s2 }
  0x8e   : > { %s6250_s3 = scalar_lea.hbm %s7607_s11, 32 }
  0x8f   : > { %p6251_p5 = scmp.ne.s32.totalorder %s7607_s11, %s6250_s3  ;;  %p6257_p3 = scmp.lt.u32.totalorder %s6250_s3, %s7607_s11 }
  0x91   : > { %p6253_p10 = pnand %p6251_p5, %p6667_p0 }
  0x93   : > { %p6254_p2 = pneg %p6253_p10 }
  0x95   : > { %p6259_p4 = pnand %p6257_p3, %p6254_p2 }
  0x97   : > { %6262 = shalt.err (!%p6259_p4)
}
  0x98   : > { %s6263_s20 = scalar_lea.vmem %s607_s6, 32  ;;  %p6271_p13 = scmp.lt.s32.totalorder %s607_s6, %s607_s6 }
  0x99   : > { %p6264_p7 = scmp.ne.s32.totalorder %s607_s6, %s6263_s20  ;;  %p6272_p1 = scmp.lt.s32.totalorder %s6263_s20, %s6263_s20 }
  0x9b   : > { %p6266_p8 = pnand %p6264_p7, %p6667_p0  ;;  %p6273_p6 = por %p6272_p1, %p6271_p13 }
  0x9d   : > { %p6267_p11 = pneg %p6266_p8 }
  0x9f   : > { %p6274_p9 = pnand %p6273_p6, %p6267_p11 }
  0xa1   : > { %6277 = shalt.err (!%p6274_p9)
}
  0xa2   : > { %5947 = dma.hbm_to_vmem [thread:$0]  (!%p6651_p12), %s7607_s11, 32, %s607_s6, [#allocation6], %s6452_s30, %s6452_s30, %s6453_s23  }
  0xa3   : > { %s6278_s3 = scalar_lea.hbm %s7609_s13, 32 }
  0xa4   : > { %p6279_p5 = scmp.ne.s32.totalorder %s7609_s13, %s6278_s3  ;;  %p6285_p3 = scmp.lt.u32.totalorder %s6278_s3, %s7609_s13 }
  0xa6   : > { %p6281_p10 = pnand %p6279_p5, %p6667_p0 }
  0xa8   : > { %p6282_p2 = pneg %p6281_p10 }
  0xaa   : > { %p6287_p4 = pnand %p6285_p3, %p6282_p2 }
  0xac   : > { %6290 = shalt.err (!%p6287_p4)
}
  0xad   : > { %s6291_s6 = scalar_lea.vmem %s6760_s2, 32  ;;  %p6299_p13 = scmp.lt.s32.totalorder %s6760_s2, %s6760_s2 }
  0xae   : > { %p6292_p7 = scmp.ne.s32.totalorder %s6760_s2, %s6291_s6  ;;  %p6300_p1 = scmp.lt.s32.totalorder %s6291_s6, %s6291_s6 }
  0xb0   : > { %p6294_p8 = pnand %p6292_p7, %p6667_p0  ;;  %p6301_p6 = por %p6300_p1, %p6299_p13 }
  0xb2   : > { %p6295_p11 = pneg %p6294_p8 }
  0xb4   : > { %p6302_p9 = pnand %p6301_p6, %p6295_p11 }
  0xb6   : > { %6305 = shalt.err (!%p6302_p9)
}
  0xb7   : > { %5953 = dma.hbm_to_vmem [thread:$0]  (!%p6651_p12), %s7609_s13, 32, %s6760_s2, [#allocation9], %s6452_s30, %s6452_s30, %s6453_s23  }
  0xb8   : > { %s6456_s25 = smov [#allocation13]   ;;  %s6457_s24 = smov [#allocation14]  }
  0xb9   : > { %s658_s1 = sshll.u32 %s6456_s25, 4  ;;  %s674_s3 = sshll.u32 %s6457_s24, 4  ;;  %s659_s1 = int_to_ptr.vmem [resolvable:$true] %s658_s1  ;;  %s6809_s3 = int_to_ptr.vmem [resolvable:$true] %s674_s3 }
  0xba   : > { %s6306_s5 = scalar_lea.hbm %s7611_s15, 32 }
  0xbb   : > { %p6307_p5 = scmp.ne.s32.totalorder %s7611_s15, %s6306_s5  ;;  %p6313_p3 = scmp.lt.u32.totalorder %s6306_s5, %s7611_s15 }
  0xbd   : > { %p6309_p10 = pnand %p6307_p5, %p6667_p0 }
  0xbf   : > { %p6310_p2 = pneg %p6309_p10 }
  0xc1   : > { %p6315_p4 = pnand %p6313_p3, %p6310_p2 }
  0xc3   : > { %6318 = shalt.err (!%p6315_p4)
}
  0xc4   : > { %s6319_s21 = scalar_lea.vmem %s659_s1, 32  ;;  %p6327_p13 = scmp.lt.s32.totalorder %s659_s1, %s659_s1 }
  0xc5   : > { %p6320_p7 = scmp.ne.s32.totalorder %s659_s1, %s6319_s21  ;;  %p6328_p1 = scmp.lt.s32.totalorder %s6319_s21, %s6319_s21 }
  0xc7   : > { %p6322_p8 = pnand %p6320_p7, %p6667_p0  ;;  %p6329_p6 = por %p6328_p1, %p6327_p13 }
  0xc9   : > { %p6323_p11 = pneg %p6322_p8 }
  0xcb   : > { %p6330_p9 = pnand %p6329_p6, %p6323_p11 }
  0xcd   : > { %6333 = shalt.err (!%p6330_p9)
}
  0xce   : > { %5959 = dma.hbm_to_vmem [thread:$0]  (!%p6651_p12), %s7611_s15, 32, %s659_s1, [#allocation12], %s6452_s30, %s6452_s30, %s6453_s23  }
  0xcf   : > { %s6334_s5 = scalar_lea.hbm %s7613_s17, 32 }
  0xd0   : > { %p6335_p5 = scmp.ne.s32.totalorder %s7613_s17, %s6334_s5  ;;  %p6341_p3 = scmp.lt.u32.totalorder %s6334_s5, %s7613_s17 }
  0xd2   : > { %p6337_p10 = pnand %p6335_p5, %p6667_p0 }
  0xd4   : > { %p6338_p2 = pneg %p6337_p10 }
  0xd6   : > { %p6343_p4 = pnand %p6341_p3, %p6338_p2 }
  0xd8   : > { %6346 = shalt.err (!%p6343_p4)
}
  0xd9   : > { %s6347_s1 = scalar_lea.vmem %s6809_s3, 32  ;;  %p6355_p13 = scmp.lt.s32.totalorder %s6809_s3, %s6809_s3 }
  0xda   : > { %p6348_p7 = scmp.ne.s32.totalorder %s6809_s3, %s6347_s1  ;;  %p6356_p1 = scmp.lt.s32.totalorder %s6347_s1, %s6347_s1 }
  0xdc   : > { %p6350_p8 = pnand %p6348_p7, %p6667_p0  ;;  %p6357_p6 = por %p6356_p1, %p6355_p13 }
  0xde   : > { %p6351_p11 = pneg %p6350_p8 }
  0xe0   : > { %p6358_p9 = pnand %p6357_p6, %p6351_p11 }
  0xe2   : > { %6361 = shalt.err (!%p6358_p9)
}
  0xe3   : > { %5962 = dma.hbm_to_vmem [thread:$0]  (!%p6651_p12), %s7613_s17, 32, %s6809_s3, [#allocation15], %s6452_s30, %s6452_s30, %s6453_s23  }
  0xe4   : > { %p7688_p5 = scmp.ne.s32.totalorder %s7683_s26, 0 }
  0xe5   : > { %p7689_p0 = scmp.eq.s32.totalorder (!%p7688_p5), %s6613_s4, 0 }
  0xe6   : > { %729 = sbr.rel (%p7688_p5) target bundleno = 9125 (0x23a5), region = 108 }
  0xed   : > { %6407 = dma.done.wait (%p7689_p0), [#allocation3], 32   ;;  %p7690_p10 = pmov %p7689_p0 }
  0xee   : > { %p7691_p2 = pmov %p7689_p0 }
  0xef   : > { %6409 = vsyncadd (%p7690_p10), [#allocation3], 4294967264 }
  0xf0   : > { %6411 = dma.done.wait (%p7691_p2), [#allocation6], 1056   ;;  %p7692_p3 = pmov %p7689_p0 }
  0xf1   : > { %p7693_p4 = pmov %p7689_p0 }
  0xf2   : > { %6413 = vsyncadd (%p7692_p3), [#allocation6], 4294966240 }
  0xf3   : > { %6415 = dma.done.wait (%p7693_p4), [#allocation9], 1056   ;;  %p7694_p12 = pmov %p7689_p0 }
  0xf4   : > { %p7695_p7 = pmov %p7689_p0 }
  0xf5   : > { %6417 = vsyncadd (%p7694_p12), [#allocation9], 4294966240 }
  0xf6   : > { %6419 = dma.done.wait (%p7695_p7), [#allocation12], 1056   ;;  %p7696_p8 = pmov %p7689_p0 }
  0xf7   : > { %p7697_p11 = pmov %p7689_p0 }
  0xf8   : > { %6421 = vsyncadd (%p7696_p8), [#allocation12], 4294966240 }
  0xf9   : > { %6423 = dma.done.wait (%p7697_p11), [#allocation15], 32   ;;  %p7698_p13 = pmov %p7689_p0 }
  0xfa   : > { %p829_p1 = scmp.lt.s32.totalorder %s6613_s4, 1  ;;  %s7699_s23 = sld [smem:[#allocation31_spill]]  ;;  %vm850_vm0 = vcmask 261120   ;;  %v6458_v10 = vmov 0.0|0.0   ;;  %vm6459_vm1 = vmmov 0   ;;  %v6460_v13 = vmov 0.0  }
  0xfb   : > { %6425 = vsyncadd (%p7698_p13), [#allocation15], 4294967264  ;;  %s7700_s29 = sld [smem:[#allocation35_spill]]  ;;  %5808 = vmatprep.subr.bf16.mxu1 %v6458_v10  ;;  %5486 = vmatprep.mubr.msk.f32.mxu1 %vm6459_vm1, %v6460_v13  ;;  %v863_v18 = vlaneseq  ;;  %v6925_v26 = vld [vmem:[%s7614_s18] sm:$0x7]  ;;  %s7702_s27 = sld [smem:[#allocation36_spill]] }
  0xfc   : > { %s6882_s22 = scalar_select %p829_p1, %s6613_s4, 1  ;;  %5499 = vmatprep.subr.mxu0 %v6460_v13  ;;  %5501 = vmatprep.mubr.msk.f32.mxu0 %vm6459_vm1, %v6460_v13  ;;  %v6932_v28 = vld [vmem:[%s7615_s19] sm:$0x7]  ;;  %vm970_vm4 = vcmask 64512   ;;  %vm1649_vm6 = vcmask 130048   ;;  %vm1651_vm7 = vcmask 195584  }
  0xfd   : > { %v6917_v22 = vshrl.u32 %v863_v18, 7  ;;  %s7643_s28 = smov 96   ;;  %s7657_s6 = smov 88   ;;  %vm2834_vm14 = vcmask 523264  }
  0xfe   : > { %s6885_s26 = sshll.u32 %s6882_s22, 3  ;;  %s7641_s20 = smov 80  }
  0xff   : > { %v6920_v25 = vsub.s32 0, %v6917_v22  ;;  %s7655_s2 = smov 112   ;;  %s7639_s1 = smov 72  }
 0x100   : > { %s832_s3 = scalar_lea.vmem %s7699_s23, %s6885_s26  ;;  %s7651_s21 = smov 104  }
 0x101   : > { %v6891_v0 = vld [vmem:[%s832_s3] sm:$0xff]  ;;  %s7701_s5 = smov %s7700_s29  ;;  %v866_v27 = vrot.slane %v6925_v26, %v6920_v25  ;;  %v881_v30 = vrot.slane %v6932_v28, %v6920_v25  ;;  %s7703_s30 = sld [smem:[#allocation34_spill]] }
 0x102   : > { %v851_v1 = vsel %vm850_vm0, %v6891_v0, 0.0  ;;  %v883_v7 = vld [vmem:[%s7700_s29] sm:$0xff]  ;;  %v884_v8 = vld [vmem:[%s7701_s5 + $0x8] sm:$0xff]  ;;  %v885_v9 = vld [vmem:[%s7701_s5 + $0x10] sm:$0xff]  ;;  %s7653_s29 = smov 120   ;;  %s7637_s3 = smov 64  }
 0x103   : > { %852 = vadd.xlane.f32.xlu0 %v851_v1  ;;  %v5809_v11 = vpack.c.bf16 %v884_v8, %v883_v7  ;;  %v886_v12 = vld [vmem:[%s7701_s5 + $0x18] sm:$0xff]  ;;  %v5230_v34 = vld [vmem:[%s7702_s27] ss:$0 sm:$0xff]  ;;  %s7636_s24 = smov 48   ;;  %s7635_s25 = smov 40  }
 0x104   : > { %v5812_v14 = vpack.c.bf16 %v886_v12, %v885_v9  ;;  %s7638_s0 = smov 56   ;;  %s7705_s7 = sld [smem:[#allocation38_spill]] }
 0x105   : > { %5810 = vmatpush3.bf16.msra.mxu1 %v5809_v11  ;;  %s7716_s9 = smov 88  }
 0x106   : > { %5811 = vmatprep.subr.bf16.mxu1 %v6458_v10 }
 0x107   : > { %s843_s23 = scalar_lea.vmem %s7703_s30, %s6885_s26  ;;  %s7713_s30 = smov 8  }
 0x108   : > { %v6983_v45 = vld [vmem:[%s843_s23] sm:$0xff]  ;;  %s7706_s23 = sld [smem:[#allocation32_spill]] }
 0x109   : > { %5813 = vmatpush3.bf16.msra.mxu1 %v5812_v14  ;;  %vm1046_vm5 = vcmp.eq.f32.partialorder %v6983_v45, 0.0 }
 0x10a   : > { %5489 = vmatprep.subr.mxu1 %v6460_v13 }
 0x190   : > { %v853_v2 = vpop.xlane.xlu0 %852 }
 0x191   : > { %v855_v3 = vmul.f32 0.03125, %v853_v2 }
 0x193   : > { %v856_v4 = vsub.f32 %v6891_v0, %v855_v3 }
 0x195   : > { %v857_v5 = vmul.f32 %v856_v4, %v856_v4  ;;  %v867_v29 = vmul.f32 %v866_v27, %v856_v4 }
 0x197   : > { %v858_v6 = vsel %vm850_vm0, %v857_v5, 0.0 }
 0x198   : > { %859 = vadd.xlane.f32.xlu0 %v858_v6 }
 0x225   : > { %v860_v15 = vpop.xlane.xlu0 %859 }
 0x226   : > { %v862_v16 = vmul.f32 0.032258064, %v860_v15 }
 0x228   : > { %6046 = vrsqrt.f32 %v862_v16  ;;  %vm870_vm2 = vcmp.eq.f32.partialorder %v862_v16, inf  ;;  %v873_v20 = vand.u32 2147483648, %v862_v16  ;;  %vm872_vm3 = vcmp.eq.f32.partialorder %v862_v16, 0.0 }
 0x232   : > { %v6047_v17 = vpop.eup %6046 }
 0x233   : > { %v869_v19 = vmul.f32 %v6047_v17, %v862_v16 }
 0x235   : > { %v871_v21 = vsel %vm870_vm2, %v862_v16, %v869_v19 }
 0x236   : > { %v874_v23 = vsel %vm872_vm3, %v873_v20, %v871_v21 }
 0x237   : > { %v875_v24 = vadd.f32 1e-06, %v874_v23 }
 0x239   : > { %6048 = vrcp.f32 %v875_v24 }
 0x243   : > { %v6049_v31 = vpop.eup %6048 }
 0x244   : > { %v877_v32 = vmul.f32 %v6049_v31, %v867_v29 }
 0x246   : > { %v882_v33 = vadd.f32 %v881_v30, %v877_v32 }
 0x248   : > { %5487 = vmatmul.mubr.msk.f32.vlgmr.msra.gmra.mrb[0].mxu1 %vm850_vm0, %v882_v33 }
 0x249   : > { %5491 = vmatprep.mubr.msk.f32.mxu1 %vm6459_vm1, %v6460_v13 }
 0x31b   : > { %v963_v35 = vpop.f32.mrb[0].mxu1 }
 0x31c   : > { %v6942_v36 = vadd.f32 %v5230_v34, %v963_v35  ;;  %v5488_v37 = vpop.f32.mrb[1].mxu1 }
 0x31e   : > { %1135 = vrot.lane.b32.xlu0 %v6942_v36, %s7653_s29  ;;  %968 = vrot.lane.b32.xlu1 %v6942_v36, %s7643_s28  ;;  %s836_s28 = scalar_lea.vmem %s7706_s23, %s6885_s26  ;;  %s7714_s23 = smov 16  }
 0x31f   : > { %s7722_s26 = smov 48  }
 0x322   : > { %1137 = vrot.lane.b32.xlu1 %v6942_v36, %s7657_s6 }
 0x326   : > { %1304 = vrot.lane.b32.xlu1 %v6942_v36, %s7641_s20  ;;  %s7711_s20 = smov 80  }
 0x32a   : > { %1302 = vrot.lane.b32.xlu1 %v6942_v36, %s7655_s2 }
 0x32e   : > { %1471 = vrot.lane.b32.xlu1 %v6942_v36, %s7639_s1  ;;  %s7645_s1 = smov 24  }
 0x332   : > { %1469 = vrot.lane.b32.xlu1 %v6942_v36, %s7651_s21 }
 0x390   : > { %v969_v38 = vpop.permute.xlu1 %968  ;;  %v1136_v40 = vpop.permute.xlu0 %1135 }
 0x391   : > { %5490 = vmatpush3.xpose.msk.msra.mxu1 %vm970_vm4, %v969_v38 }
 0x392   : > { %5494 = vmatprep.subr.mxu1 %v6460_v13 }
 0x394   : > { %5492 = vmatmul.mubr.msk.f32.vlgmr.msra.gmra.mrb[2].mxu1 %vm970_vm4, %v6942_v36  ;;  %v1138_v39 = vpop.permute.xlu1 %1137 }
 0x395   : > { %5500 = vmatpush3.xpose.msk.msra.mxu0 %vm970_vm4, %v1138_v39  ;;  %5496 = vmatprep.mubr.msk.f32.mxu1 %vm6459_vm1, %v6460_v13 }
 0x396   : > { %5509 = vmatprep.subr.mxu0 %v6460_v13 }
 0x398   : > { %5502 = vmatmul.mubr.msk.f32.vlgmr.msra.gmra.mrb[0].mxu0 %vm970_vm4, %v1136_v40  ;;  %v1305_v41 = vpop.permute.xlu1 %1304 }
 0x399   : > { %5510 = vmatpush3.xpose.msk.msra.mxu0 %vm970_vm4, %v1305_v41  ;;  %5511 = vmatprep.mubr.msk.f32.mxu0 %vm6459_vm1, %v6460_v13 }
 0x39a   : > { %5519 = vmatprep.subr.mxu0 %v6460_v13 }
 0x39c   : > { %v1303_v42 = vpop.permute.xlu1 %1302 }
 0x39d   : > { %5512 = vmatmul.mubr.msk.f32.vlgmr.msra.gmra.mrb[2].mxu0 %vm970_vm4, %v1303_v42 }
 0x39e   : > { %5521 = vmatprep.mubr.msk.f32.mxu0 %vm6459_vm1, %v6460_v13 }
 0x3a0   : > { %v1472_v43 = vpop.permute.xlu1 %1471 }
 0x3a1   : > { %5520 = vmatpush3.xpose.msk.msra.mxu0 %vm970_vm4, %v1472_v43 }
 0x3a2   : > { %5814 = vmatprep.subr.bf16.mxu0 %v6458_v10 }
 0x3a4   : > { %v1470_v44 = vpop.permute.xlu1 %1469 }
 0x3a5   : > { %5522 = vmatmul.mubr.msk.f32.vlgmr.msra.gmra.mrb[4].mxu0 %vm970_vm4, %v1470_v44 }
 0x3a6   : > { %5537 = vmatprep.mubr.msk.f32.mxu0 %vm6459_vm1, %v6460_v13 }
 0x467   : > { %v1041_v46 = vpop.f32.mrb[2].mxu1 }
 0x468   : > { %v1045_v47 = vmul.f32 0.35355338, %v1041_v46  ;;  %v5493_v48 = vpop.f32.mrb[3].mxu1 }
 0x46a   : > { %v1047_v49 = vsel %vm1046_vm5, -1e+09, %v1045_v47 }
 0x46b   : > { %v1209_v50 = vpop.f32.mrb[0].mxu0  ;;  %v1048_v51 = vsel %vm970_vm4, %v1047_v49, -inf }
 0x46c   : > { %v1213_v52 = vmul.f32 0.35355338, %v1209_v50  ;;  %v5503_v53 = vpop.f32.mrb[1].mxu0  ;;  %1049 = vmax.xlane.f32.xlu1 %v1048_v51 }
 0x46e   : > { %v1214_v54 = vsel %vm1046_vm5, -1e+09, %v1213_v52 }
 0x46f   : > { %v1215_v55 = vsel %vm970_vm4, %v1214_v54, -inf }
 0x470   : > { %1216 = vmax.xlane.f32.xlu0 %v1215_v55  ;;  %v1376_v56 = vpop.f32.mrb[2].mxu0 }
 0x471   : > { %v1380_v57 = vmul.f32 0.35355338, %v1376_v56  ;;  %v5513_v58 = vpop.f32.mrb[3].mxu0 }
 0x473   : > { %v1381_v59 = vsel %vm1046_vm5, -1e+09, %v1380_v57 }
 0x474   : > { %v1382_v60 = vsel %vm970_vm4, %v1381_v59, -inf }
 0x475   : > { %1383 = vmax.xlane.f32.xlu1 %v1382_v60 }
 0x478   : > { %v1543_v61 = vpop.f32.mrb[4].mxu0 }
 0x479   : > { %v1547_v62 = vmul.f32 0.35355338, %v1543_v61  ;;  %v5523_v63 = vpop.f32.mrb[5].mxu0 }
 0x47b   : > { %v1548_v1 = vsel %vm1046_vm5, -1e+09, %v1547_v62 }
 0x47c   : > { %v1549_v2 = vsel %vm970_vm4, %v1548_v1, -inf }
 0x47d   : > { %1550 = vmax.xlane.f32.xlu0 %v1549_v2 }
 0x486   : > { %1059 = vrot.lane.b32.xlu1 %v6942_v36, %s7637_s3  ;;  %s7649_s3 = smov 8  }
 0x4f9   : > { %v1050_v3 = vpop.xlane.xlu1 %1049 }
 0x4fa   : > { %v1051_v4 = vsub.f32 %v1047_v49, %v1050_v3 }
 0x4fc   : > { %v1052_v5 = vmul.f32 1.442695, %v1051_v4  ;;  %v5245_v4 = vld [vmem:[%s7705_s7] ss:$0 sm:$0xff] }
 0x4fd   : > { %v1217_v6 = vpop.xlane.xlu0 %1216 }
 0x4fe   : > { %6050 = vpow2.f32 %v1052_v5  ;;  %v1218_v7 = vsub.f32 %v1214_v54, %v1217_v6 }
 0x500   : > { %v1219_v8 = vmul.f32 1.442695, %v1218_v7 }
 0x502   : > { %6052 = vpow2.f32 %v1219_v8  ;;  %v1384_v9 = vpop.xlane.xlu1 %1383 }
 0x503   : > { %v1385_v11 = vsub.f32 %v1381_v59, %v1384_v9 }
 0x505   : > { %v1386_v12 = vmul.f32 1.442695, %v1385_v11 }
 0x506   : > { %v1060_v14 = vpop.permute.xlu1 %1059 }
 0x507   : > { %6054 = vpow2.f32 %v1386_v12  ;;  %5495 = vmatpush3.msra.mxu1 %v1060_v14 }
 0x508   : > { %v6051_v15 = vpop.eup %6050  ;;  %5504 = vmatprep.subr.mxu1 %v6460_v13 }
 0x509   : > { %v1054_v16 = vsel %vm970_vm4, %v6051_v15, 0.0 }
 0x50a   : > { %v1551_v17 = vpop.xlane.xlu0 %1550  ;;  %1055 = vadd.xlane.f32.xlu1 %v1054_v16  ;;  %v1853_v16 = vld [vmem:[#allocation5] sm:$0xff] }
 0x50b   : > { %v1552_v18 = vsub.f32 %v1548_v1, %v1551_v17  ;;  %v1854_v17 = vld [vmem:[#allocation5 + $0x8] sm:$0xff] }
 0x50c   : > { %v6053_v19 = vpop.eup %6052 }
 0x50d   : > { %v1553_v20 = vmul.f32 1.442695, %v1552_v18  ;;  %v1221_v21 = vsel %vm970_vm4, %v6053_v19, 0.0  ;;  %v5827_v18 = vpack.c.bf16 %v1854_v17, %v1853_v16 }
 0x50e   : > { %1222 = vadd.xlane.f32.xlu0 %v1221_v21  ;;  %v1856_v21 = vld [vmem:[#allocation5 + $0x18] sm:$0xff] }
 0x50f   : > { %6056 = vpow2.f32 %v1553_v20  ;;  %v1855_v20 = vld [vmem:[#allocation5 + $0x10] sm:$0xff] }
 0x511   : > { %v6055_v23 = vpop.eup %6054 }
 0x512   : > { %v1388_v24 = vsel %vm970_vm4, %v6055_v23, 0.0 }
 0x513   : > { %1389 = vadd.xlane.f32.xlu1 %v1388_v24  ;;  %v1771_v24 = vld [vmem:[%s7604_s8 + $0x10] sm:$0xff] }
 0x519   : > { %v6057_v27 = vpop.eup %6056 }
 0x51a   : > { %v1555_v29 = vsel %vm970_vm4, %v6057_v27, 0.0 }
 0x51b   : > { %1556 = vadd.xlane.f32.xlu0 %v1555_v29  ;;  %v5830_v29 = vpack.c.bf16 %v1856_v21, %v1855_v20 }
 0x524   : > { %1393 = vrot.lane.b32.xlu1 %v6942_v36, %s7636_s24  ;;  %s7647_s24 = smov 16  }
 0x528   : > { %1560 = vrot.lane.b32.xlu1 %v6942_v36, %s7635_s25  ;;  %s7704_s25 = sld [smem:[#allocation37_spill]] }
 0x52e   : > { %v1653_v46 = vld [vmem:[%s7704_s25] sm:$0xff]  ;;  %v1654_v47 = vld [vmem:[%s7704_s25 + $0x8] sm:$0xff]  ;;  %v1655_v51 = vld [vmem:[%s7704_s25 + $0x10] sm:$0xff] }
 0x52f   : > { %v5815_v48 = vpack.c.bf16 %v1654_v47, %v1653_v46  ;;  %v1656_v52 = vld [vmem:[%s7704_s25 + $0x18] sm:$0xff] }
 0x530   : > { %v5818_v53 = vpack.c.bf16 %v1656_v52, %v1655_v51 }
 0x531   : > { %1226 = vrot.lane.b32.xlu0 %v6942_v36, %s7638_s0  ;;  %5816 = vmatpush3.bf16.msra.mxu0 %v5815_v48  ;;  %v5248_v48 = vld [vmem:[#allocation7] ss:$0 sm:$0xff]  ;;  %s7712_s0 = smov 72  }
 0x532   : > { %5817 = vmatprep.subr.bf16.mxu0 %v6458_v10 }
 0x535   : > { %5819 = vmatpush3.bf16.msra.mxu0 %v5818_v53  ;;  %v5246_v53 = vld [vmem:[#allocation2] ss:$0 sm:$0xff] }
 0x536   : > { %5826 = vmatprep.subr.bf16.mxu0 %v6458_v10 }
 0x597   : > { %v1056_v30 = vpop.xlane.xlu1 %1055 }
 0x598   : > { %6058 = vrcp.f32 %v1056_v30 }
 0x59b   : > { %v1223_v31 = vpop.xlane.xlu0 %1222 }
 0x59c   : > { %6060 = vrcp.f32 %v1223_v31  ;;  %v7077_v31 = vld [vmem:[%s836_s28] sm:$0xff]  ;;  %s7715_s28 = smov 24  }
 0x5a0   : > { %v1390_v32 = vpop.xlane.xlu1 %1389 }
 0x5a1   : > { %6062 = vrcp.f32 %v1390_v32 }
 0x5a2   : > { %v6059_v33 = vpop.eup %6058 }
 0x5a3   : > { %v1058_v34 = vmul.f32 %v6059_v33, %v6051_v15 }
 0x5a4   : > { %v1394_v39 = vpop.permute.xlu1 %1393 }
 0x5a5   : > { %5497 = vmatmul.mubr.msk.f32.vlgmr.msra.gmra.mrb[4].mxu1 %vm970_vm4, %v1058_v34 }
 0x5a6   : > { %5506 = vmatprep.mubr.msk.f32.mxu1 %vm6459_vm1, %v6460_v13  ;;  %v6061_v37 = vpop.eup %6060 }
 0x5a7   : > { %v1225_v38 = vmul.f32 %v6061_v37, %v6053_v19  ;;  %v1770_v19 = vld [vmem:[%s7604_s8 + $0x8] sm:$0xff] }
 0x5a8   : > { %v1557_v35 = vpop.xlane.xlu0 %1556  ;;  %v1561_v42 = vpop.permute.xlu1 %1560 }
 0x5a9   : > { %6064 = vrcp.f32 %v1557_v35 }
 0x5ab   : > { %v6063_v36 = vpop.eup %6062 }
 0x5ac   : > { %v1227_v40 = vpop.permute.xlu0 %1226  ;;  %v1392_v41 = vmul.f32 %v6063_v36, %v6055_v23  ;;  %v7086_v36 = vsub.s32 1, %v6917_v22 }
 0x5ad   : > { %5505 = vmatpush3.msra.mxu1 %v1227_v40 }
 0x5ae   : > { %5507 = vmatmul.mubr.msk.f32.vlgmr.msra.gmra.mrb[6].mxu1 %vm970_vm4, %v1225_v38  ;;  %5514 = vmatprep.subr.mxu1 %v6460_v13 }
 0x5af   : > { %5515 = vmatpush3.msra.mxu1 %v1394_v39  ;;  %5516 = vmatprep.mubr.msk.f32.mxu1 %vm6459_vm1, %v6460_v13 }
 0x5b0   : > { %5524 = vmatprep.subr.mxu1 %v6460_v13 }
 0x5b2   : > { %5517 = vmatmul.mubr.msk.f32.vlgmr.msra.gmra.mrb[8].mxu1 %vm970_vm4, %v1392_v41  ;;  %v1752_v41 = vrot.slane %v6925_v26, %v7086_v36 }
 0x5b3   : > { %v6065_v43 = vpop.eup %6064  ;;  %5525 = vmatpush3.msra.mxu1 %v1561_v42  ;;  %5526 = vmatprep.mubr.msk.f32.mxu1 %vm6459_vm1, %v6460_v13 }
 0x5b4   : > { %v1559_v44 = vmul.f32 %v6065_v43, %v6057_v27  ;;  %5820 = vmatprep.subr.bf16.mxu1 %v6458_v10  ;;  %v1772_v27 = vld [vmem:[%s7604_s8 + $0x18] sm:$0xff]  ;;  %v1767_v43 = vrot.slane %v6932_v28, %v7086_v36 }
 0x5b5   : > { %v5824_v30 = vpack.c.bf16 %v1772_v27, %v1771_v24 }
 0x5b6   : > { %5527 = vmatmul.mubr.msk.f32.vlgmr.msra.gmra.mrb[10].mxu1 %vm970_vm4, %v1559_v44 }
 0x5b7   : > { %5548 = vmatprep.mubr.msk.f32.mxu1 %vm6459_vm1, %v6460_v13 }
 0x678   : > { %v1131_v49 = vpop.f32.mrb[4].mxu1 }
 0x679   : > { %v5498_v50 = vpop.f32.mrb[5].mxu1 }
 0x681   : > { %v1298_v54 = vpop.f32.mrb[6].mxu1 }
 0x682   : > { %1637 = vrot.lane.b32.xlu0 %v1298_v54, %s7649_s3  ;;  %v5508_v55 = vpop.f32.mrb[7].mxu1  ;;  %s7723_s3 = smov 40  }
 0x685   : > { %v1465_v56 = vpop.f32.mrb[8].mxu1 }
 0x686   : > { %1641 = vrot.lane.b32.xlu1 %v1465_v56, %s7647_s24  ;;  %v5518_v57 = vpop.f32.mrb[9].mxu1  ;;  %s7707_s24 = sld [smem:[#allocation33_spill]] }
 0x689   : > { %v1632_v58 = vpop.f32.mrb[10].mxu1 }
 0x68a   : > { %1645 = vrot.lane.b32.xlu0 %v1632_v58, %s7645_s1  ;;  %v5528_v59 = vpop.f32.mrb[11].mxu1 }
 0x68c   : > { %s839_s1 = scalar_lea.vmem %s7707_s24, %s6882_s22  ;;  %s7710_s22 = smov 96  }
 0x6f4   : > { %v1638_v60 = vpop.permute.xlu0 %1637 }
 0x6f5   : > { %v1648_v62 = vsel %vm970_vm4, %v1131_v49, %v1638_v60 }
 0x6f8   : > { %v1642_v61 = vpop.permute.xlu1 %1641 }
 0x6f9   : > { %v1650_v63 = vsel %vm1649_vm6, %v1648_v62, %v1642_v61  ;;  %v846_v62 = vld [vmem:[%s839_s1] sm:$0x1]  ;;  %s7721_s1 = smov 64  }
 0x6fa   : > { %vm2014_vm10 = vcmp.eq.f32.partialorder %v846_v62, 0.0 }
 0x6fc   : > { %v1646_v1 = vpop.permute.xlu0 %1645 }
 0x6fd   : > { %v1652_v2 = vsel %vm1651_vm7, %v1650_v63, %v1646_v1  ;;  %v6475_v63 = vmov 0  }
 0x6fe   : > { %5538 = vmatmul.mubr.msk.f32.vlgmr.msra.gmra.mrb[6].mxu0 %vm850_vm0, %v1652_v2  ;;  %v2015_v1 = vsel %vm2014_vm10, 1, %v6475_v63 }
 0x6ff   : > { %5559 = vmatprep.mubr.msk.f32.mxu0 %vm6459_vm1, %v6460_v13  ;;  %5828 = vmatpush3.bf16.msra.mxu0 %v5827_v18  ;;  %v2019_v2 = vrot.slane %v2015_v1, %v6920_v25 }
 0x700   : > { %5829 = vmatprep.subr.bf16.mxu0 %v6458_v10 }
 0x701   : > { %vm7132_vm11 = vcmp.eq.s32.totalorder %v2019_v2, 1 }
 0x703   : > { %5831 = vmatpush3.bf16.msra.mxu0 %v5830_v29 }
 0x704   : > { %5572 = vmatprep.subr.mxu0 %v6460_v13 }
 0x706   : > { %5560 = vmatmul.mubr.msk.f32.vlgmr.msra.gmra.mrb[8].mxu0 %vm850_vm0, %v7077_v31 }
 0x707   : > { %5574 = vmatprep.mubr.msk.f32.mxu0 %vm6459_vm1, %v6460_v13 }
 0x7d1   : > { %v1726_v3 = vpop.f32.mrb[6].mxu0 }
 0x7d2   : > { %v1730_v5 = vadd.f32 %v1726_v3, %v6891_v0  ;;  %v5539_v6 = vpop.f32.mrb[7].mxu0  ;;  %v1769_v0 = vld [vmem:[%s7604_s8] sm:$0xff] }
 0x7d3   : > { %v5821_v23 = vpack.c.bf16 %v1770_v19, %v1769_v0 }
 0x7d4   : > { %v7053_v7 = vadd.f32 %v5245_v4, %v1730_v5 }
 0x7d5   : > { %5822 = vmatpush3.bf16.msra.mxu1 %v5821_v23 }
 0x7d6   : > { %v1739_v8 = vsel %vm850_vm0, %v7053_v7, 0.0  ;;  %5823 = vmatprep.subr.bf16.mxu1 %v6458_v10 }
 0x7d7   : > { %1740 = vadd.xlane.f32.xlu1 %v1739_v8 }
 0x7d9   : > { %5825 = vmatpush3.bf16.msra.mxu1 %v5824_v30  ;;  %v1933_v49 = vpop.f32.mrb[8].mxu0 }
 0x7da   : > { %5562 = vmatprep.subr.mxu1 %v6460_v13  ;;  %v7095_v50 = vadd.f32 %v5248_v48, %v1933_v49  ;;  %v5561_v51 = vpop.f32.mrb[9].mxu0 }
 0x864   : > { %v1741_v9 = vpop.xlane.xlu1 %1740 }
 0x865   : > { %v1742_v11 = vmul.f32 0.03125, %v1741_v9 }
 0x867   : > { %v1743_v12 = vsub.f32 %v7053_v7, %v1742_v11 }
 0x869   : > { %v1744_v14 = vmul.f32 %v1743_v12, %v1743_v12  ;;  %v1753_v42 = vmul.f32 %v1752_v41, %v1743_v12 }
 0x86b   : > { %v1745_v15 = vsel %vm850_vm0, %v1744_v14, 0.0 }
 0x86c   : > { %1746 = vadd.xlane.f32.xlu0 %v1745_v15 }
 0x882   : > { %2111 = vrot.lane.b32.xlu0 %v7095_v50, %s7653_s29 }
 0x8f9   : > { %v1747_v32 = vpop.xlane.xlu0 %1746 }
 0x8fa   : > { %v1748_v33 = vmul.f32 0.032258064, %v1747_v32 }
 0x8fc   : > { %6066 = vrsqrt.f32 %v1748_v33  ;;  %vm1756_vm8 = vcmp.eq.f32.partialorder %v1748_v33, inf  ;;  %v1759_v37 = vand.u32 2147483648, %v1748_v33  ;;  %vm1758_vm9 = vcmp.eq.f32.partialorder %v1748_v33, 0.0 }
 0x8fd   : > { %v2112_v52 = vpop.permute.xlu0 %2111 }
 0x8fe   : > { %5573 = vmatpush3.xpose.msk.msra.mxu0 %vm970_vm4, %v2112_v52 }
 0x8ff   : > { %5582 = vmatprep.subr.mxu0 %v6460_v13 }
 0x906   : > { %v6067_v34 = vpop.eup %6066 }
 0x907   : > { %v1755_v35 = vmul.f32 %v6067_v34, %v1748_v33 }
 0x909   : > { %v1757_v38 = vsel %vm1756_vm8, %v1748_v33, %v1755_v35 }
 0x90a   : > { %v1760_v39 = vsel %vm1758_vm9, %v1759_v37, %v1757_v38 }
 0x90b   : > { %v1761_v40 = vadd.f32 1e-06, %v1760_v39 }
 0x90d   : > { %6068 = vrcp.f32 %v1761_v40 }
 0x917   : > { %v6069_v44 = vpop.eup %6068 }
 0x918   : > { %v1763_v46 = vmul.f32 %v6069_v44, %v1753_v42 }
 0x91a   : > { %v1768_v47 = vadd.f32 %v1767_v43, %v1763_v46 }
 0x91c   : > { %5549 = vmatmul.mubr.msk.f32.vlgmr.msra.gmra.mrb[12].mxu1 %vm850_vm0, %v1768_v47 }
 0x91d   : > { %5564 = vmatprep.mubr.msk.f32.mxu1 %vm6459_vm1, %v6460_v13  ;;  %5563 = vmatpush3.xpose.msk.msra.mxu1 %vm970_vm4, %v7095_v50 }
 0x91e   : > { %5567 = vmatprep.subr.mxu1 %v6460_v13 }
 0x9ef   : > { %v1849_v54 = vpop.f32.mrb[12].mxu1 }
 0x9f0   : > { %v1850_v55 = vadd.f32 %v5246_v53, %v1849_v54  ;;  %v5550_v56 = vpop.f32.mrb[13].mxu1 }
 0x9f2   : > { %2276 = vrot.lane.b32.xlu0 %v1850_v55, %s7655_s2  ;;  %2109 = vrot.lane.b32.xlu1 %v1850_v55, %s7653_s29  ;;  %s7717_s29 = smov 112  }
 0x9f3   : > { %5565 = vmatmul.mubr.msk.f32.vlgmr.msra.gmra.mrb[14].mxu1 %vm970_vm4, %v1850_v55 }
 0x9f4   : > { %5569 = vmatprep.mubr.msk.f32.mxu1 %vm6459_vm1, %v6460_v13 }
 0x9f6   : > { %2443 = vrot.lane.b32.xlu0 %v1850_v55, %s7651_s21  ;;  %2278 = vrot.lane.b32.xlu1 %v7095_v50, %s7655_s2  ;;  %s7719_s2 = smov 104  }
 0x9fa   : > { %2445 = vrot.lane.b32.xlu1 %v7095_v50, %s7651_s21  ;;  %s7720_s21 = smov 56  }
 0xa64   : > { %v2110_v57 = vpop.permute.xlu1 %2109  ;;  %v2277_v59 = vpop.permute.xlu0 %2276 }
 0xa65   : > { %5575 = vmatmul.mubr.msk.f32.vlgmr.msra.gmra.mrb[10].mxu0 %vm970_vm4, %v2110_v57 }
 0xa66   : > { %5584 = vmatprep.mubr.msk.f32.mxu0 %vm6459_vm1, %v6460_v13 }
 0xa68   : > { %v2279_v58 = vpop.permute.xlu1 %2278  ;;  %v2444_v61 = vpop.permute.xlu0 %2443 }
 0xa69   : > { %5583 = vmatpush3.xpose.msk.msra.mxu0 %vm970_vm4, %v2279_v58 }
 0xa6a   : > { %5592 = vmatprep.subr.mxu0 %v6460_v13 }
 0xa6c   : > { %5585 = vmatmul.mubr.msk.f32.vlgmr.msra.gmra.mrb[12].mxu0 %vm970_vm4, %v2277_v59  ;;  %v2446_v60 = vpop.permute.xlu1 %2445 }
 0xa6d   : > { %5593 = vmatpush3.xpose.msk.msra.mxu0 %vm970_vm4, %v2446_v60  ;;  %5594 = vmatprep.mubr.msk.f32.mxu0 %vm6459_vm1, %v6460_v13 }
 0xa6e   : > { %5832 = vmatprep.subr.bf16.mxu0 %v6458_v10 }
 0xa70   : > { %5595 = vmatmul.mubr.msk.f32.vlgmr.msra.gmra.mrb[14].mxu0 %vm970_vm4, %v2444_v61 }
 0xa71   : > { %5610 = vmatprep.mubr.msk.f32.mxu0 %vm6459_vm1, %v6460_v13 }
 0xac6   : > { %v2009_v4 = vpop.f32.mrb[14].mxu1 }
 0xac7   : > { %v2013_v5 = vmul.f32 0.35355338, %v2009_v4  ;;  %v5566_v6 = vpop.f32.mrb[15].mxu1 }
 0xac9   : > { %v2021_v8 = vsel %vm7132_vm11, -1e+09, %v2013_v5 }
 0xaca   : > { %v2022_v9 = vsel %vm970_vm4, %v2021_v8, -inf }
 0xacb   : > { %2023 = vmax.xlane.f32.xlu1 %v2022_v9 }
 0xb38   : > { %v2183_v11 = vpop.f32.mrb[10].mxu0 }
 0xb39   : > { %v2187_v12 = vmul.f32 0.35355338, %v2183_v11  ;;  %v5576_v14 = vpop.f32.mrb[11].mxu0  ;;  %v2625_v11 = vld [vmem:[#allocation8] sm:$0xff] }
 0xb3b   : > { %v2188_v15 = vsel %vm7132_vm11, -1e+09, %v2187_v12  ;;  %v2626_v12 = vld [vmem:[#allocation8 + $0x8] sm:$0xff] }
 0xb3c   : > { %v2189_v16 = vsel %vm970_vm4, %v2188_v15, -inf  ;;  %v5833_v14 = vpack.c.bf16 %v2626_v12, %v2625_v11 }
 0xb3d   : > { %2190 = vmax.xlane.f32.xlu0 %v2189_v16  ;;  %v2628_v16 = vld [vmem:[#allocation8 + $0x18] sm:$0xff] }
 0xb3e   : > { %5834 = vmatpush3.bf16.msra.mxu0 %v5833_v14 }
 0xb3f   : > { %v2350_v17 = vpop.f32.mrb[12].mxu0  ;;  %5835 = vmatprep.subr.bf16.mxu0 %v6458_v10 }
 0xb40   : > { %v2354_v0 = vmul.f32 0.35355338, %v2350_v17  ;;  %v5586_v18 = vpop.f32.mrb[13].mxu0 }
 0xb42   : > { %v2355_v19 = vsel %vm7132_vm11, -1e+09, %v2354_v0 }
 0xb43   : > { %v2517_v20 = vpop.f32.mrb[14].mxu0  ;;  %v2356_v21 = vsel %vm970_vm4, %v2355_v19, -inf }
 0xb44   : > { %v2521_v23 = vmul.f32 0.35355338, %v2517_v20  ;;  %2357 = vmax.xlane.f32.xlu0 %v2356_v21  ;;  %v5596_v24 = vpop.f32.mrb[15].mxu0 }
 0xb46   : > { %v2522_v27 = vsel %vm7132_vm11, -1e+09, %v2521_v23 }
 0xb47   : > { %v2523_v29 = vsel %vm970_vm4, %v2522_v27, -inf }
 0xb48   : > { %2524 = vmax.xlane.f32.xlu1 %v2523_v29 }
 0xb58   : > { %v2024_v30 = vpop.xlane.xlu1 %2023 }
 0xb59   : > { %v2025_v32 = vsub.f32 %v2021_v8, %v2024_v30  ;;  %2200 = vrot.lane.b32.xlu1 %v7095_v50, %s7657_s6  ;;  %s7718_s6 = smov 120  }
 0xb5b   : > { %v2026_v33 = vmul.f32 1.442695, %v2025_v32 }
 0xb5d   : > { %6070 = vpow2.f32 %v2026_v33 }
 0xb67   : > { %v6071_v34 = vpop.eup %6070 }
 0xb68   : > { %v2028_v35 = vsel %vm970_vm4, %v6071_v34, 0.0 }
 0xb69   : > { %2029 = vadd.xlane.f32.xlu0 %v2028_v35  ;;  %v5263_v35 = vld [vmem:[#allocation10] ss:$0 sm:$0xff] }
 0xb7f   : > { %2033 = vrot.lane.b32.xlu0 %v7095_v50, %s7710_s22 }
 0xbca   : > { %v2191_v37 = vpop.xlane.xlu0 %2190 }
 0xbcb   : > { %v2192_v38 = vsub.f32 %v2188_v15, %v2191_v37  ;;  %v2627_v15 = vld [vmem:[#allocation8 + $0x10] sm:$0xff] }
 0xbcc   : > { %v5836_v17 = vpack.c.bf16 %v2628_v16, %v2627_v15 }
 0xbcd   : > { %v2193_v39 = vmul.f32 1.442695, %v2192_v38 }
 0xbce   : > { %5837 = vmatpush3.bf16.msra.mxu0 %v5836_v17 }
 0xbcf   : > { %6072 = vpow2.f32 %v2193_v39  ;;  %5844 = vmatprep.subr.bf16.mxu0 %v6458_v10 }
 0xbd1   : > { %v2358_v40 = vpop.xlane.xlu0 %2357 }
 0xbd2   : > { %v2359_v41 = vsub.f32 %v2355_v19, %v2358_v40 }
 0xbd4   : > { %v2360_v42 = vmul.f32 1.442695, %v2359_v41 }
 0xbd5   : > { %v2525_v43 = vpop.xlane.xlu1 %2524 }
 0xbd6   : > { %6074 = vpow2.f32 %v2360_v42  ;;  %v2526_v44 = vsub.f32 %v2522_v27, %v2525_v43 }
 0xbd8   : > { %v2527_v46 = vmul.f32 1.442695, %v2526_v44 }
 0xbd9   : > { %v6073_v47 = vpop.eup %6072  ;;  %v2201_v58 = vpop.permute.xlu1 %2200 }
 0xbda   : > { %6076 = vpow2.f32 %v2527_v46  ;;  %v2195_v48 = vsel %vm970_vm4, %v6073_v47, 0.0 }
 0xbdb   : > { %2196 = vadd.xlane.f32.xlu1 %v2195_v48  ;;  %v2742_v48 = vld [vmem:[#allocation11 + $0x8] sm:$0xff] }
 0xbe0   : > { %v6075_v49 = vpop.eup %6074 }
 0xbe1   : > { %v2362_v51 = vsel %vm970_vm4, %v6075_v49, 0.0 }
 0xbe2   : > { %2363 = vadd.xlane.f32.xlu0 %v2362_v51 }
 0xbe4   : > { %v6077_v52 = vpop.eup %6076 }
 0xbe5   : > { %v2529_v53 = vsel %vm970_vm4, %v6077_v52, 0.0 }
 0xbe6   : > { %2530 = vadd.xlane.f32.xlu1 %v2529_v53  ;;  %v2826_v53 = vld [vmem:[%s7612_s16] sm:$0xff] }
 0xbf6   : > { %v2030_v54 = vpop.xlane.xlu0 %2029 }
 0xbf7   : > { %6078 = vrcp.f32 %v2030_v54  ;;  %2367 = vrot.lane.b32.xlu1 %v7095_v50, %s7711_s20  ;;  %v2827_v54 = vld [vmem:[%s7612_s16 + $0x8] sm:$0xff] }
 0xbf8   : > { %2534 = vrot.lane.b32.xlu0 %v7095_v50, %s7712_s0 }
 0xbfa   : > { %v2034_v55 = vpop.permute.xlu0 %2033 }
 0xbfb   : > { %5568 = vmatpush3.msra.mxu1 %v2034_v55  ;;  %v2828_v55 = vld [vmem:[%s7612_s16 + $0x10] sm:$0xff] }
 0xbfc   : > { %5577 = vmatprep.subr.mxu1 %v6460_v13 }
 0xc01   : > { %v6079_v56 = vpop.eup %6078 }
 0xc02   : > { %v2032_v57 = vmul.f32 %v6079_v56, %v6071_v34  ;;  %v5845_v56 = vpack.c.bf16 %v2827_v54, %v2826_v53  ;;  %v7261_v53 = vld [vmem:[%s7614_s18 + $0x4] sm:$0x7] }
 0xc03   : > { %v2934_v54 = vrot.slane %v7261_v53, %v6920_v25 }
 0xc04   : > { %5570 = vmatmul.mubr.msk.f32.vlgmr.msra.gmra.mrb[16].mxu1 %vm970_vm4, %v2032_v57  ;;  %v2829_v57 = vld [vmem:[%s7612_s16 + $0x18] sm:$0xff] }
 0xc05   : > { %5578 = vmatpush3.msra.mxu1 %v2201_v58  ;;  %5579 = vmatprep.mubr.msk.f32.mxu1 %vm6459_vm1, %v6460_v13  ;;  %v5848_v58 = vpack.c.bf16 %v2829_v57, %v2828_v55  ;;  %v7268_v55 = vld [vmem:[%s7615_s19 + $0x4] sm:$0x7] }
 0xc06   : > { %5587 = vmatprep.subr.mxu1 %v6460_v13  ;;  %v2949_v57 = vrot.slane %v7268_v55, %v6920_v25 }
 0xc68   : > { %v2197_v59 = vpop.xlane.xlu1 %2196 }
 0xc69   : > { %6080 = vrcp.f32 %v2197_v59  ;;  %v2830_v59 = vld [vmem:[%s7612_s16 + $0x20] sm:$0xff] }
 0xc6f   : > { %v2364_v60 = vpop.xlane.xlu0 %2363 }
 0xc70   : > { %6082 = vrcp.f32 %v2364_v60  ;;  %v2831_v60 = vld [vmem:[%s7612_s16 + $0x28] sm:$0xff] }
 0xc73   : > { %v6081_v50 = vpop.eup %6080  ;;  %v2531_v61 = vpop.xlane.xlu1 %2530 }
 0xc74   : > { %v2199_v62 = vmul.f32 %v6081_v50, %v6073_v47  ;;  %6084 = vrcp.f32 %v2531_v61  ;;  %v2535_v4 = vpop.permute.xlu0 %2534  ;;  %v2741_v47 = vld [vmem:[#allocation11] sm:$0xff]  ;;  %v5851_v50 = vpack.c.bf16 %v2831_v60, %v2830_v59 }
 0xc75   : > { %v5839_v51 = vpack.c.bf16 %v2742_v48, %v2741_v47 }
 0xc76   : > { %5580 = vmatmul.mubr.msk.f32.vlgmr.msra.gmra.mrb[18].mxu1 %vm970_vm4, %v2199_v62 }
 0xc77   : > { %v2368_v63 = vpop.permute.xlu1 %2367  ;;  %5589 = vmatprep.mubr.msk.f32.mxu1 %vm6459_vm1, %v6460_v13 }
 0xc78   : > { %5588 = vmatpush3.msra.mxu1 %v2368_v63 }
 0xc79   : > { %5597 = vmatprep.subr.mxu1 %v6460_v13 }
 0xc7a   : > { %v6083_v1 = vpop.eup %6082 }
 0xc7b   : > { %v2366_v2 = vmul.f32 %v6083_v1, %v6075_v49  ;;  %v2743_v49 = vld [vmem:[#allocation11 + $0x10] sm:$0xff] }
 0xc7d   : > { %5590 = vmatmul.mubr.msk.f32.vlgmr.msra.gmra.mrb[20].mxu1 %vm970_vm4, %v2366_v2 }
 0xc7e   : > { %v6085_v5 = vpop.eup %6084  ;;  %5598 = vmatpush3.msra.mxu1 %v2535_v4  ;;  %5599 = vmatprep.mubr.msk.f32.mxu1 %vm6459_vm1, %v6460_v13 }
 0xc7f   : > { %v2533_v6 = vmul.f32 %v6085_v5, %v6077_v52  ;;  %5838 = vmatprep.subr.bf16.mxu1 %v6458_v10 }
 0xc81   : > { %5600 = vmatmul.mubr.msk.f32.vlgmr.msra.gmra.mrb[22].mxu1 %vm970_vm4, %v2533_v6 }
 0xc82   : > { %5621 = vmatprep.mubr.msk.f32.mxu1 %vm6459_vm1, %v6460_v13  ;;  %5840 = vmatpush3.bf16.msra.mxu1 %v5839_v51 }
 0xc83   : > { %5841 = vmatprep.subr.bf16.mxu1 %v6458_v10 }
 0xcd7   : > { %v2105_v8 = vpop.f32.mrb[16].mxu1 }
 0xcd8   : > { %v5571_v9 = vpop.f32.mrb[17].mxu1 }
 0xd49   : > { %v2272_v0 = vpop.f32.mrb[18].mxu1 }
 0xd4a   : > { %2611 = vrot.lane.b32.xlu1 %v2272_v0, %s7713_s30  ;;  %v5581_v18 = vpop.f32.mrb[19].mxu1 }
 0xd50   : > { %v2439_v19 = vpop.f32.mrb[20].mxu1 }
 0xd51   : > { %2615 = vrot.lane.b32.xlu0 %v2439_v19, %s7714_s23  ;;  %v5591_v20 = vpop.f32.mrb[21].mxu1 }
 0xd54   : > { %v2606_v21 = vpop.f32.mrb[22].mxu1 }
 0xd55   : > { %2619 = vrot.lane.b32.xlu1 %v2606_v21, %s7715_s28  ;;  %v5601_v23 = vpop.f32.mrb[23].mxu1 }
 0xd56   : > { %v5267_v23 = vld [vmem:[#allocation14] ss:$0 sm:$0xff] }
 0xdbc   : > { %v2612_v24 = vpop.permute.xlu1 %2611 }
 0xdbd   : > { %v2622_v29 = vsel %vm970_vm4, %v2105_v8, %v2612_v24  ;;  %v7218_v8 = vsub.s32 2, %v6917_v22  ;;  %v2832_v22 = vld [vmem:[%s7612_s16 + $0x30] sm:$0xff] }
 0xdbf   : > { %v2724_v9 = vrot.slane %v6925_v26, %v7218_v8  ;;  %v2739_v12 = vrot.slane %v6932_v28, %v7218_v8  ;;  %v2833_v26 = vld [vmem:[%s7612_s16 + $0x38] sm:$0xff]  ;;  %v5264_v28 = vld [vmem:[#allocation13] ss:$0 sm:$0xff] }
 0xdc0   : > { %v5854_v17 = vpack.c.bf16 %v2833_v26, %v2832_v22 }
 0xdc3   : > { %v2616_v27 = vpop.permute.xlu0 %2615 }
 0xdc4   : > { %v2623_v30 = vsel %vm1649_vm6, %v2622_v29, %v2616_v27 }
 0xdc7   : > { %v2620_v32 = vpop.permute.xlu1 %2619 }
 0xdc8   : > { %v2624_v33 = vsel %vm1651_vm7, %v2623_v30, %v2620_v32 }
 0xdc9   : > { %5611 = vmatmul.mubr.msk.f32.vlgmr.msra.gmra.mrb[16].mxu0 %vm850_vm0, %v2624_v33 }
 0xdca   : > { %5640 = vmatprep.mubr.msk.f32.mxu0 %vm6459_vm1, %v6460_v13  ;;  %5846 = vmatpush3.bf16.msra.mxu0 %v5845_v56 }
 0xdcb   : > { %5847 = vmatprep.subr.bf16.mxu0 %v6458_v10 }
 0xdce   : > { %5849 = vmatpush3.bf16.msra.mxu0 %v5848_v58 }
 0xdcf   : > { %5850 = vmatprep.subr.bf16.mxu0 %v6458_v10 }
 0xdd2   : > { %5852 = vmatpush3.bf16.msra.mxu0 %v5851_v50  ;;  %v5275_v50 = vld [vmem:[%s7702_s27 + $0x1] ss:$0 sm:$0xff] }
 0xdd3   : > { %5853 = vmatprep.subr.bf16.mxu0 %v6458_v10 }
 0xdd6   : > { %5855 = vmatpush3.bf16.msra.mxu0 %v5854_v17 }
 0xdd7   : > { %5664 = vmatprep.subr.mxu0 %v6460_v13 }
 0xe9c   : > { %v2698_v34 = vpop.f32.mrb[16].mxu0 }
 0xe9d   : > { %v2702_v37 = vadd.f32 %v2698_v34, %v7053_v7  ;;  %v5612_v38 = vpop.f32.mrb[17].mxu0  ;;  %v2744_v7 = vld [vmem:[#allocation11 + $0x18] sm:$0xff] }
 0xe9e   : > { %v5842_v52 = vpack.c.bf16 %v2744_v7, %v2743_v49  ;;  %v5270_v38 = vld [vmem:[%s7701_s5 + $0x20] sm:$0xff] }
 0xe9f   : > { %v7188_v39 = vadd.f32 %v5263_v35, %v2702_v37 }
 0xea0   : > { %5843 = vmatpush3.bf16.msra.mxu1 %v5842_v52 }
 0xea1   : > { %v2711_v40 = vsel %vm850_vm0, %v7188_v39, 0.0  ;;  %5856 = vmatprep.subr.bf16.mxu1 %v6458_v10 }
 0xea2   : > { %2712 = vadd.xlane.f32.xlu0 %v2711_v40  ;;  %v5272_v40 = vld [vmem:[%s7701_s5 + $0x30] sm:$0xff] }
 0xf2f   : > { %v2713_v41 = vpop.xlane.xlu0 %2712 }
 0xf30   : > { %v2714_v42 = vmul.f32 0.03125, %v2713_v41 }
 0xf32   : > { %v2715_v43 = vsub.f32 %v7188_v39, %v2714_v42  ;;  %v5273_v42 = vld [vmem:[%s7701_s5 + $0x38] sm:$0xff] }
 0xf34   : > { %v2716_v44 = vmul.f32 %v2715_v43, %v2715_v43  ;;  %v2725_v11 = vmul.f32 %v2724_v9, %v2715_v43  ;;  %v5860_v43 = vpack.c.bf16 %v5273_v42, %v5272_v40 }
 0xf36   : > { %v2717_v46 = vsel %vm850_vm0, %v2716_v44, 0.0 }
 0xf37   : > { %2718 = vadd.xlane.f32.xlu1 %v2717_v46 }
 0xfc4   : > { %v2719_v61 = vpop.xlane.xlu1 %2718 }
 0xfc5   : > { %v2720_v62 = vmul.f32 0.032258064, %v2719_v61 }
 0xfc7   : > { %6086 = vrsqrt.f32 %v2720_v62  ;;  %vm2728_vm12 = vcmp.eq.f32.partialorder %v2720_v62, inf  ;;  %v2731_v2 = vand.u32 2147483648, %v2720_v62  ;;  %vm2730_vm13 = vcmp.eq.f32.partialorder %v2720_v62, 0.0 }
 0xfd1   : > { %v6087_v63 = vpop.eup %6086 }
 0xfd2   : > { %v2727_v1 = vmul.f32 %v6087_v63, %v2720_v62 }
 0xfd4   : > { %v2729_v4 = vsel %vm2728_vm12, %v2720_v62, %v2727_v1 }
 0xfd5   : > { %v2732_v5 = vsel %vm2730_vm13, %v2731_v2, %v2729_v4 }
 0xfd6   : > { %v2733_v6 = vadd.f32 1e-06, %v2732_v5 }
 0xfd8   : > { %6088 = vrcp.f32 %v2733_v6 }
 0xfe2   : > { %v6089_v14 = vpop.eup %6088 }
 0xfe3   : > { %v2735_v15 = vmul.f32 %v6089_v14, %v2725_v11 }
 0xfe5   : > { %v2740_v16 = vadd.f32 %v2739_v12, %v2735_v15 }
 0xfe7   : > { %5622 = vmatmul.mubr.msk.f32.vlgmr.msra.gmra.mrb[24].mxu1 %vm850_vm0, %v2740_v16 }
 0xfe8   : > { %5651 = vmatprep.mubr.msk.f32.mxu1 %vm6459_vm1, %v6460_v13 }
0x10ba   : > { %v2821_v0 = vpop.f32.mrb[24].mxu1 }
0x10bb   : > { %v2822_v18 = vadd.f32 %v5264_v28, %v2821_v0  ;;  %v5623_v19 = vpop.f32.mrb[25].mxu1 }
0x10bd   : > { %v2825_v20 = vmax.f32 %v2822_v18, 0.0 }
0x10bf   : > { %5641 = vmatmul.mubr.msk.f32.vlgmr.msra.gmra.mrb[18].mxu0 %vm2834_vm14, %v2825_v20 }
0x10c0   : > { %5666 = vmatprep.mubr.msk.f32.mxu0 %vm6459_vm1, %v6460_v13 }
0x1192   : > { %v2904_v21 = vpop.f32.mrb[18].mxu0 }
0x1193   : > { %v2908_v24 = vadd.f32 %v2904_v21, %v7188_v39  ;;  %v5642_v27 = vpop.f32.mrb[19].mxu0  ;;  %v5271_v39 = vld [vmem:[%s7701_s5 + $0x28] sm:$0xff]  ;;  %s7724_s5 = sld [smem:[#allocation24_spill]] }
0x1194   : > { %v5857_v41 = vpack.c.bf16 %v5271_v39, %v5270_v38 }
0x1195   : > { %v7238_v29 = vadd.f32 %v5267_v23, %v2908_v24 }
0x1196   : > { %5858 = vmatpush3.bf16.msra.mxu1 %v5857_v41 }
0x1197   : > { %v2921_v30 = vsel %vm850_vm0, %v7238_v29, 0.0  ;;  %5859 = vmatprep.subr.bf16.mxu1 %v6458_v10 }
0x1198   : > { %2922 = vadd.xlane.f32.xlu0 %v2921_v30 }
0x119a   : > { %5861 = vmatpush3.bf16.msra.mxu1 %v5860_v43 }
0x119b   : > { %5654 = vmatprep.subr.mxu1 %v6460_v13 }
0x1225   : > { %v2923_v32 = vpop.xlane.xlu0 %2922 }
0x1226   : > { %v2924_v33 = vmul.f32 0.03125, %v2923_v32 }
0x1228   : > { %v2925_v34 = vsub.f32 %v7238_v29, %v2924_v33 }
0x122a   : > { %v2926_v35 = vmul.f32 %v2925_v34, %v2925_v34  ;;  %v2935_v56 = vmul.f32 %v2934_v54, %v2925_v34 }
0x122c   : > { %v2927_v37 = vsel %vm850_vm0, %v2926_v35, 0.0 }
0x122d   : > { %2928 = vadd.xlane.f32.xlu0 %v2927_v37 }
0x12ba   : > { %v2929_v44 = vpop.xlane.xlu0 %2928 }
0x12bb   : > { %v2930_v46 = vmul.f32 0.032258064, %v2929_v44 }
0x12bd   : > { %6090 = vrsqrt.f32 %v2930_v46  ;;  %vm2938_vm15 = vcmp.eq.f32.partialorder %v2930_v46, inf  ;;  %v2941_v49 = vand.u32 2147483648, %v2930_v46  ;;  %vm2940_vm2 = vcmp.eq.f32.partialorder %v2930_v46, 0.0 }
0x12c7   : > { %v6091_v47 = vpop.eup %6090 }
0x12c8   : > { %v2937_v48 = vmul.f32 %v6091_v47, %v2930_v46 }
0x12ca   : > { %v2939_v51 = vsel %vm2938_vm15, %v2930_v46, %v2937_v48 }
0x12cb   : > { %v2942_v7 = vsel %vm2940_vm2, %v2941_v49, %v2939_v51 }
0x12cc   : > { %v2943_v52 = vadd.f32 1e-06, %v2942_v7 }
0x12ce   : > { %6092 = vrcp.f32 %v2943_v52 }
0x12d8   : > { %v6093_v58 = vpop.eup %6092 }
0x12d9   : > { %v2945_v59 = vmul.f32 %v6093_v58, %v2935_v56 }
0x12db   : > { %v2950_v60 = vadd.f32 %v2949_v57, %v2945_v59 }
0x12dd   : > { %5652 = vmatmul.mubr.msk.f32.vlgmr.msra.gmra.mrb[26].mxu1 %vm850_vm0, %v2950_v60 }
0x12de   : > { %5656 = vmatprep.mubr.msk.f32.mxu1 %vm6459_vm1, %v6460_v13 }
0x13b0   : > { %v3033_v61 = vpop.f32.mrb[26].mxu1 }
0x13b1   : > { %v7278_v62 = vadd.f32 %v5275_v50, %v3033_v61  ;;  %v5653_v63 = vpop.f32.mrb[27].mxu1 }
0x13b3   : > { %3205 = vrot.lane.b32.xlu0 %v7278_v62, %s7716_s9  ;;  %3038 = vrot.lane.b32.xlu1 %v7278_v62, %s7710_s22 }
0x13b7   : > { %3370 = vrot.lane.b32.xlu0 %v7278_v62, %s7717_s29  ;;  %3203 = vrot.lane.b32.xlu1 %v7278_v62, %s7718_s6 }
0x13bb   : > { %3537 = vrot.lane.b32.xlu0 %v7278_v62, %s7719_s2  ;;  %3372 = vrot.lane.b32.xlu1 %v7278_v62, %s7711_s20 }
0x13bf   : > { %3539 = vrot.lane.b32.xlu1 %v7278_v62, %s7712_s0 }
0x1425   : > { %v3206_v25 = vpop.permute.xlu0 %3205  ;;  %v3039_v1 = vpop.permute.xlu1 %3038 }
0x1426   : > { %5655 = vmatpush3.xpose.msk.msra.mxu1 %vm970_vm4, %v3039_v1  ;;  %5665 = vmatpush3.xpose.msk.msra.mxu0 %vm970_vm4, %v3206_v25 }
0x1427   : > { %5674 = vmatprep.subr.mxu0 %v6460_v13  ;;  %5659 = vmatprep.subr.mxu1 %v6460_v13 }
0x1429   : > { %5657 = vmatmul.mubr.msk.f32.vlgmr.msra.gmra.mrb[28].mxu1 %vm970_vm4, %v7278_v62  ;;  %v3204_v2 = vpop.permute.xlu1 %3203  ;;  %v3371_v5 = vpop.permute.xlu0 %3370 }
0x142a   : > { %5667 = vmatmul.mubr.msk.f32.vlgmr.msra.gmra.mrb[20].mxu0 %vm970_vm4, %v3204_v2  ;;  %5661 = vmatprep.mubr.msk.f32.mxu1 %vm6459_vm1, %v6460_v13 }
0x142b   : > { %5676 = vmatprep.mubr.msk.f32.mxu0 %vm6459_vm1, %v6460_v13 }
0x142d   : > { %v3373_v4 = vpop.permute.xlu1 %3372  ;;  %v3538_v9 = vpop.permute.xlu0 %3537 }
0x142e   : > { %5675 = vmatpush3.xpose.msk.msra.mxu0 %vm970_vm4, %v3373_v4 }
0x142f   : > { %5684 = vmatprep.subr.mxu0 %v6460_v13 }
0x1431   : > { %5677 = vmatmul.mubr.msk.f32.vlgmr.msra.gmra.mrb[22].mxu0 %vm970_vm4, %v3371_v5  ;;  %v3540_v6 = vpop.permute.xlu1 %3539 }
0x1432   : > { %5685 = vmatpush3.xpose.msk.msra.mxu0 %vm970_vm4, %v3540_v6  ;;  %5686 = vmatprep.mubr.msk.f32.mxu0 %vm6459_vm1, %v6460_v13 }
0x1433   : > { %5862 = vmatprep.subr.bf16.mxu0 %v6458_v10 }
0x1435   : > { %5687 = vmatmul.mubr.msk.f32.vlgmr.msra.gmra.mrb[24].mxu0 %vm970_vm4, %v3538_v9 }
0x1436   : > { %5702 = vmatprep.mubr.msk.f32.mxu0 %vm6459_vm1, %v6460_v13 }
0x14fc   : > { %v3110_v11 = vpop.f32.mrb[28].mxu1 }
0x14fd   : > { %v3114_v12 = vmul.f32 0.35355338, %v3110_v11  ;;  %v5658_v14 = vpop.f32.mrb[29].mxu1  ;;  %v3277_v15 = vpop.f32.mrb[20].mxu0 }
0x14fe   : > { %v3281_v16 = vmul.f32 0.35355338, %v3277_v15  ;;  %v5668_v22 = vpop.f32.mrb[21].mxu0  ;;  %v5290_v14 = vld [vmem:[%s7704_s25 + $0x28] sm:$0xff] }
0x14ff   : > { %v3115_v26 = vsel %vm1046_vm5, -1e+09, %v3114_v12  ;;  %v5289_v12 = vld [vmem:[%s7704_s25 + $0x20] sm:$0xff] }
0x1500   : > { %v3116_v17 = vsel %vm970_vm4, %v3115_v26, -inf  ;;  %v3282_v28 = vsel %vm1046_vm5, -1e+09, %v3281_v16  ;;  %v5863_v15 = vpack.c.bf16 %v5290_v14, %v5289_v12  ;;  %v5302_v12 = vld [vmem:[#allocation7 + $0x1] ss:$0 sm:$0xff] }
0x1501   : > { %3117 = vmax.xlane.f32.xlu1 %v3116_v17  ;;  %v3283_v0 = vsel %vm970_vm4, %v3282_v28, -inf }
0x1502   : > { %3284 = vmax.xlane.f32.xlu0 %v3283_v0  ;;  %5864 = vmatpush3.bf16.msra.mxu0 %v5863_v15  ;;  %v5292_v0 = vld [vmem:[%s7704_s25 + $0x38] sm:$0xff] }
0x1503   : > { %5865 = vmatprep.subr.bf16.mxu0 %v6458_v10 }
0x1504   : > { %v3444_v18 = vpop.f32.mrb[22].mxu0 }
0x1505   : > { %v3448_v19 = vmul.f32 0.35355338, %v3444_v18  ;;  %v5678_v20 = vpop.f32.mrb[23].mxu0 }
0x1507   : > { %v3449_v21 = vsel %vm1046_vm5, -1e+09, %v3448_v19 }
0x1508   : > { %v3611_v23 = vpop.f32.mrb[24].mxu0  ;;  %v3450_v24 = vsel %vm970_vm4, %v3449_v21, -inf }
0x1509   : > { %v3615_v27 = vmul.f32 0.35355338, %v3611_v23  ;;  %3451 = vmax.xlane.f32.xlu0 %v3450_v24  ;;  %v5688_v30 = vpop.f32.mrb[25].mxu0 }
0x150b   : > { %v3616_v32 = vsel %vm1046_vm5, -1e+09, %v3615_v27 }
0x150c   : > { %v3617_v33 = vsel %vm970_vm4, %v3616_v32, -inf }
0x150d   : > { %3618 = vmax.xlane.f32.xlu1 %v3617_v33 }
0x151e   : > { %3294 = vrot.lane.b32.xlu1 %v7278_v62, %s7720_s21 }
0x158e   : > { %v3118_v34 = vpop.xlane.xlu1 %3117 }
0x158f   : > { %v3119_v35 = vsub.f32 %v3115_v26, %v3118_v34  ;;  %v3285_v37 = vpop.xlane.xlu0 %3284 }
0x1590   : > { %v3286_v38 = vsub.f32 %v3282_v28, %v3285_v37  ;;  %v5291_v28 = vld [vmem:[%s7704_s25 + $0x30] sm:$0xff]  ;;  %v5295_v37 = vld [vmem:[%s7705_s7 + $0x1] ss:$0 sm:$0xff] }
0x1591   : > { %v3120_v39 = vmul.f32 1.442695, %v3119_v35  ;;  %v5866_v18 = vpack.c.bf16 %v5292_v0, %v5291_v28 }
0x1592   : > { %v3287_v40 = vmul.f32 1.442695, %v3286_v38 }
0x1593   : > { %6094 = vpow2.f32 %v3120_v39  ;;  %5867 = vmatpush3.bf16.msra.mxu0 %v5866_v18 }
0x1594   : > { %6096 = vpow2.f32 %v3287_v40  ;;  %5874 = vmatprep.subr.bf16.mxu0 %v6458_v10 }
0x1596   : > { %v3452_v51 = vpop.xlane.xlu0 %3451 }
0x1597   : > { %v3453_v7 = vsub.f32 %v3449_v21, %v3452_v51  ;;  %v3927_v51 = vld [vmem:[#allocation5 + $0x38] sm:$0xff] }
0x1599   : > { %v3454_v52 = vmul.f32 1.442695, %v3453_v7  ;;  %v5296_v7 = vld [vmem:[%s7604_s8 + $0x20] sm:$0xff] }
0x159a   : > { %v3619_v41 = vpop.xlane.xlu1 %3618 }
0x159b   : > { %v3620_v42 = vsub.f32 %v3616_v32, %v3619_v41 }
0x159d   : > { %v6095_v43 = vpop.eup %6094  ;;  %v3621_v44 = vmul.f32 1.442695, %v3620_v42 }
0x159e   : > { %v6097_v45 = vpop.eup %6096  ;;  %v3122_v46 = vsel %vm970_vm4, %v6095_v43, 0.0  ;;  %v3295_v57 = vpop.permute.xlu1 %3294 }
0x159f   : > { %6098 = vpow2.f32 %v3621_v44  ;;  %3123 = vadd.xlane.f32.xlu0 %v3122_v46  ;;  %v3289_v47 = vsel %vm970_vm4, %v6097_v45, 0.0 }
0x15a0   : > { %3290 = vadd.xlane.f32.xlu1 %v3289_v47  ;;  %6100 = vpow2.f32 %v3454_v52  ;;  %v3924_v47 = vld [vmem:[#allocation5 + $0x20] sm:$0xff] }
0x15a9   : > { %v6099_v48 = vpop.eup %6098 }
0x15aa   : > { %v3623_v49 = vsel %vm970_vm4, %v6099_v48, 0.0  ;;  %v6101_v54 = vpop.eup %6100 }
0x15ab   : > { %3624 = vadd.xlane.f32.xlu1 %v3623_v49  ;;  %v3456_v56 = vsel %vm970_vm4, %v6101_v54, 0.0 }
0x15b5   : > { %3127 = vrot.lane.b32.xlu0 %v7278_v62, %s7721_s1  ;;  %s826_s1 = sand.u32 1, %s7724_s5  }
0x15b6   : > { %s5226_s7 = sshll.u32 %s826_s1, 3  ;;  %s5022_s5 = scalar_lea.sflag [#allocation4], %s826_s1 }
0x15bc   : > { %3461 = vrot.lane.b32.xlu1 %v7278_v62, %s7722_s26 }
0x15d4   : > { %3457 = vadd.xlane.f32.xlu0 %v3456_v56  ;;  %v5298_v56 = vld [vmem:[%s7604_s8 + $0x30] sm:$0xff] }
0x15ea   : > { %3628 = vrot.lane.b32.xlu0 %v7278_v62, %s7723_s3  ;;  %s7728_s3 = sld [smem:[#allocation43_spill]] }
0x15f0   : > { %s7729_s24 = smov %s7728_s3 }
0x162c   : > { %v3124_v58 = vpop.xlane.xlu0 %3123 }
0x162d   : > { %6102 = vrcp.f32 %v3124_v58  ;;  %v3291_v59 = vpop.xlane.xlu1 %3290 }
0x162e   : > { %6104 = vrcp.f32 %v3291_v59 }
0x1630   : > { %v3128_v60 = vpop.permute.xlu0 %3127 }
0x1631   : > { %5660 = vmatpush3.msra.mxu1 %v3128_v60 }
0x1632   : > { %5669 = vmatprep.subr.mxu1 %v6460_v13 }
0x1637   : > { %v6103_v50 = vpop.eup %6102 }
0x1638   : > { %v3126_v61 = vmul.f32 %v6103_v50, %v6095_v43  ;;  %v3625_v63 = vpop.xlane.xlu1 %3624  ;;  %v6105_v25 = vpop.eup %6104 }
0x1639   : > { %v3293_v62 = vmul.f32 %v6105_v25, %v6097_v45 }
0x163a   : > { %5662 = vmatmul.mubr.msk.f32.vlgmr.msra.gmra.mrb[30].mxu1 %vm970_vm4, %v3126_v61 }
0x163b   : > { %5670 = vmatpush3.msra.mxu1 %v3295_v57  ;;  %5671 = vmatprep.mubr.msk.f32.mxu1 %vm6459_vm1, %v6460_v13  ;;  %v5299_v57 = vld [vmem:[%s7604_s8 + $0x38] sm:$0xff] }
0x163c   : > { %v3462_v1 = vpop.permute.xlu1 %3461  ;;  %5679 = vmatprep.subr.mxu1 %v6460_v13  ;;  %v5872_v59 = vpack.c.bf16 %v5299_v57, %v5298_v56 }
0x163e   : > { %5672 = vmatmul.mubr.msk.f32.vlgmr.msra.gmra.mrb[32].mxu1 %vm970_vm4, %v3293_v62 }
0x163f   : > { %5680 = vmatpush3.msra.mxu1 %v3462_v1  ;;  %5681 = vmatprep.mubr.msk.f32.mxu1 %vm6459_vm1, %v6460_v13 }
0x1640   : > { %5689 = vmatprep.subr.mxu1 %v6460_v13 }
0x1661   : > { %v3458_v2 = vpop.xlane.xlu0 %3457 }
0x1662   : > { %6106 = vrcp.f32 %v3458_v2 }
0x1663   : > { %6108 = vrcp.f32 %v3625_v63 }
0x1665   : > { %v3629_v9 = vpop.permute.xlu0 %3628 }
0x166c   : > { %v6107_v4 = vpop.eup %6106 }
0x166d   : > { %v3460_v5 = vmul.f32 %v6107_v4, %v6101_v54  ;;  %v6109_v6 = vpop.eup %6108  ;;  %v5297_v54 = vld [vmem:[%s7604_s8 + $0x28] sm:$0xff] }
0x166e   : > { %v3627_v11 = vmul.f32 %v6109_v6, %v6099_v48  ;;  %v3925_v48 = vld [vmem:[#allocation5 + $0x28] sm:$0xff]  ;;  %v5869_v58 = vpack.c.bf16 %v5297_v54, %v5296_v7 }
0x166f   : > { %5682 = vmatmul.mubr.msk.f32.vlgmr.msra.gmra.mrb[34].mxu1 %vm970_vm4, %v3460_v5  ;;  %v5875_v49 = vpack.c.bf16 %v3925_v48, %v3924_v47  ;;  %v3835_v5 = vrot.slane %v7268_v55, %v7086_v36 }
0x1670   : > { %5690 = vmatpush3.msra.mxu1 %v3629_v9  ;;  %5691 = vmatprep.mubr.msk.f32.mxu1 %vm6459_vm1, %v6460_v13 }
0x1671   : > { %5868 = vmatprep.subr.bf16.mxu1 %v6458_v10 }
0x1673   : > { %5692 = vmatmul.mubr.msk.f32.vlgmr.msra.gmra.mrb[36].mxu1 %vm970_vm4, %v3627_v11 }
0x1674   : > { %5713 = vmatprep.mubr.msk.f32.mxu1 %vm6459_vm1, %v6460_v13  ;;  %5870 = vmatpush3.bf16.msra.mxu1 %v5869_v58 }
0x1675   : > { %5871 = vmatprep.subr.bf16.mxu1 %v6458_v10 }
0x1678   : > { %5873 = vmatpush3.bf16.msra.mxu1 %v5872_v59 }
0x1679   : > { %5727 = vmatprep.subr.mxu1 %v6460_v13 }
0x170d   : > { %v3199_v16 = vpop.f32.mrb[30].mxu1 }
0x170e   : > { %v5663_v22 = vpop.f32.mrb[31].mxu1 }
0x170f   : > { %v5300_v22 = vld [vmem:[#allocation2 + $0x1] ss:$0 sm:$0xff] }
0x1711   : > { %v3366_v26 = vpop.f32.mrb[32].mxu1 }
0x1712   : > { %3705 = vrot.lane.b32.xlu1 %v3366_v26, %s7713_s30  ;;  %v5673_v17 = vpop.f32.mrb[33].mxu1 }
0x1742   : > { %v3533_v19 = vpop.f32.mrb[34].mxu1 }
0x1743   : > { %3709 = vrot.lane.b32.xlu0 %v3533_v19, %s7714_s23  ;;  %v5683_v20 = vpop.f32.mrb[35].mxu1 }
0x1746   : > { %v3700_v21 = vpop.f32.mrb[36].mxu1 }
0x1747   : > { %3713 = vrot.lane.b32.xlu1 %v3700_v21, %s7715_s28  ;;  %v5693_v23 = vpop.f32.mrb[37].mxu1 }
0x1784   : > { %v3706_v24 = vpop.permute.xlu1 %3705 }
0x1785   : > { %v3716_v30 = vsel %vm970_vm4, %v3199_v16, %v3706_v24 }
0x17b5   : > { %v3710_v27 = vpop.permute.xlu0 %3709 }
0x17b6   : > { %v3717_v32 = vsel %vm1649_vm6, %v3716_v30, %v3710_v27 }
0x17b9   : > { %v3714_v33 = vpop.permute.xlu1 %3713 }
0x17ba   : > { %v3718_v34 = vsel %vm1651_vm7, %v3717_v32, %v3714_v33 }
0x17bb   : > { %5703 = vmatmul.mubr.msk.f32.vlgmr.msra.gmra.mrb[26].mxu0 %vm850_vm0, %v3718_v34 }
0x17bc   : > { %5724 = vmatprep.mubr.msk.f32.mxu0 %vm6459_vm1, %v6460_v13  ;;  %5876 = vmatpush3.bf16.msra.mxu0 %v5875_v49 }
0x17bd   : > { %5877 = vmatprep.subr.bf16.mxu0 %v6458_v10 }
0x188e   : > { %v3793_v35 = vpop.f32.mrb[26].mxu0 }
0x188f   : > { %v3797_v38 = vadd.f32 %v3793_v35, %v7238_v29  ;;  %v5704_v39 = vpop.f32.mrb[27].mxu0  ;;  %v3926_v29 = vld [vmem:[#allocation5 + $0x30] sm:$0xff] }
0x1890   : > { %v5878_v52 = vpack.c.bf16 %v3927_v51, %v3926_v29 }
0x1891   : > { %v7382_v40 = vadd.f32 %v5295_v37, %v3797_v38 }
0x1892   : > { %5879 = vmatpush3.bf16.msra.mxu0 %v5878_v52 }
0x1893   : > { %v3807_v41 = vsel %vm850_vm0, %v7382_v40, 0.0  ;;  %5737 = vmatprep.subr.mxu0 %v6460_v13 }
0x1894   : > { %3808 = vadd.xlane.f32.xlu0 %v3807_v41 }
0x1895   : > { %5725 = vmatmul.mubr.msk.f32.vlgmr.msra.gmra.mrb[28].mxu0 %vm850_vm0, %v7077_v31  ;;  %v3820_v31 = vrot.slane %v7261_v53, %v7086_v36 }
0x1896   : > { %5739 = vmatprep.mubr.msk.f32.mxu0 %vm6459_vm1, %v6460_v13 }
0x1921   : > { %v3809_v42 = vpop.xlane.xlu0 %3808 }
0x1922   : > { %v3810_v43 = vmul.f32 0.03125, %v3809_v42 }
0x1924   : > { %v3811_v44 = vsub.f32 %v7382_v40, %v3810_v43 }
0x1926   : > { %v3812_v45 = vmul.f32 %v3811_v44, %v3811_v44  ;;  %v3821_v4 = vmul.f32 %v3820_v31, %v3811_v44 }
0x1928   : > { %v3813_v46 = vsel %vm850_vm0, %v3812_v45, 0.0 }
0x1929   : > { %3814 = vadd.xlane.f32.xlu1 %v3813_v46 }
0x1968   : > { %v4002_v14 = vpop.f32.mrb[28].mxu0 }
0x1969   : > { %v7415_v15 = vadd.f32 %v5302_v12, %v4002_v14  ;;  %v5726_v16 = vpop.f32.mrb[29].mxu0 }
0x196b   : > { %4173 = vrot.lane.b32.xlu0 %v7415_v15, %s7718_s6 }
0x196f   : > { %4340 = vrot.lane.b32.xlu0 %v7415_v15, %s7717_s29 }
0x1973   : > { %4507 = vrot.lane.b32.xlu0 %v7415_v15, %s7719_s2 }
0x19b6   : > { %v3815_v60 = vpop.xlane.xlu1 %3814 }
0x19b7   : > { %v3816_v50 = vmul.f32 0.032258064, %v3815_v60 }
0x19b9   : > { %6110 = vrsqrt.f32 %v3816_v50  ;;  %vm3824_vm3 = vcmp.eq.f32.partialorder %v3816_v50, inf  ;;  %v3827_v25 = vand.u32 2147483648, %v3816_v50  ;;  %vm3826_vm5 = vcmp.eq.f32.partialorder %v3816_v50, 0.0 }
0x19c3   : > { %v6111_v61 = vpop.eup %6110 }
0x19c4   : > { %v3823_v63 = vmul.f32 %v6111_v61, %v3816_v50 }
0x19c6   : > { %v3825_v62 = vsel %vm3824_vm3, %v3816_v50, %v3823_v63 }
0x19c7   : > { %v3828_v1 = vsel %vm3826_vm5, %v3827_v25, %v3825_v62 }
0x19c8   : > { %v3829_v2 = vadd.f32 1e-06, %v3828_v1 }
0x19ca   : > { %6112 = vrcp.f32 %v3829_v2 }
0x19d4   : > { %v6113_v6 = vpop.eup %6112 }
0x19d5   : > { %v3831_v9 = vmul.f32 %v6113_v6, %v3821_v4 }
0x19d7   : > { %v3836_v11 = vadd.f32 %v3835_v5, %v3831_v9 }
0x19d9   : > { %5714 = vmatmul.mubr.msk.f32.vlgmr.msra.gmra.mrb[38].mxu1 %vm850_vm0, %v3836_v11 }
0x19da   : > { %5729 = vmatprep.mubr.msk.f32.mxu1 %vm6459_vm1, %v6460_v13  ;;  %5728 = vmatpush3.xpose.msk.msra.mxu1 %vm970_vm4, %v7415_v15 }
0x19db   : > { %5732 = vmatprep.subr.mxu1 %v6460_v13 }
0x19dd   : > { %v4174_v36 = vpop.permute.xlu0 %4173 }
0x19de   : > { %5738 = vmatpush3.xpose.msk.msra.mxu0 %vm970_vm4, %v4174_v36 }
0x19df   : > { %5747 = vmatprep.subr.mxu0 %v6460_v13 }
0x19e1   : > { %v4341_v0 = vpop.permute.xlu0 %4340 }
0x19e5   : > { %v4508_v20 = vpop.permute.xlu0 %4507 }
0x1aac   : > { %v3919_v26 = vpop.f32.mrb[38].mxu1 }
0x1aad   : > { %v3920_v17 = vadd.f32 %v5300_v22, %v3919_v26  ;;  %v5715_v28 = vpop.f32.mrb[39].mxu1 }
0x1aaf   : > { %4171 = vrot.lane.b32.xlu1 %v3920_v17, %s7718_s6  ;;  %5730 = vmatmul.mubr.msk.f32.vlgmr.msra.gmra.mrb[40].mxu1 %vm970_vm4, %v3920_v17 }
0x1ab0   : > { %5734 = vmatprep.mubr.msk.f32.mxu1 %vm6459_vm1, %v6460_v13 }
0x1ab3   : > { %4338 = vrot.lane.b32.xlu1 %v3920_v17, %s7717_s29  ;;  %s828_s29 = scalar_lea.vmem [#allocation16], %s5226_s7 }
0x1ab4   : > { %s5035_s6 = sshll.u32 %s828_s29, 4  ;;  %s7555_s6 = int_to_ptr.vmem [resolvable:$true] %s5035_s6 }
0x1ab5   : > { %s6362_s10 = scalar_lea.vmem %s7555_s6, 128 }
0x1ab6   : > { %p6363_p6 = scmp.ne.s32.totalorder %s7555_s6, %s6362_s10 }
0x1ab7   : > { %4505 = vrot.lane.b32.xlu1 %v3920_v17, %s7719_s2 }
0x1b21   : > { %v4172_v18 = vpop.permute.xlu1 %4171 }
0x1b22   : > { %5740 = vmatmul.mubr.msk.f32.vlgmr.msra.gmra.mrb[30].mxu0 %vm970_vm4, %v4172_v18 }
0x1b23   : > { %5748 = vmatpush3.xpose.msk.msra.mxu0 %vm970_vm4, %v4341_v0  ;;  %5749 = vmatprep.mubr.msk.f32.mxu0 %vm6459_vm1, %v6460_v13 }
0x1b24   : > { %5757 = vmatprep.subr.mxu0 %v6460_v13 }
0x1b25   : > { %v4339_v19 = vpop.permute.xlu1 %4338 }
0x1b26   : > { %5750 = vmatmul.mubr.msk.f32.vlgmr.msra.gmra.mrb[32].mxu0 %vm970_vm4, %v4339_v19 }
0x1b27   : > { %5758 = vmatpush3.xpose.msk.msra.mxu0 %vm970_vm4, %v4508_v20  ;;  %5759 = vmatprep.mubr.msk.f32.mxu0 %vm6459_vm1, %v6460_v13 }
0x1b28   : > { %5880 = vmatprep.subr.bf16.mxu0 %v6458_v10 }
0x1b29   : > { %v4506_v21 = vpop.permute.xlu1 %4505 }
0x1b2a   : > { %5760 = vmatmul.mubr.msk.f32.vlgmr.msra.gmra.mrb[34].mxu0 %vm970_vm4, %v4506_v21 }
0x1b2b   : > { %5775 = vmatprep.mubr.msk.f32.mxu0 %vm6459_vm1, %v6460_v13 }
0x1b82   : > { %v4078_v23 = vpop.f32.mrb[40].mxu1 }
0x1b83   : > { %v4082_v24 = vmul.f32 0.35355338, %v4078_v23  ;;  %v5731_v27 = vpop.f32.mrb[41].mxu1  ;;  %v4688_v23 = vld [vmem:[#allocation8 + $0x20] sm:$0xff] }
0x1b85   : > { %v4083_v30 = vsel %vm7132_vm11, -1e+09, %v4082_v24  ;;  %v4689_v24 = vld [vmem:[#allocation8 + $0x28] sm:$0xff] }
0x1b86   : > { %v4084_v32 = vsel %vm970_vm4, %v4083_v30, -inf  ;;  %v5881_v27 = vpack.c.bf16 %v4689_v24, %v4688_v23 }
0x1b87   : > { %4085 = vmax.xlane.f32.xlu0 %v4084_v32  ;;  %v4691_v32 = vld [vmem:[#allocation8 + $0x38] sm:$0xff] }
0x1b88   : > { %5882 = vmatpush3.bf16.msra.mxu0 %v5881_v27 }
0x1b89   : > { %5883 = vmatprep.subr.bf16.mxu0 %v6458_v10 }
0x1bf5   : > { %v4245_v33 = vpop.f32.mrb[30].mxu0 }
0x1bf6   : > { %v4249_v34 = vmul.f32 0.35355338, %v4245_v33  ;;  %v5741_v35 = vpop.f32.mrb[31].mxu0 }
0x1bf8   : > { %v4250_v37 = vsel %vm7132_vm11, -1e+09, %v4249_v34 }
0x1bf9   : > { %v4412_v38 = vpop.f32.mrb[32].mxu0  ;;  %v4251_v39 = vsel %vm970_vm4, %v4250_v37, -inf }
0x1bfa   : > { %v4416_v41 = vmul.f32 0.35355338, %v4412_v38  ;;  %4252 = vmax.xlane.f32.xlu1 %v4251_v39  ;;  %v5751_v42 = vpop.f32.mrb[33].mxu0 }
0x1bfc   : > { %v4417_v43 = vsel %vm7132_vm11, -1e+09, %v4416_v41 }
0x1bfd   : > { %v4579_v44 = vpop.f32.mrb[34].mxu0  ;;  %v4418_v45 = vsel %vm970_vm4, %v4417_v43, -inf }
0x1bfe   : > { %v4583_v46 = vmul.f32 0.35355338, %v4579_v44  ;;  %v5761_v47 = vpop.f32.mrb[35].mxu0  ;;  %4419 = vmax.xlane.f32.xlu0 %v4418_v45 }
0x1c00   : > { %v4584_v48 = vsel %vm7132_vm11, -1e+09, %v4583_v46 }
0x1c01   : > { %v4585_v49 = vsel %vm970_vm4, %v4584_v48, -inf }
0x1c02   : > { %4586 = vmax.xlane.f32.xlu0 %v4585_v49  ;;  %v5317_v49 = vld [vmem:[#allocation10 + $0x1] ss:$0 sm:$0xff] }
0x1c0b   : > { %4095 = vrot.lane.b32.xlu1 %v7415_v15, %s7710_s22 }
0x1c14   : > { %v4086_v29 = vpop.xlane.xlu0 %4085 }
0x1c15   : > { %v4087_v51 = vsub.f32 %v4083_v30, %v4086_v29  ;;  %v4690_v30 = vld [vmem:[#allocation8 + $0x30] sm:$0xff] }
0x1c16   : > { %v5884_v33 = vpack.c.bf16 %v4691_v32, %v4690_v30  ;;  %v5329_v30 = vld [vmem:[#allocation14 + $0x1] ss:$0 sm:$0xff] }
0x1c17   : > { %v4088_v7 = vmul.f32 1.442695, %v4087_v51 }
0x1c18   : > { %5885 = vmatpush3.bf16.msra.mxu0 %v5884_v33 }
0x1c19   : > { %6114 = vpow2.f32 %v4088_v7  ;;  %5892 = vmatprep.subr.bf16.mxu0 %v6458_v10 }
0x1c23   : > { %v6115_v52 = vpop.eup %6114 }
0x1c24   : > { %v4090_v54 = vsel %vm970_vm4, %v6115_v52, 0.0 }
0x1c2f   : > { %4091 = vadd.xlane.f32.xlu1 %v4090_v54 }
0x1c87   : > { %v4253_v56 = vpop.xlane.xlu1 %4252 }
0x1c88   : > { %v4254_v57 = vsub.f32 %v4250_v37, %v4253_v56 }
0x1c8a   : > { %v4255_v58 = vmul.f32 1.442695, %v4254_v57 }
0x1c8b   : > { %v4096_v59 = vpop.permute.xlu1 %4095  ;;  %v4420_v3 = vpop.xlane.xlu0 %4419 }
0x1c8c   : > { %6116 = vpow2.f32 %v4255_v58  ;;  %v4421_v60 = vsub.f32 %v4417_v43, %v4420_v3  ;;  %5733 = vmatpush3.msra.mxu1 %v4096_v59  ;;  %v4807_v3 = vld [vmem:[#allocation11 + $0x28] sm:$0xff] }
0x1c8d   : > { %5742 = vmatprep.subr.mxu1 %v6460_v13 }
0x1c8e   : > { %v4422_v50 = vmul.f32 1.442695, %v4421_v60  ;;  %v4808_v60 = vld [vmem:[#allocation11 + $0x30] sm:$0xff] }
0x1c8f   : > { %v4587_v61 = vpop.xlane.xlu0 %4586 }
0x1c90   : > { %6118 = vpow2.f32 %v4422_v50  ;;  %v4588_v63 = vsub.f32 %v4584_v48, %v4587_v61 }
0x1c92   : > { %v4589_v25 = vmul.f32 1.442695, %v4588_v63  ;;  %v5320_v63 = vld [vmem:[%s7612_s16 + $0x40] sm:$0xff] }
0x1c94   : > { %6120 = vpow2.f32 %v4589_v25  ;;  %v5321_v25 = vld [vmem:[%s7612_s16 + $0x48] sm:$0xff] }
0x1c96   : > { %v6117_v62 = vpop.eup %6116 }
0x1c97   : > { %v4257_v1 = vsel %vm970_vm4, %v6117_v62, 0.0 }
0x1c98   : > { %4258 = vadd.xlane.f32.xlu0 %v4257_v1  ;;  %v5893_v1 = vpack.c.bf16 %v5321_v25, %v5320_v63 }
0x1c9a   : > { %v6119_v2 = vpop.eup %6118 }
0x1c9b   : > { %v4424_v31 = vsel %vm970_vm4, %v6119_v2, 0.0 }
0x1c9c   : > { %4425 = vadd.xlane.f32.xlu1 %v4424_v31 }
0x1c9e   : > { %v6121_v4 = vpop.eup %6120 }
0x1c9f   : > { %v4591_v5 = vsel %vm970_vm4, %v6121_v4, 0.0 }
0x1ca0   : > { %4592 = vadd.xlane.f32.xlu0 %v4591_v5  ;;  %v5325_v5 = vld [vmem:[%s7612_s16 + $0x68] sm:$0xff] }
0x1cad   : > { %4429 = vrot.lane.b32.xlu1 %v7415_v15, %s7711_s20  ;;  %s7725_s20 = sld [smem:[#allocation41_spill]] }
0x1cb1   : > { %4596 = vrot.lane.b32.xlu1 %v7415_v15, %s7712_s0  ;;  %s7726_s0 = sld [smem:[#allocation29_spill]] }
0x1cb6   : > { %4262 = vrot.lane.b32.xlu0 %v7415_v15, %s7716_s9  ;;  %s5333_s9 = sshll.u32 %s6613_s4, 7  ;;  %s6476_s4 = smov [#allocation16]  }
0x1cb7   : > { %s7553_s21 = scalar_lea.hbm %s7728_s3, %s5333_s9  ;;  %p7730_p9 = scmp.ne.s32.totalorder %s7726_s0, 0 }
0x1cb8   : > { %s6366_s7 = sshll.u32 %s6476_s4, 4  ;;  %s6367_s7 = int_to_ptr.vmem [resolvable:$false] %s6366_s7 }
0x1cb9   : > { %p6364_p5 = pnand %p6363_p6, %p7730_p9  ;;  %s6368_s22 = scalar_lea.vmem %s6367_s7, 256 }
0x1cba   : > { %p6369_p10 = scmp.lt.s32.totalorder %s7555_s6, %s6367_s7  ;;  %p6370_p2 = scmp.lt.s32.totalorder %s6368_s22, %s6362_s10 }
0x1cbb   : > { %p6365_p0 = pneg %p6364_p5 }
0x1cbc   : > { %v4092_v6 = vpop.xlane.xlu1 %4091  ;;  %p6371_p3 = por %p6370_p2, %p6369_p10 }
0x1cbd   : > { %6122 = vrcp.f32 %v4092_v6 }
0x1cbe   : > { %p6372_p4 = pnand %p6371_p3, %p6365_p0 }
0x1cc7   : > { %v6123_v9 = vpop.eup %6122 }
0x1cc8   : > { %v4094_v11 = vmul.f32 %v6123_v9, %v6115_v52 }
0x1cca   : > { %5735 = vmatmul.mubr.msk.f32.vlgmr.msra.gmra.mrb[42].mxu1 %vm970_vm4, %v4094_v11 }
0x1ccb   : > { %5744 = vmatprep.mubr.msk.f32.mxu1 %vm6459_vm1, %v6460_v13 }
0x1d25   : > { %v4259_v12 = vpop.xlane.xlu0 %4258 }
0x1d26   : > { %6124 = vrcp.f32 %v4259_v12 }
0x1d29   : > { %v4426_v14 = vpop.xlane.xlu1 %4425 }
0x1d2a   : > { %6126 = vrcp.f32 %v4426_v14 }
0x1d2d   : > { %v4593_v16 = vpop.xlane.xlu0 %4592  ;;  %v4430_v26 = vpop.permute.xlu1 %4429 }
0x1d2e   : > { %6128 = vrcp.f32 %v4593_v16 }
0x1d30   : > { %v6125_v36 = vpop.eup %6124 }
0x1d31   : > { %v4261_v22 = vmul.f32 %v6125_v36, %v6117_v62  ;;  %v4263_v17 = vpop.permute.xlu0 %4262  ;;  %v4597_v0 = vpop.permute.xlu1 %4596  ;;  %v5322_v62 = vld [vmem:[%s7612_s16 + $0x50] sm:$0xff] }
0x1d32   : > { %5743 = vmatpush3.msra.mxu1 %v4263_v17  ;;  %v4788_v17 = vrot.slane %v7261_v53, %v7218_v8  ;;  %v5318_v53 = vld [vmem:[#allocation13 + $0x1] ss:$0 sm:$0xff] }
0x1d33   : > { %5745 = vmatmul.mubr.msk.f32.vlgmr.msra.gmra.mrb[44].mxu1 %vm970_vm4, %v4261_v22  ;;  %5752 = vmatprep.subr.mxu1 %v6460_v13 }
0x1d34   : > { %v6127_v15 = vpop.eup %6126  ;;  %5753 = vmatpush3.msra.mxu1 %v4430_v26  ;;  %5754 = vmatprep.mubr.msk.f32.mxu1 %vm6459_vm1, %v6460_v13 }
0x1d35   : > { %v4428_v28 = vmul.f32 %v6127_v15, %v6119_v2  ;;  %5762 = vmatprep.subr.mxu1 %v6460_v13  ;;  %v5323_v2 = vld [vmem:[%s7612_s16 + $0x58] sm:$0xff] }
0x1d36   : > { %v5896_v31 = vpack.c.bf16 %v5323_v2, %v5322_v62 }
0x1d37   : > { %5755 = vmatmul.mubr.msk.f32.vlgmr.msra.gmra.mrb[46].mxu1 %vm970_vm4, %v4428_v28  ;;  %v4803_v28 = vrot.slane %v7268_v55, %v7218_v8 }
0x1d38   : > { %v6129_v18 = vpop.eup %6128  ;;  %5763 = vmatpush3.msra.mxu1 %v4597_v0  ;;  %5764 = vmatprep.mubr.msk.f32.mxu1 %vm6459_vm1, %v6460_v13 }
0x1d39   : > { %v4595_v19 = vmul.f32 %v6129_v18, %v6121_v4  ;;  %5886 = vmatprep.subr.bf16.mxu1 %v6458_v10  ;;  %v5324_v4 = vld [vmem:[%s7612_s16 + $0x60] sm:$0xff] }
0x1d3a   : > { %v5899_v6 = vpack.c.bf16 %v5325_v5, %v5324_v4 }
0x1d3b   : > { %5765 = vmatmul.mubr.msk.f32.vlgmr.msra.gmra.mrb[48].mxu1 %vm970_vm4, %v4595_v19  ;;  %v5326_v19 = vld [vmem:[%s7612_s16 + $0x70] sm:$0xff] }
0x1d3c   : > { %5786 = vmatprep.mubr.msk.f32.mxu1 %vm6459_vm1, %v6460_v13 }
0x1d9d   : > { %v4167_v20 = vpop.f32.mrb[42].mxu1 }
0x1d9e   : > { %v5736_v21 = vpop.f32.mrb[43].mxu1 }
0x1e06   : > { %v4334_v34 = vpop.f32.mrb[44].mxu1 }
0x1e07   : > { %4673 = vrot.lane.b32.xlu0 %v4334_v34, %s7713_s30  ;;  %v5746_v35 = vpop.f32.mrb[45].mxu1 }
0x1e0a   : > { %v4501_v37 = vpop.f32.mrb[46].mxu1 }
0x1e0b   : > { %4677 = vrot.lane.b32.xlu1 %v4501_v37, %s7714_s23  ;;  %v5756_v38 = vpop.f32.mrb[47].mxu1 }
0x1e0e   : > { %v4668_v39 = vpop.f32.mrb[48].mxu1 }
0x1e0f   : > { %4681 = vrot.lane.b32.xlu0 %v4668_v39, %s7715_s28  ;;  %v5766_v41 = vpop.f32.mrb[49].mxu1  ;;  %s7727_s28 = sld [smem:[#allocation42_spill]] }
0x1e79   : > { %v4674_v42 = vpop.permute.xlu0 %4673 }
0x1e7a   : > { %v4684_v44 = vsel %vm970_vm4, %v4167_v20, %v4674_v42  ;;  %v5327_v20 = vld [vmem:[%s7612_s16 + $0x78] sm:$0xff] }
0x1e7b   : > { %v5902_v21 = vpack.c.bf16 %v5327_v20, %v5326_v19 }
0x1e7d   : > { %v4678_v43 = vpop.permute.xlu1 %4677 }
0x1e7e   : > { %v4685_v45 = vsel %vm1649_vm6, %v4684_v44, %v4678_v43 }
0x1e81   : > { %v4682_v46 = vpop.permute.xlu0 %4681 }
0x1e82   : > { %v4686_v47 = vsel %vm1651_vm7, %v4685_v45, %v4682_v46 }
0x1e83   : > { %5776 = vmatmul.mubr.msk.f32.vlgmr.msra.gmra.mrb[36].mxu0 %vm850_vm0, %v4686_v47 }
0x1e84   : > { %5805 = vmatprep.mubr.msk.f32.mxu0 %vm6459_vm1, %v6460_v13  ;;  %v4806_v13 = vld [vmem:[#allocation11 + $0x20] sm:$0xff]  ;;  %5894 = vmatpush3.bf16.msra.mxu0 %v5893_v1 }
0x1e85   : > { %v5887_v50 = vpack.c.bf16 %v4807_v3, %v4806_v13  ;;  %5895 = vmatprep.subr.bf16.mxu0 %v6458_v10 }
0x1e87   : > { %5888 = vmatpush3.bf16.msra.mxu1 %v5887_v50 }
0x1e88   : > { %5889 = vmatprep.subr.bf16.mxu1 %v6458_v10  ;;  %5897 = vmatpush3.bf16.msra.mxu0 %v5896_v31 }
0x1e89   : > { %5898 = vmatprep.subr.bf16.mxu0 %v6458_v10 }
0x1e8c   : > { %5900 = vmatpush3.bf16.msra.mxu0 %v5899_v6 }
0x1e8d   : > { %5901 = vmatprep.subr.bf16.mxu0 %v6458_v10 }
0x1e90   : > { %5903 = vmatpush3.bf16.msra.mxu0 %v5902_v21 }
0x1f56   : > { %v4761_v48 = vpop.f32.mrb[36].mxu0 }
0x1f57   : > { %v4765_v29 = vadd.f32 %v4761_v48, %v7382_v40  ;;  %v5777_v51 = vpop.f32.mrb[37].mxu0  ;;  %v4809_v40 = vld [vmem:[#allocation11 + $0x38] sm:$0xff] }
0x1f58   : > { %v5890_v61 = vpack.c.bf16 %v4809_v40, %v4808_v60  ;;  %v5330_v51 = vld [vmem:[%s7725_s20] ss:$0 sm:$0xff] }
0x1f59   : > { %v7499_v7 = vadd.f32 %v5317_v49, %v4765_v29 }
0x1f5a   : > { %5891 = vmatpush3.bf16.msra.mxu1 %v5890_v61 }
0x1f5b   : > { %v4775_v52 = vsel %vm850_vm0, %v7499_v7, 0.0 }
0x1f5c   : > { %4776 = vadd.xlane.f32.xlu1 %v4775_v52 }
0x1fe9   : > { %v4777_v54 = vpop.xlane.xlu1 %4776 }
0x1fea   : > { %v4778_v56 = vmul.f32 0.03125, %v4777_v54  ;;  %v5331_v54 = vld [vmem:[%s7727_s28] ss:$0 sm:$0xff] }
0x1fec   : > { %v4779_v57 = vsub.f32 %v7499_v7, %v4778_v56 }
0x1fee   : > { %v4780_v58 = vmul.f32 %v4779_v57, %v4779_v57  ;;  %v4789_v15 = vmul.f32 %v4788_v17, %v4779_v57 }
0x1ff0   : > { %v4781_v59 = vsel %vm850_vm0, %v4780_v58, 0.0 }
0x1ff1   : > { %4782 = vadd.xlane.f32.xlu0 %v4781_v59 }
0x207e   : > { %v4783_v9 = vpop.xlane.xlu0 %4782 }
0x207f   : > { %v4784_v11 = vmul.f32 0.032258064, %v4783_v9 }
0x2081   : > { %6130 = vrsqrt.f32 %v4784_v11  ;;  %vm4792_vm1 = vcmp.eq.f32.partialorder %v4784_v11, inf  ;;  %v4795_v16 = vand.u32 2147483648, %v4784_v11  ;;  %vm4794_vm4 = vcmp.eq.f32.partialorder %v4784_v11, 0.0 }
0x208b   : > { %v6131_v12 = vpop.eup %6130 }
0x208c   : > { %v4791_v14 = vmul.f32 %v6131_v12, %v4784_v11 }
0x208e   : > { %v4793_v36 = vsel %vm4792_vm1, %v4784_v11, %v4791_v14 }
0x208f   : > { %v4796_v22 = vsel %vm4794_vm4, %v4795_v16, %v4793_v36 }
0x2090   : > { %v4797_v26 = vadd.f32 1e-06, %v4796_v22 }
0x2092   : > { %6132 = vrcp.f32 %v4797_v26 }
0x209c   : > { %v6133_v10 = vpop.eup %6132 }
0x209d   : > { %v4799_v0 = vmul.f32 %v6133_v10, %v4789_v15 }
0x209f   : > { %v4804_v18 = vadd.f32 %v4803_v28, %v4799_v0 }
0x20a1   : > { %5787 = vmatmul.mubr.msk.f32.vlgmr.msra.gmra.mrb[50].mxu1 %vm850_vm0, %v4804_v18 }
0x2174   : > { %v4887_v23 = vpop.f32.mrb[50].mxu1 }
0x2175   : > { %v4888_v24 = vadd.f32 %v5318_v53, %v4887_v23  ;;  %v5788_v27 = vpop.f32.mrb[51].mxu1 }
0x2177   : > { %v4891_v8 = vmax.f32 %v4888_v24, 0.0 }
0x2179   : > { %5806 = vmatmul.mubr.msk.f32.vlgmr.msra.gmra.mrb[38].mxu0 %vm2834_vm14, %v4891_v8 }
0x224c   : > { %v4970_v55 = vpop.f32.mrb[38].mxu0 }
0x224d   : > { %v4974_v32 = vadd.f32 %v4970_v55, %v7499_v7  ;;  %v5807_v33 = vpop.f32.mrb[39].mxu0 }
0x224f   : > { %v4983_v34 = vadd.f32 %v5329_v30, %v4974_v32 }
0x2251   : > { %v4986_v35 = vsel %vm850_vm0, %v4983_v34, 0.0 }
0x2252   : > { %4987 = vadd.xlane.f32.xlu0 %v4986_v35 }
0x22df   : > { %v4988_v37 = vpop.xlane.xlu0 %4987 }
0x22e0   : > { %v4989_v38 = vmul.f32 0.03125, %v4988_v37 }
0x22e2   : > { %v4990_v39 = vsub.f32 %v4983_v34, %v4989_v38 }
0x22e4   : > { %v4991_v41 = vmul.f32 %v4990_v39, %v4990_v39  ;;  %v5002_v7 = vmul.f32 %v5330_v51, %v4990_v39 }
0x22e6   : > { %v4992_v42 = vsel %vm850_vm0, %v4991_v41, 0.0 }
0x22e7   : > { %4993 = vadd.xlane.f32.xlu1 %v4992_v42 }
0x2374   : > { %v4994_v43 = vpop.xlane.xlu1 %4993 }
0x2375   : > { %v4995_v44 = vmul.f32 0.032258064, %v4994_v43 }
0x2377   : > { %6134 = vrsqrt.f32 %v4995_v44  ;;  %vm5005_vm6 = vcmp.eq.f32.partialorder %v4995_v44, inf  ;;  %v5008_v47 = vand.u32 2147483648, %v4995_v44  ;;  %vm5007_vm7 = vcmp.eq.f32.partialorder %v4995_v44, 0.0 }
0x2381   : > { %v6135_v45 = vpop.eup %6134 }
0x2382   : > { %v5004_v46 = vmul.f32 %v6135_v45, %v4995_v44 }
0x2384   : > { %v5006_v48 = vsel %vm5005_vm6, %v4995_v44, %v5004_v46 }
0x2385   : > { %v5009_v49 = vsel %vm5007_vm7, %v5008_v47, %v5006_v48 }
0x2386   : > { %v5010_v29 = vadd.f32 1e-06, %v5009_v49 }
0x2388   : > { %6136 = vrcp.f32 %v5010_v29 }
0x2392   : > { %v6137_v52 = vpop.eup %6136 }
0x2393   : > { %v5012_v56 = vmul.f32 %v6137_v52, %v5002_v7 }
0x2395   : > { %v5019_v57 = vadd.f32 %v5331_v54, %v5012_v56 }
0x2397   : > { %5020 = vst.msk [vmem:[%s828_s29] sm:$0xff] %vm850_vm0, %v5019_v57 }
0x2398   : > { %6375 = shalt.err (!%p6372_p4)
}
0x2399   : > { %s6376_s1 = scalar_lea.hbm %s7553_s21, 128  ;;  %s6380_s23 = scalar_lea.hbm %s7729_s24, 256 }
0x239a   : > { %p6377_p12 = scmp.ne.s32.totalorder %s7553_s21, %s6376_s1  ;;  %p6381_p11 = scmp.lt.u32.totalorder %s7553_s21, %s7729_s24 }
0x239b   : > { %p6382_p13 = scmp.lt.u32.totalorder %s6380_s23, %s6376_s1  ;;  %p6384_p6 = scmp.lt.u32.totalorder %s6376_s1, %s7553_s21 }
0x239c   : > { %p6378_p7 = pnand %p6377_p12, %p7730_p9 }
0x239d   : > { %p6383_p1 = por %p6382_p13, %p6381_p11 }
0x239e   : > { %p6379_p8 = pneg %p6378_p7 }
0x239f   : > { %p6385_p5 = por %p6384_p6, %p6383_p1 }
0x23a1   : > { %p6386_p0 = pnand %p6385_p5, %p6379_p8 }
0x23a3   : > { %6389 = shalt.err (!%p6386_p0)
}
0x23a4   : > { %5936 = dma.vmem_to_hbm [thread:$0]  (%p7730_p9), %s7555_s6, 128, %s7553_s21, %s5022_s5  }
0x23a5 PF: > { %s7731_s29 = sld [smem:[#allocation26_spill]]  ;;  %s7732_s2 = sld [smem:[#allocation23_spill]] }
0x23a6   : > { %s7733_s26 = sld [smem:[#allocation30_spill]] }
0x23ab   : > { %p5983_p10 = scmp.ge.s32.totalorder %s7731_s29, 2  ;;  %s5047_s3 = sand.u32 1, %s7732_s2  }
0x23ac   : > { %p7734_p2 = scmp.ne.s32.totalorder %s7733_s26, 0  ;;  %s5048_s10 = scalar_lea.sflag [#allocation4], %s5047_s3 }
0x23ae   : > { %p5964_p3 = pnand %p5983_p10, %p7734_p2 }
0x23b0   : > { %6427 = dma.done.wait (!%p5964_p3), %s5048_s10, 128  }
0x23b1   : > { %6429 = vsyncadd (!%p5964_p3), %s5048_s10, 4294967168  ;;  %s7735_s30 = sld [smem:[#allocation27_spill]]  ;;  %s7736_s3 = sld [smem:[#allocation24_spill]] }
0x23b2   : > { %s7737_s28 = sld [smem:[#allocation25_spill]]  ;;  %s7738_s29 = sld [smem:[#allocation28_spill]] }
0x23b7   : > { %p37_p4 = scmp.ge.s32.totalorder %s7735_s30, 4  }
0x23b9   :  { %39 = sbr.rel (!%p37_p4) target bundleno = 22 (0x16), region = 201 }
0x23c0   :  { %5053 = vsyncpa [#allocation3], 1 }
0x23c1   :  { %5055 = vsyncpa [#allocation3 + $0x1], 1 }
0x23c2   :  { %5056 = vsyncpa [#allocation6], 1 }
0x23c3   :  { %5057 = vsyncpa [#allocation9], 1 }
0x23c4   :  { %5058 = vsyncpa [#allocation12], 1 }
0x23c5   :  { %5059 = vsyncpa [#allocation15], 1 }
0x23c6   :  { %5060 = vsyncpa [#allocation4], 1 }
0x23c7   :  { %5062 = vsyncpa [#allocation4 + $0x1], 1 }

</bundles_post_ra>
